<compile_context>
chip_gen: v7x
topology: tpu7x:2x2x1
jax: 0.10.0
libtpu: 0.0.40
codegen_flags: <defaults>
</compile_context>

<pallas_src>
import functools

import numpy as np
import jax
import jax.numpy as jnp
from jax import lax
from jax.experimental import pallas as pl
from jax.experimental.pallas import tpu as pltpu


# ----------------------------- static geometry ------------------------------

def _interp_matrix_np(out_size, in_size):
    """1-D linear interpolation matrix, align_corners=True (PyTorch bilinear)."""
    if in_size == 1:
        return np.ones((out_size, 1), np.float32)
    src = np.arange(out_size, dtype=np.float64) * (in_size - 1) / (out_size - 1)
    i0 = np.clip(np.floor(src).astype(np.int64), 0, in_size - 2)
    w1 = (src - i0).astype(np.float32)
    w0 = (1.0 - w1).astype(np.float32)
    m = np.zeros((out_size, in_size), np.float32)
    m[np.arange(out_size), i0] += w0
    m[np.arange(out_size), i0 + 1] += w1
    return m


def _extract_mat(Hp, Wp, stride):
    """Select the valid conv-output pixels out of the full padded-grid response."""
    Ho = (Hp - 3) // stride + 1
    Wo = (Wp - 3) // stride + 1
    m = np.zeros((Hp * Wp, Ho * Wo), np.float32)
    for ho in range(Ho):
        for wo in range(Wo):
            m[(stride * ho + 1) * Wp + (stride * wo + 1), ho * Wo + wo] = 1.0
    return m


def _pad_mat(H, W, pad):
    """Embed HxW pixels into the interior of an (H+2p)x(W+2p) zero grid."""
    Hp, Wp = H + 2 * pad, W + 2 * pad
    m = np.zeros((H * W, Hp * Wp), np.float32)
    for h in range(H):
        for w in range(W):
            m[h * W + w, (h + pad) * Wp + (w + pad)] = 1.0
    return m


def _upsample_mat(H, W):
    """Flattened 2x bilinear upsample, align_corners=True: (H*W, 4*H*W)."""
    ah = _interp_matrix_np(2 * H, H)      # (2H, H)
    aw = _interp_matrix_np(2 * W, W)      # (2W, W)
    return np.einsum("ph,qw->hwpq", ah, aw).reshape(H * W, 4 * H * W)


@functools.lru_cache(maxsize=None)
def _build_plan(num_conv, conv_dims, in_channels, H, W):
    """Per-conv geometry + inter-conv spatial transform matrices (static)."""
    convs = []
    h, w, cin = H, W, in_channels
    for _ in range(num_conv):                                    # encoder
        convs.append(dict(cin=cin, cout=conv_dims, stride=2, pad=1,
                          in_h=h, in_w=w, up=False, act="relu"))
        h = (h - 1) // 2 + 1
        w = (w - 1) // 2 + 1
        cin = conv_dims
    lat_hw = (h, w)
    for k in range(num_conv):                                    # decoder
        pad = 0 if (k == num_conv - 2 and num_conv > 2) else 1
        h, w = 2 * h, 2 * w
        convs.append(dict(cin=conv_dims, cout=conv_dims, stride=1, pad=pad,
                          in_h=h, in_w=w, up=True, act="relu"))
        h, w = h + 2 * pad - 2, w + 2 * pad - 2
    convs.append(dict(cin=conv_dims, cout=1, stride=1, pad=1,    # outconv
                      in_h=h, in_w=w, up=False, act="sigmoid"))
    for c in convs:
        c["Hp"] = c["in_h"] + 2 * c["pad"]
        c["Wp"] = c["in_w"] + 2 * c["pad"]
        c["out_h"] = (c["Hp"] - 3) // c["stride"] + 1
        c["out_w"] = (c["Wp"] - 3) // c["stride"] + 1

    # trans[i-1] maps conv i-1's full-grid output (or the latent) to conv i's
    # padded input grid.  It composes: valid-pixel extraction (incl. stride-2),
    # optional bilinear 2x upsample, optional zero re-padding.
    trans = []
    for i in range(1, len(convs)):
        prev, cur = convs[i - 1], convs[i]
        if (i != num_conv and not cur["up"] and prev["stride"] == 1
                and cur["pad"] == 1 and cur["Hp"] == prev["Hp"]
                and cur["Wp"] == prev["Wp"]):
            # stride-1 conv followed by a same-size pad-1 conv: extraction and
            # re-padding cancel; just zero the border ring (no matmul needed).
            msk = np.zeros((prev["Hp"], prev["Wp"]), np.float32)
            msk[1:-1, 1:-1] = 1.0
            trans.append(("mask", msk.reshape(1, -1)))
            continue
        if i == num_conv:
            # first decoder conv starts from the already-extracted latent.
            m = np.eye(prev["out_h"] * prev["out_w"], dtype=np.float32)
        else:
            m = _extract_mat(prev["Hp"], prev["Wp"], prev["stride"])
        if cur["up"]:
            m = m @ _upsample_mat(prev["out_h"], prev["out_w"])
        if cur["pad"] > 0:
            m = m @ _pad_mat(cur["in_h"], cur["in_w"], cur["pad"])
        trans.append(("mat", m.astype(np.float32)))

    latent_mat = _extract_mat(convs[num_conv - 1]["Hp"],
                              convs[num_conv - 1]["Wp"],
                              convs[num_conv - 1]["stride"])
    return convs, trans, latent_mat, lat_hw


# ------------------------------ fused kernel --------------------------------

def _make_fused_kernel(convs, trans, latent_idx, guard):
    n_convs = len(convs)
    n_trans = len(trans)

    def kernel(*refs):
        pos = 0
        x_ref = refs[pos]; pos += 1
        w_refs, b_refs = [], []
        for _ in range(n_convs):
            w_refs.append(refs[pos]); b_refs.append(refs[pos + 1]); pos += 2
        latmat_ref = refs[pos]; pos += 1
        t_refs = [refs[pos + i] for i in range(n_trans)]; pos += n_trans
        recon_ref = refs[pos]; lat_ref = refs[pos + 1]
        buf = refs[pos + 2]; pat = refs[pos + 3]

        def conv3x3(a, i):
            """a: (C_in, Hp*Wp) padded-grid activation -> (C_out, Hp*Wp)."""
            Hp, Wp = convs[i]["Hp"], convs[i]["Wp"]
            Lp = Hp * Wp
            cin = a.shape[0]
            # guarded, zero-padded copy of the flattened activation
            buf[...] = jnp.zeros_like(buf)
            buf[0:cin, guard:guard + Lp] = a
            # shift-im2col: 9 statically shifted windows stacked along rows
            for k in range(9):
                d = (k // 3 - 1) * Wp + (k % 3 - 1)
                pat[k * cin:(k + 1) * cin, 0:Lp] = \
                    buf[0:cin, guard + d:guard + d + Lp]
            out = jnp.dot(w_refs[i][...], pat[0:9 * cin, 0:Lp],
                          preferred_element_type=jnp.float32)
            out = out + b_refs[i][...]
            if convs[i]["act"] == "relu":
                return jnp.maximum(out, 0.0)
            return jax.nn.sigmoid(out)

        a = x_ref[...].astype(jnp.float32)            # (C_in0, Hp0*Wp0)
        for i in range(n_convs):
            if i > 0:
                if trans[i - 1][0] == "mat":
                    a = jnp.dot(a, t_refs[i - 1][...],
                                preferred_element_type=jnp.float32)
                else:                                  # "mask"
                    a = a * t_refs[i - 1][...]
            a = conv3x3(a, i)
            if i == latent_idx:
                lat = jnp.dot(a, latmat_ref[...],
                              preferred_element_type=jnp.float32)
                lat_ref[...] = lat
                a = lat
        recon_ref[...] = a

    return kernel


# --------------------------- model (forward) ---------------------------------

def init_params(key, num_conv=3, conv_dims=8, in_channels=1):
    def conv_init(k, c_out, c_in, ksize=3, scale=0.1):
        kw_, kb_ = jax.random.split(k)
        w = scale * jax.random.normal(kw_, (c_out, c_in, ksize, ksize), jnp.float32)
        b = scale * jax.random.normal(kb_, (c_out,), jnp.float32)
        return w, b

    keys = jax.random.split(key, 2 * num_conv + 1)
    params = {"enc": [], "dec": []}
    for k in range(num_conv):
        cin = in_channels if k == 0 else conv_dims
        params["enc"].append(conv_init(keys[k], conv_dims, cin))
    for k in range(num_conv):
        params["dec"].append(conv_init(keys[num_conv + k], conv_dims, conv_dims))
    params["out"] = conv_init(keys[-1], 1, conv_dims)
    return params


def recon_net_forward(params, x, num_conv=3):
    N, in_ch, H, W = x.shape
    conv_dims = params["enc"][0][0].shape[0]
    convs, trans, latent_mat, (lat_h, lat_w) = _build_plan(
        num_conv, conv_dims, in_ch, H, W)

    # torch-layout conv params -> lane-dense matmul form
    torch_params = params["enc"] + params["dec"] + [params["out"]]
    w_mats, b_mats = [], []
    for (wt, bt), c in zip(torch_params, convs):
        cout, cin = wt.shape[0], wt.shape[1]
        wm = wt.transpose(0, 2, 3, 1).reshape(cout, 9 * cin)   # cols: (kh,kw,ci)
        bm = bt.reshape(cout, 1)
        cout_pad = max(cout, 8)                                # pad M=1 -> 8 rows
        if cout_pad != cout:
            wm = jnp.pad(wm, ((0, cout_pad - cout), (0, 0)))
            bm = jnp.pad(bm, ((0, cout_pad - cout), (0, 0)))
        w_mats.append(wm.astype(jnp.float32))
        b_mats.append(bm.astype(jnp.float32))

    p0 = convs[0]["pad"]
    Lp0 = convs[0]["Hp"] * convs[0]["Wp"]
    xg = jnp.pad(x.astype(jnp.float32),
                 ((0, 0), (0, 0), (p0, p0), (p0, p0))).reshape(N, in_ch, Lp0)

    const_arrays = []
    for i in range(len(convs)):
        const_arrays += [w_mats[i], b_mats[i]]
    const_arrays.append(jnp.asarray(latent_mat, jnp.float32))
    for _, m in trans:
        const_arrays.append(jnp.asarray(m, jnp.float32))

    in_specs = [pl.BlockSpec((None, in_ch, Lp0), lambda n: (n, 0, 0))]
    in_specs += [pl.BlockSpec(c.shape, lambda n: (0, 0)) for c in const_arrays]

    max_cin = max(c["cin"] for c in convs)
    max_Lp = max(c["Hp"] * c["Wp"] for c in convs)
    guard = max(c["Wp"] for c in convs) + 2
    cout_last = w_mats[-1].shape[0]
    Hp_l, Wp_l = convs[-1]["Hp"], convs[-1]["Wp"]
    Lp_last = Hp_l * Wp_l
    lat_pix = lat_h * lat_w
    latent_idx = num_conv - 1

    kernel = _make_fused_kernel(convs, trans, latent_idx, guard)

    recon_full, latent_flat = pl.pallas_call(
        kernel,
        out_shape=(jax.ShapeDtypeStruct((N, cout_last, Lp_last), jnp.float32),
                   jax.ShapeDtypeStruct((N, conv_dims, lat_pix), jnp.float32)),
        grid=(N,),
        in_specs=in_specs,
        out_specs=(pl.BlockSpec((None, cout_last, Lp_last), lambda n: (n, 0, 0)),
                   pl.BlockSpec((None, conv_dims, lat_pix), lambda n: (n, 0, 0))),
        scratch_shapes=[
            pltpu.VMEM((max_cin, 2 * guard + max_Lp), jnp.float32),   # guarded act
            pltpu.VMEM((9 * max_cin, max_Lp), jnp.float32),           # im2col patches
        ],
        compiler_params=pltpu.CompilerParams(
            dimension_semantics=("parallel",)),
    )(xg, *const_arrays)

    pe = convs[-1]["pad"]
    recon = recon_full.reshape(N, cout_last, Hp_l, Wp_l)[
        :, :1, pe:Hp_l - pe, pe:Wp_l - pe]
    latent = latent_flat.reshape(N, conv_dims, lat_h, lat_w)
    return recon, latent


# -------------------------- pure-JAX reference -------------------------------

def _conv2d_ref(x, w, b, stride, pad, act):
    out = lax.conv_general_dilated(
        x, w, window_strides=(stride, stride),
        padding=((pad, pad), (pad, pad)),
        dimension_numbers=("NCHW", "OIHW", "NCHW"),
        precision=lax.Precision.HIGHEST)
    out = out + b.reshape(1, -1, 1, 1)
    if act == "relu":
        out = jnp.maximum(out, 0.0)
    elif act == "sigmoid":
        out = jax.nn.sigmoid(out)
    return out


def _upsample2x_ref(x):
    N, C, H, W = x.shape
    ah = jnp.asarray(_interp_matrix_np(2 * H, H))
    aw = jnp.asarray(_interp_matrix_np(2 * W, W))
    return jnp.einsum("ph,nchw,qw->ncpq", ah, x, aw,
                      precision=lax.Precision.HIGHEST)


def recon_net_forward_ref(params, x, num_conv=3):
    for k in range(num_conv):
        w, b = params["enc"][k]
        x = _conv2d_ref(x, w, b, 2, 1, "relu")
    latent = x
    for k in range(num_conv):
        w, b = params["dec"][k]
        pad = 0 if (k == num_conv - 2 and num_conv > 2) else 1
        x = _upsample2x_ref(x)
        x = _conv2d_ref(x, w, b, 1, pad, "relu")
    wo, bo = params["out"]
    x = _conv2d_ref(x, wo, bo, 1, 1, "sigmoid")
    return x, latent


# ------------------------------------------------------------------------------

if __name__ == "__main__":
    NUM_CONV = 3
    CONV_DIMS = 8

    key = jax.random.PRNGKey(0)
    kp, kx = jax.random.split(key)
    params = init_params(kp, NUM_CONV, CONV_DIMS, in_channels=1)
    # typical mask-head reconstruction input: (N, 1, 28, 28)
    x = jax.random.normal(kx, (2, 1, 28, 28), jnp.float32)

    fwd = jax.jit(functools.partial(recon_net_forward, num_conv=NUM_CONV))
    out, latent = fwd(params, x)
    out, latent = jax.block_until_ready((out, latent))

    # shape checks (encoder halves 28 -> 14 -> 7 -> 4; decoder restores 28)
    assert out.shape == (2, 1, 28, 28), out.shape
    assert latent.shape == (2, CONV_DIMS, 4, 4), latent.shape
    assert bool(jnp.all(jnp.isfinite(out))) and bool(jnp.all(jnp.isfinite(latent)))

    # numerical check against a pure-JAX reference of the same forward pass
    ref_out, ref_latent = recon_net_forward_ref(params, x, NUM_CONV)
    assert jnp.allclose(out, ref_out, atol=2e-3, rtol=2e-3), \
        float(jnp.max(jnp.abs(out - ref_out)))
    assert jnp.allclose(latent, ref_latent, atol=2e-3, rtol=2e-3), \
        float(jnp.max(jnp.abs(latent - ref_latent)))

    print("KERNEL_OK")
</pallas_src>

<mosaic_0001>
module attributes {stable_mosaic.version = 11 : i64} {
  func.func @kernel(%arg0: i32, %arg1: memref<1x1x900xf32, #tpu.memory_space<vmem>>, %arg2: memref<8x9xf32, #tpu.memory_space<vmem>>, %arg3: memref<8x1xf32, #tpu.memory_space<vmem>>, %arg4: memref<8x72xf32, #tpu.memory_space<vmem>>, %arg5: memref<8x1xf32, #tpu.memory_space<vmem>>, %arg6: memref<8x72xf32, #tpu.memory_space<vmem>>, %arg7: memref<8x1xf32, #tpu.memory_space<vmem>>, %arg8: memref<8x72xf32, #tpu.memory_space<vmem>>, %arg9: memref<8x1xf32, #tpu.memory_space<vmem>>, %arg10: memref<8x72xf32, #tpu.memory_space<vmem>>, %arg11: memref<8x1xf32, #tpu.memory_space<vmem>>, %arg12: memref<8x72xf32, #tpu.memory_space<vmem>>, %arg13: memref<8x1xf32, #tpu.memory_space<vmem>>, %arg14: memref<8x72xf32, #tpu.memory_space<vmem>>, %arg15: memref<8x1xf32, #tpu.memory_space<vmem>>, %arg16: memref<81x16xf32, #tpu.memory_space<vmem>>, %arg17: memref<900x256xf32, #tpu.memory_space<vmem>>, %arg18: memref<256x81xf32, #tpu.memory_space<vmem>>, %arg19: memref<16x100xf32, #tpu.memory_space<vmem>>, %arg20: memref<100x256xf32, #tpu.memory_space<vmem>>, %arg21: memref<256x900xf32, #tpu.memory_space<vmem>>, %arg22: memref<1x900xf32, #tpu.memory_space<vmem>>, %arg23: memref<1x8x900xf32, #tpu.memory_space<vmem>>, %arg24: memref<1x8x16xf32, #tpu.memory_space<vmem>>, %arg25: memref<8x964xf32, #tpu.memory_space<vmem>>, %arg26: memref<72x900xf32, #tpu.memory_space<vmem>>) attributes {dimension_semantics = [#tpu.dimension_semantics<parallel>], iteration_bounds = array<i64: 2>, scalar_prefetch = 0 : i64, scratch_operands = 2 : i64, tpu.core_type = #tpu.core_type<tc>, window_params = [{transform_indices = @transform_0, window_bounds = array<i64: 1, 1, 900>}, {pipeline_mode = #tpu.pipeline_mode<synchronous>, transform_indices = @transform_1, window_bounds = array<i64: 8, 9>}, {pipeline_mode = #tpu.pipeline_mode<synchronous>, transform_indices = @transform_2, window_bounds = array<i64: 8, 1>}, {pipeline_mode = #tpu.pipeline_mode<synchronous>, transform_indices = @transform_3, window_bounds = array<i64: 8, 72>}, {pipeline_mode = #tpu.pipeline_mode<synchronous>, transform_indices = @transform_4, window_bounds = array<i64: 8, 1>}, {pipeline_mode = #tpu.pipeline_mode<synchronous>, transform_indices = @transform_5, window_bounds = array<i64: 8, 72>}, {pipeline_mode = #tpu.pipeline_mode<synchronous>, transform_indices = @transform_6, window_bounds = array<i64: 8, 1>}, {pipeline_mode = #tpu.pipeline_mode<synchronous>, transform_indices = @transform_7, window_bounds = array<i64: 8, 72>}, {pipeline_mode = #tpu.pipeline_mode<synchronous>, transform_indices = @transform_8, window_bounds = array<i64: 8, 1>}, {pipeline_mode = #tpu.pipeline_mode<synchronous>, transform_indices = @transform_9, window_bounds = array<i64: 8, 72>}, {pipeline_mode = #tpu.pipeline_mode<synchronous>, transform_indices = @transform_10, window_bounds = array<i64: 8, 1>}, {pipeline_mode = #tpu.pipeline_mode<synchronous>, transform_indices = @transform_11, window_bounds = array<i64: 8, 72>}, {pipeline_mode = #tpu.pipeline_mode<synchronous>, transform_indices = @transform_12, window_bounds = array<i64: 8, 1>}, {pipeline_mode = #tpu.pipeline_mode<synchronous>, transform_indices = @transform_13, window_bounds = array<i64: 8, 72>}, {pipeline_mode = #tpu.pipeline_mode<synchronous>, transform_indices = @transform_14, window_bounds = array<i64: 8, 1>}, {pipeline_mode = #tpu.pipeline_mode<synchronous>, transform_indices = @transform_15, window_bounds = array<i64: 81, 16>}, {pipeline_mode = #tpu.pipeline_mode<synchronous>, transform_indices = @transform_16, window_bounds = array<i64: 900, 256>}, {pipeline_mode = #tpu.pipeline_mode<synchronous>, transform_indices = @transform_17, window_bounds = array<i64: 256, 81>}, {pipeline_mode = #tpu.pipeline_mode<synchronous>, transform_indices = @transform_18, window_bounds = array<i64: 16, 100>}, {pipeline_mode = #tpu.pipeline_mode<synchronous>, transform_indices = @transform_19, window_bounds = array<i64: 100, 256>}, {pipeline_mode = #tpu.pipeline_mode<synchronous>, transform_indices = @transform_20, window_bounds = array<i64: 256, 900>}, {pipeline_mode = #tpu.pipeline_mode<synchronous>, transform_indices = @transform_21, window_bounds = array<i64: 1, 900>}, {transform_indices = @transform_22, window_bounds = array<i64: 1, 8, 900>}, {transform_indices = @transform_23, window_bounds = array<i64: 1, 8, 16>}]} {
    %c0 = arith.constant 0 : index
    %c0_0 = arith.constant 0 : index
    %c0_1 = arith.constant 0 : index
    %0 = vector.load %arg1[%c0, %c0_0, %c0_1] : memref<1x1x900xf32, #tpu.memory_space<vmem>>, vector<1x1x900xf32>
    %1 = vector.shape_cast %0 : vector<1x1x900xf32> to vector<1x900xf32>
    %cst = arith.constant 0.000000e+00 : f32
    %2 = vector.broadcast %cst : f32 to vector<8x964xf32>
    %c0_2 = arith.constant 0 : index
    %c0_3 = arith.constant 0 : index
    %3 = vector.load %arg25[%c0_2, %c0_3] : memref<8x964xf32, #tpu.memory_space<vmem>>, vector<8x964xf32>
    tpu.vector_store %arg25[%c0_2, %c0_3], %2 {strides = array<i32>} : memref<8x964xf32, #tpu.memory_space<vmem>>, vector<8x964xf32>,
    %c0_4 = arith.constant 0 : index
    %c32 = arith.constant 32 : index
    %4 = vector.load %arg25[%c0_4, %c32] : memref<8x964xf32, #tpu.memory_space<vmem>>, vector<1x900xf32>
    tpu.vector_store %arg25[%c0_4, %c32], %1 {strides = array<i32>} : memref<8x964xf32, #tpu.memory_space<vmem>>, vector<1x900xf32>,
    %c0_5 = arith.constant 0 : index
    %c1 = arith.constant 1 : index
    %5 = vector.load %arg25[%c0_5, %c1] : memref<8x964xf32, #tpu.memory_space<vmem>>, vector<1x900xf32>
    %c0_6 = arith.constant 0 : index
    %c0_7 = arith.constant 0 : index
    %6 = vector.load %arg26[%c0_6, %c0_7] : memref<72x900xf32, #tpu.memory_space<vmem>>, vector<1x900xf32>
    tpu.vector_store %arg26[%c0_6, %c0_7], %5 {strides = array<i32>} : memref<72x900xf32, #tpu.memory_space<vmem>>, vector<1x900xf32>,
    %c0_8 = arith.constant 0 : index
    %c2 = arith.constant 2 : index
    %7 = vector.load %arg25[%c0_8, %c2] : memref<8x964xf32, #tpu.memory_space<vmem>>, vector<1x900xf32>
    %c1_9 = arith.constant 1 : index
    %c0_10 = arith.constant 0 : index
    %8 = vector.load %arg26[%c1_9, %c0_10] : memref<72x900xf32, #tpu.memory_space<vmem>>, vector<1x900xf32>
    tpu.vector_store %arg26[%c1_9, %c0_10], %7 {strides = array<i32>} : memref<72x900xf32, #tpu.memory_space<vmem>>, vector<1x900xf32>,
    %c0_11 = arith.constant 0 : index
    %c3 = arith.constant 3 : index
    %9 = vector.load %arg25[%c0_11, %c3] : memref<8x964xf32, #tpu.memory_space<vmem>>, vector<1x900xf32>
    %c2_12 = arith.constant 2 : index
    %c0_13 = arith.constant 0 : index
    %10 = vector.load %arg26[%c2_12, %c0_13] : memref<72x900xf32, #tpu.memory_space<vmem>>, vector<1x900xf32>
    tpu.vector_store %arg26[%c2_12, %c0_13], %9 {strides = array<i32>} : memref<72x900xf32, #tpu.memory_space<vmem>>, vector<1x900xf32>,
    %c0_14 = arith.constant 0 : index
    %c31 = arith.constant 31 : index
    %11 = vector.load %arg25[%c0_14, %c31] : memref<8x964xf32, #tpu.memory_space<vmem>>, vector<1x900xf32>
    %c3_15 = arith.constant 3 : index
    %c0_16 = arith.constant 0 : index
    %12 = vector.load %arg26[%c3_15, %c0_16] : memref<72x900xf32, #tpu.memory_space<vmem>>, vector<1x900xf32>
    tpu.vector_store %arg26[%c3_15, %c0_16], %11 {strides = array<i32>} : memref<72x900xf32, #tpu.memory_space<vmem>>, vector<1x900xf32>,
    %c0_17 = arith.constant 0 : index
    %c32_18 = arith.constant 32 : index
    %13 = vector.load %arg25[%c0_17, %c32_18] : memref<8x964xf32, #tpu.memory_space<vmem>>, vector<1x900xf32>
    %c4 = arith.constant 4 : index
    %c0_19 = arith.constant 0 : index
    %14 = vector.load %arg26[%c4, %c0_19] : memref<72x900xf32, #tpu.memory_space<vmem>>, vector<1x900xf32>
    tpu.vector_store %arg26[%c4, %c0_19], %13 {strides = array<i32>} : memref<72x900xf32, #tpu.memory_space<vmem>>, vector<1x900xf32>,
    %c0_20 = arith.constant 0 : index
    %c33 = arith.constant 33 : index
    %15 = vector.load %arg25[%c0_20, %c33] : memref<8x964xf32, #tpu.memory_space<vmem>>, vector<1x900xf32>
    %c5 = arith.constant 5 : index
    %c0_21 = arith.constant 0 : index
    %16 = vector.load %arg26[%c5, %c0_21] : memref<72x900xf32, #tpu.memory_space<vmem>>, vector<1x900xf32>
    tpu.vector_store %arg26[%c5, %c0_21], %15 {strides = array<i32>} : memref<72x900xf32, #tpu.memory_space<vmem>>, vector<1x900xf32>,
    %c0_22 = arith.constant 0 : index
    %c61 = arith.constant 61 : index
    %17 = vector.load %arg25[%c0_22, %c61] : memref<8x964xf32, #tpu.memory_space<vmem>>, vector<1x900xf32>
    %c6 = arith.constant 6 : index
    %c0_23 = arith.constant 0 : index
    %18 = vector.load %arg26[%c6, %c0_23] : memref<72x900xf32, #tpu.memory_space<vmem>>, vector<1x900xf32>
    tpu.vector_store %arg26[%c6, %c0_23], %17 {strides = array<i32>} : memref<72x900xf32, #tpu.memory_space<vmem>>, vector<1x900xf32>,
    %c0_24 = arith.constant 0 : index
    %c62 = arith.constant 62 : index
    %19 = vector.load %arg25[%c0_24, %c62] : memref<8x964xf32, #tpu.memory_space<vmem>>, vector<1x900xf32>
    %c7 = arith.constant 7 : index
    %c0_25 = arith.constant 0 : index
    %20 = vector.load %arg26[%c7, %c0_25] : memref<72x900xf32, #tpu.memory_space<vmem>>, vector<1x900xf32>
    tpu.vector_store %arg26[%c7, %c0_25], %19 {strides = array<i32>} : memref<72x900xf32, #tpu.memory_space<vmem>>, vector<1x900xf32>,
    %c0_26 = arith.constant 0 : index
    %c63 = arith.constant 63 : index
    %21 = vector.load %arg25[%c0_26, %c63] : memref<8x964xf32, #tpu.memory_space<vmem>>, vector<1x900xf32>
    %c8 = arith.constant 8 : index
    %c0_27 = arith.constant 0 : index
    %22 = vector.load %arg26[%c8, %c0_27] : memref<72x900xf32, #tpu.memory_space<vmem>>, vector<1x900xf32>
    tpu.vector_store %arg26[%c8, %c0_27], %21 {strides = array<i32>} : memref<72x900xf32, #tpu.memory_space<vmem>>, vector<1x900xf32>,
    %c0_28 = arith.constant 0 : index
    %c0_29 = arith.constant 0 : index
    %23 = vector.load %arg2[%c0_28, %c0_29] : memref<8x9xf32, #tpu.memory_space<vmem>>, vector<8x9xf32>
    %c0_30 = arith.constant 0 : index
    %c0_31 = arith.constant 0 : index
    %24 = vector.load %arg26[%c0_30, %c0_31] : memref<72x900xf32, #tpu.memory_space<vmem>>, vector<9x900xf32>
    %cst_32 = arith.constant dense<0.000000e+00> : vector<8x900xf32>
    %25 = tpu.matmul %23, %24, %cst_32 {dimension_numbers = #tpu.dot_dimension_numbers<[1], [0], [0], [1], [0, 0, 1, 1], [], []>} : vector<8x9xf32>, vector<9x900xf32>, vector<8x900xf32> -> vector<8x900xf32>
    %c0_33 = arith.constant 0 : index
    %c0_34 = arith.constant 0 : index
    %26 = vector.load %arg3[%c0_33, %c0_34] : memref<8x1xf32, #tpu.memory_space<vmem>>, vector<8x1xf32>
    %27 = vector.broadcast %26 : vector<8x1xf32> to vector<8x900xf32>
    %28 = arith.addf %25, %27 : vector<8x900xf32>
    %cst_35 = arith.constant 0.000000e+00 : f32
    %29 = vector.broadcast %cst_35 : f32 to vector<8x900xf32>
    %30 = arith.maximumf %28, %29 : vector<8x900xf32>
    %c0_36 = arith.constant 0 : index
    %c0_37 = arith.constant 0 : index
    %31 = vector.load %arg17[%c0_36, %c0_37] : memref<900x256xf32, #tpu.memory_space<vmem>>, vector<900x256xf32>
    %cst_38 = arith.constant dense<0.000000e+00> : vector<8x256xf32>
    %32 = tpu.matmul %30, %31, %cst_38 {dimension_numbers = #tpu.dot_dimension_numbers<[1], [0], [0], [1], [0, 0, 1, 1], [], []>} : vector<8x900xf32>, vector<900x256xf32>, vector<8x256xf32> -> vector<8x256xf32>
    %cst_39 = arith.constant 0.000000e+00 : f32
    %33 = vector.broadcast %cst_39 : f32 to vector<8x964xf32>
    %c0_40 = arith.constant 0 : index
    %c0_41 = arith.constant 0 : index
    %34 = vector.load %arg25[%c0_40, %c0_41] : memref<8x964xf32, #tpu.memory_space<vmem>>, vector<8x964xf32>
    tpu.vector_store %arg25[%c0_40, %c0_41], %33 {strides = array<i32>} : memref<8x964xf32, #tpu.memory_space<vmem>>, vector<8x964xf32>,
    %c0_42 = arith.constant 0 : index
    %c32_43 = arith.constant 32 : index
    %35 = vector.load %arg25[%c0_42, %c32_43] : memref<8x964xf32, #tpu.memory_space<vmem>>, vector<8x256xf32>
    tpu.vector_store %arg25[%c0_42, %c32_43], %32 {strides = array<i32>} : memref<8x964xf32, #tpu.memory_space<vmem>>, vector<8x256xf32>,
    %c0_44 = arith.constant 0 : index
    %c15 = arith.constant 15 : index
    %36 = vector.load %arg25[%c0_44, %c15] : memref<8x964xf32, #tpu.memory_space<vmem>>, vector<8x256xf32>
    %c0_45 = arith.constant 0 : index
    %c0_46 = arith.constant 0 : index
    %37 = vector.load %arg26[%c0_45, %c0_46] : memref<72x900xf32, #tpu.memory_space<vmem>>, vector<8x256xf32>
    tpu.vector_store %arg26[%c0_45, %c0_46], %36 {strides = array<i32>} : memref<72x900xf32, #tpu.memory_space<vmem>>, vector<8x256xf32>,
    %c0_47 = arith.constant 0 : index
    %c16 = arith.constant 16 : index
    %38 = vector.load %arg25[%c0_47, %c16] : memref<8x964xf32, #tpu.memory_space<vmem>>, vector<8x256xf32>
    %c8_48 = arith.constant 8 : index
    %c0_49 = arith.constant 0 : index
    %39 = vector.load %arg26[%c8_48, %c0_49] : memref<72x900xf32, #tpu.memory_space<vmem>>, vector<8x256xf32>
    tpu.vector_store %arg26[%c8_48, %c0_49], %38 {strides = array<i32>} : memref<72x900xf32, #tpu.memory_space<vmem>>, vector<8x256xf32>,
    %c0_50 = arith.constant 0 : index
    %c17 = arith.constant 17 : index
    %40 = vector.load %arg25[%c0_50, %c17] : memref<8x964xf32, #tpu.memory_space<vmem>>, vector<8x256xf32>
    %c16_51 = arith.constant 16 : index
    %c0_52 = arith.constant 0 : index
    %41 = vector.load %arg26[%c16_51, %c0_52] : memref<72x900xf32, #tpu.memory_space<vmem>>, vector<8x256xf32>
    tpu.vector_store %arg26[%c16_51, %c0_52], %40 {strides = array<i32>} : memref<72x900xf32, #tpu.memory_space<vmem>>, vector<8x256xf32>,
    %c0_53 = arith.constant 0 : index
    %c31_54 = arith.constant 31 : index
    %42 = vector.load %arg25[%c0_53, %c31_54] : memref<8x964xf32, #tpu.memory_space<vmem>>, vector<8x256xf32>
    %c24 = arith.constant 24 : index
    %c0_55 = arith.constant 0 : index
    %43 = vector.load %arg26[%c24, %c0_55] : memref<72x900xf32, #tpu.memory_space<vmem>>, vector<8x256xf32>
    tpu.vector_store %arg26[%c24, %c0_55], %42 {strides = array<i32>} : memref<72x900xf32, #tpu.memory_space<vmem>>, vector<8x256xf32>,
    %c0_56 = arith.constant 0 : index
    %c32_57 = arith.constant 32 : index
    %44 = vector.load %arg25[%c0_56, %c32_57] : memref<8x964xf32, #tpu.memory_space<vmem>>, vector<8x256xf32>
    %c32_58 = arith.constant 32 : index
    %c0_59 = arith.constant 0 : index
    %45 = vector.load %arg26[%c32_58, %c0_59] : memref<72x900xf32, #tpu.memory_space<vmem>>, vector<8x256xf32>
    tpu.vector_store %arg26[%c32_58, %c0_59], %44 {strides = array<i32>} : memref<72x900xf32, #tpu.memory_space<vmem>>, vector<8x256xf32>,
    %c0_60 = arith.constant 0 : index
    %c33_61 = arith.constant 33 : index
    %46 = vector.load %arg25[%c0_60, %c33_61] : memref<8x964xf32, #tpu.memory_space<vmem>>, vector<8x256xf32>
    %c40 = arith.constant 40 : index
    %c0_62 = arith.constant 0 : index
    %47 = vector.load %arg26[%c40, %c0_62] : memref<72x900xf32, #tpu.memory_space<vmem>>, vector<8x256xf32>
    tpu.vector_store %arg26[%c40, %c0_62], %46 {strides = array<i32>} : memref<72x900xf32, #tpu.memory_space<vmem>>, vector<8x256xf32>,
    %c0_63 = arith.constant 0 : index
    %c47 = arith.constant 47 : index
    %48 = vector.load %arg25[%c0_63, %c47] : memref<8x964xf32, #tpu.memory_space<vmem>>, vector<8x256xf32>
    %c48 = arith.constant 48 : index
    %c0_64 = arith.constant 0 : index
    %49 = vector.load %arg26[%c48, %c0_64] : memref<72x900xf32, #tpu.memory_space<vmem>>, vector<8x256xf32>
    tpu.vector_store %arg26[%c48, %c0_64], %48 {strides = array<i32>} : memref<72x900xf32, #tpu.memory_space<vmem>>, vector<8x256xf32>,
    %c0_65 = arith.constant 0 : index
    %c48_66 = arith.constant 48 : index
    %50 = vector.load %arg25[%c0_65, %c48_66] : memref<8x964xf32, #tpu.memory_space<vmem>>, vector<8x256xf32>
    %c56 = arith.constant 56 : index
    %c0_67 = arith.constant 0 : index
    %51 = vector.load %arg26[%c56, %c0_67] : memref<72x900xf32, #tpu.memory_space<vmem>>, vector<8x256xf32>
    tpu.vector_store %arg26[%c56, %c0_67], %50 {strides = array<i32>} : memref<72x900xf32, #tpu.memory_space<vmem>>, vector<8x256xf32>,
    %c0_68 = arith.constant 0 : index
    %c49 = arith.constant 49 : index
    %52 = vector.load %arg25[%c0_68, %c49] : memref<8x964xf32, #tpu.memory_space<vmem>>, vector<8x256xf32>
    %c64 = arith.constant 64 : index
    %c0_69 = arith.constant 0 : index
    %53 = vector.load %arg26[%c64, %c0_69] : memref<72x900xf32, #tpu.memory_space<vmem>>, vector<8x256xf32>
    tpu.vector_store %arg26[%c64, %c0_69], %52 {strides = array<i32>} : memref<72x900xf32, #tpu.memory_space<vmem>>, vector<8x256xf32>,
    %c0_70 = arith.constant 0 : index
    %c0_71 = arith.constant 0 : index
    %54 = vector.load %arg4[%c0_70, %c0_71] : memref<8x72xf32, #tpu.memory_space<vmem>>, vector<8x72xf32>
    %c0_72 = arith.constant 0 : index
    %c0_73 = arith.constant 0 : index
    %55 = vector.load %arg26[%c0_72, %c0_73] : memref<72x900xf32, #tpu.memory_space<vmem>>, vector<72x256xf32>
    %cst_74 = arith.constant dense<0.000000e+00> : vector<8x256xf32>
    %56 = tpu.matmul %54, %55, %cst_74 {dimension_numbers = #tpu.dot_dimension_numbers<[1], [0], [0], [1], [0, 0, 1, 1], [], []>} : vector<8x72xf32>, vector<72x256xf32>, vector<8x256xf32> -> vector<8x256xf32>
    %c0_75 = arith.constant 0 : index
    %c0_76 = arith.constant 0 : index
    %57 = vector.load %arg5[%c0_75, %c0_76] : memref<8x1xf32, #tpu.memory_space<vmem>>, vector<8x1xf32>
    %58 = vector.broadcast %57 : vector<8x1xf32> to vector<8x256xf32>
    %59 = arith.addf %56, %58 : vector<8x256xf32>
    %cst_77 = arith.constant 0.000000e+00 : f32
    %60 = vector.broadcast %cst_77 : f32 to vector<8x256xf32>
    %61 = arith.maximumf %59, %60 : vector<8x256xf32>
    %c0_78 = arith.constant 0 : index
    %c0_79 = arith.constant 0 : index
    %62 = vector.load %arg18[%c0_78, %c0_79] : memref<256x81xf32, #tpu.memory_space<vmem>>, vector<256x81xf32>
    %cst_80 = arith.constant dense<0.000000e+00> : vector<8x81xf32>
    %63 = tpu.matmul %61, %62, %cst_80 {dimension_numbers = #tpu.dot_dimension_numbers<[1], [0], [0], [1], [0, 0, 1, 1], [], []>} : vector<8x256xf32>, vector<256x81xf32>, vector<8x81xf32> -> vector<8x81xf32>
    %cst_81 = arith.constant 0.000000e+00 : f32
    %64 = vector.broadcast %cst_81 : f32 to vector<8x964xf32>
    %c0_82 = arith.constant 0 : index
    %c0_83 = arith.constant 0 : index
    %65 = vector.load %arg25[%c0_82, %c0_83] : memref<8x964xf32, #tpu.memory_space<vmem>>, vector<8x964xf32>
    tpu.vector_store %arg25[%c0_82, %c0_83], %64 {strides = array<i32>} : memref<8x964xf32, #tpu.memory_space<vmem>>, vector<8x964xf32>,
    %c0_84 = arith.constant 0 : index
    %c32_85 = arith.constant 32 : index
    %66 = vector.load %arg25[%c0_84, %c32_85] : memref<8x964xf32, #tpu.memory_space<vmem>>, vector<8x81xf32>
    tpu.vector_store %arg25[%c0_84, %c32_85], %63 {strides = array<i32>} : memref<8x964xf32, #tpu.memory_space<vmem>>, vector<8x81xf32>,
    %c0_86 = arith.constant 0 : index
    %c22 = arith.constant 22 : index
    %67 = vector.load %arg25[%c0_86, %c22] : memref<8x964xf32, #tpu.memory_space<vmem>>, vector<8x81xf32>
    %c0_87 = arith.constant 0 : index
    %c0_88 = arith.constant 0 : index
    %68 = vector.load %arg26[%c0_87, %c0_88] : memref<72x900xf32, #tpu.memory_space<vmem>>, vector<8x81xf32>
    tpu.vector_store %arg26[%c0_87, %c0_88], %67 {strides = array<i32>} : memref<72x900xf32, #tpu.memory_space<vmem>>, vector<8x81xf32>,
    %c0_89 = arith.constant 0 : index
    %c23 = arith.constant 23 : index
    %69 = vector.load %arg25[%c0_89, %c23] : memref<8x964xf32, #tpu.memory_space<vmem>>, vector<8x81xf32>
    %c8_90 = arith.constant 8 : index
    %c0_91 = arith.constant 0 : index
    %70 = vector.load %arg26[%c8_90, %c0_91] : memref<72x900xf32, #tpu.memory_space<vmem>>, vector<8x81xf32>
    tpu.vector_store %arg26[%c8_90, %c0_91], %69 {strides = array<i32>} : memref<72x900xf32, #tpu.memory_space<vmem>>, vector<8x81xf32>,
    %c0_92 = arith.constant 0 : index
    %c24_93 = arith.constant 24 : index
    %71 = vector.load %arg25[%c0_92, %c24_93] : memref<8x964xf32, #tpu.memory_space<vmem>>, vector<8x81xf32>
    %c16_94 = arith.constant 16 : index
    %c0_95 = arith.constant 0 : index
    %72 = vector.load %arg26[%c16_94, %c0_95] : memref<72x900xf32, #tpu.memory_space<vmem>>, vector<8x81xf32>
    tpu.vector_store %arg26[%c16_94, %c0_95], %71 {strides = array<i32>} : memref<72x900xf32, #tpu.memory_space<vmem>>, vector<8x81xf32>,
    %c0_96 = arith.constant 0 : index
    %c31_97 = arith.constant 31 : index
    %73 = vector.load %arg25[%c0_96, %c31_97] : memref<8x964xf32, #tpu.memory_space<vmem>>, vector<8x81xf32>
    %c24_98 = arith.constant 24 : index
    %c0_99 = arith.constant 0 : index
    %74 = vector.load %arg26[%c24_98, %c0_99] : memref<72x900xf32, #tpu.memory_space<vmem>>, vector<8x81xf32>
    tpu.vector_store %arg26[%c24_98, %c0_99], %73 {strides = array<i32>} : memref<72x900xf32, #tpu.memory_space<vmem>>, vector<8x81xf32>,
    %c0_100 = arith.constant 0 : index
    %c32_101 = arith.constant 32 : index
    %75 = vector.load %arg25[%c0_100, %c32_101] : memref<8x964xf32, #tpu.memory_space<vmem>>, vector<8x81xf32>
    %c32_102 = arith.constant 32 : index
    %c0_103 = arith.constant 0 : index
    %76 = vector.load %arg26[%c32_102, %c0_103] : memref<72x900xf32, #tpu.memory_space<vmem>>, vector<8x81xf32>
    tpu.vector_store %arg26[%c32_102, %c0_103], %75 {strides = array<i32>} : memref<72x900xf32, #tpu.memory_space<vmem>>, vector<8x81xf32>,
    %c0_104 = arith.constant 0 : index
    %c33_105 = arith.constant 33 : index
    %77 = vector.load %arg25[%c0_104, %c33_105] : memref<8x964xf32, #tpu.memory_space<vmem>>, vector<8x81xf32>
    %c40_106 = arith.constant 40 : index
    %c0_107 = arith.constant 0 : index
    %78 = vector.load %arg26[%c40_106, %c0_107] : memref<72x900xf32, #tpu.memory_space<vmem>>, vector<8x81xf32>
    tpu.vector_store %arg26[%c40_106, %c0_107], %77 {strides = array<i32>} : memref<72x900xf32, #tpu.memory_space<vmem>>, vector<8x81xf32>,
    %c0_108 = arith.constant 0 : index
    %c40_109 = arith.constant 40 : index
    %79 = vector.load %arg25[%c0_108, %c40_109] : memref<8x964xf32, #tpu.memory_space<vmem>>, vector<8x81xf32>
    %c48_110 = arith.constant 48 : index
    %c0_111 = arith.constant 0 : index
    %80 = vector.load %arg26[%c48_110, %c0_111] : memref<72x900xf32, #tpu.memory_space<vmem>>, vector<8x81xf32>
    tpu.vector_store %arg26[%c48_110, %c0_111], %79 {strides = array<i32>} : memref<72x900xf32, #tpu.memory_space<vmem>>, vector<8x81xf32>,
    %c0_112 = arith.constant 0 : index
    %c41 = arith.constant 41 : index
    %81 = vector.load %arg25[%c0_112, %c41] : memref<8x964xf32, #tpu.memory_space<vmem>>, vector<8x81xf32>
    %c56_113 = arith.constant 56 : index
    %c0_114 = arith.constant 0 : index
    %82 = vector.load %arg26[%c56_113, %c0_114] : memref<72x900xf32, #tpu.memory_space<vmem>>, vector<8x81xf32>
    tpu.vector_store %arg26[%c56_113, %c0_114], %81 {strides = array<i32>} : memref<72x900xf32, #tpu.memory_space<vmem>>, vector<8x81xf32>,
    %c0_115 = arith.constant 0 : index
    %c42 = arith.constant 42 : index
    %83 = vector.load %arg25[%c0_115, %c42] : memref<8x964xf32, #tpu.memory_space<vmem>>, vector<8x81xf32>
    %c64_116 = arith.constant 64 : index
    %c0_117 = arith.constant 0 : index
    %84 = vector.load %arg26[%c64_116, %c0_117] : memref<72x900xf32, #tpu.memory_space<vmem>>, vector<8x81xf32>
    tpu.vector_store %arg26[%c64_116, %c0_117], %83 {strides = array<i32>} : memref<72x900xf32, #tpu.memory_space<vmem>>, vector<8x81xf32>,
    %c0_118 = arith.constant 0 : index
    %c0_119 = arith.constant 0 : index
    %85 = vector.load %arg6[%c0_118, %c0_119] : memref<8x72xf32, #tpu.memory_space<vmem>>, vector<8x72xf32>
    %c0_120 = arith.constant 0 : index
    %c0_121 = arith.constant 0 : index
    %86 = vector.load %arg26[%c0_120, %c0_121] : memref<72x900xf32, #tpu.memory_space<vmem>>, vector<72x81xf32>
    %cst_122 = arith.constant dense<0.000000e+00> : vector<8x81xf32>
    %87 = tpu.matmul %85, %86, %cst_122 {dimension_numbers = #tpu.dot_dimension_numbers<[1], [0], [0], [1], [0, 0, 1, 1], [], []>} : vector<8x72xf32>, vector<72x81xf32>, vector<8x81xf32> -> vector<8x81xf32>
    %c0_123 = arith.constant 0 : index
    %c0_124 = arith.constant 0 : index
    %88 = vector.load %arg7[%c0_123, %c0_124] : memref<8x1xf32, #tpu.memory_space<vmem>>, vector<8x1xf32>
    %89 = vector.broadcast %88 : vector<8x1xf32> to vector<8x81xf32>
    %90 = arith.addf %87, %89 : vector<8x81xf32>
    %cst_125 = arith.constant 0.000000e+00 : f32
    %91 = vector.broadcast %cst_125 : f32 to vector<8x81xf32>
    %92 = arith.maximumf %90, %91 : vector<8x81xf32>
    %c0_126 = arith.constant 0 : index
    %c0_127 = arith.constant 0 : index
    %93 = vector.load %arg16[%c0_126, %c0_127] : memref<81x16xf32, #tpu.memory_space<vmem>>, vector<81x16xf32>
    %cst_128 = arith.constant dense<0.000000e+00> : vector<8x16xf32>
    %94 = tpu.matmul %92, %93, %cst_128 {dimension_numbers = #tpu.dot_dimension_numbers<[1], [0], [0], [1], [0, 0, 1, 1], [], []>} : vector<8x81xf32>, vector<81x16xf32>, vector<8x16xf32> -> vector<8x16xf32>
    %c0_129 = arith.constant 0 : index
    %c0_130 = arith.constant 0 : index
    %c0_131 = arith.constant 0 : index
    %95 = vector.load %arg24[%c0_129, %c0_130, %c0_131] : memref<1x8x16xf32, #tpu.memory_space<vmem>>, vector<1x8x16xf32>
    %96 = vector.shape_cast %95 : vector<1x8x16xf32> to vector<8x16xf32>
    %97 = vector.shape_cast %94 : vector<8x16xf32> to vector<1x8x16xf32>
    tpu.vector_store %arg24[%c0_129, %c0_130, %c0_131], %97 {strides = array<i32>} : memref<1x8x16xf32, #tpu.memory_space<vmem>>, vector<1x8x16xf32>,
    %c0_132 = arith.constant 0 : index
    %c0_133 = arith.constant 0 : index
    %98 = vector.load %arg19[%c0_132, %c0_133] : memref<16x100xf32, #tpu.memory_space<vmem>>, vector<16x100xf32>
    %cst_134 = arith.constant dense<0.000000e+00> : vector<8x100xf32>
    %99 = tpu.matmul %94, %98, %cst_134 {dimension_numbers = #tpu.dot_dimension_numbers<[1], [0], [0], [1], [0, 0, 1, 1], [], []>} : vector<8x16xf32>, vector<16x100xf32>, vector<8x100xf32> -> vector<8x100xf32>
    %cst_135 = arith.constant 0.000000e+00 : f32
    %100 = vector.broadcast %cst_135 : f32 to vector<8x964xf32>
    %c0_136 = arith.constant 0 : index
    %c0_137 = arith.constant 0 : index
    %101 = vector.load %arg25[%c0_136, %c0_137] : memref<8x964xf32, #tpu.memory_space<vmem>>, vector<8x964xf32>
    tpu.vector_store %arg25[%c0_136, %c0_137], %100 {strides = array<i32>} : memref<8x964xf32, #tpu.memory_space<vmem>>, vector<8x964xf32>,
    %c0_138 = arith.constant 0 : index
    %c32_139 = arith.constant 32 : index
    %102 = vector.load %arg25[%c0_138, %c32_139] : memref<8x964xf32, #tpu.memory_space<vmem>>, vector<8x100xf32>
    tpu.vector_store %arg25[%c0_138, %c32_139], %99 {strides = array<i32>} : memref<8x964xf32, #tpu.memory_space<vmem>>, vector<8x100xf32>,
    %c0_140 = arith.constant 0 : index
    %c21 = arith.constant 21 : index
    %103 = vector.load %arg25[%c0_140, %c21] : memref<8x964xf32, #tpu.memory_space<vmem>>, vector<8x100xf32>
    %c0_141 = arith.constant 0 : index
    %c0_142 = arith.constant 0 : index
    %104 = vector.load %arg26[%c0_141, %c0_142] : memref<72x900xf32, #tpu.memory_space<vmem>>, vector<8x100xf32>
    tpu.vector_store %arg26[%c0_141, %c0_142], %103 {strides = array<i32>} : memref<72x900xf32, #tpu.memory_space<vmem>>, vector<8x100xf32>,
    %c0_143 = arith.constant 0 : index
    %c22_144 = arith.constant 22 : index
    %105 = vector.load %arg25[%c0_143, %c22_144] : memref<8x964xf32, #tpu.memory_space<vmem>>, vector<8x100xf32>
    %c8_145 = arith.constant 8 : index
    %c0_146 = arith.constant 0 : index
    %106 = vector.load %arg26[%c8_145, %c0_146] : memref<72x900xf32, #tpu.memory_space<vmem>>, vector<8x100xf32>
    tpu.vector_store %arg26[%c8_145, %c0_146], %105 {strides = array<i32>} : memref<72x900xf32, #tpu.memory_space<vmem>>, vector<8x100xf32>,
    %c0_147 = arith.constant 0 : index
    %c23_148 = arith.constant 23 : index
    %107 = vector.load %arg25[%c0_147, %c23_148] : memref<8x964xf32, #tpu.memory_space<vmem>>, vector<8x100xf32>
    %c16_149 = arith.constant 16 : index
    %c0_150 = arith.constant 0 : index
    %108 = vector.load %arg26[%c16_149, %c0_150] : memref<72x900xf32, #tpu.memory_space<vmem>>, vector<8x100xf32>
    tpu.vector_store %arg26[%c16_149, %c0_150], %107 {strides = array<i32>} : memref<72x900xf32, #tpu.memory_space<vmem>>, vector<8x100xf32>,
    %c0_151 = arith.constant 0 : index
    %c31_152 = arith.constant 31 : index
    %109 = vector.load %arg25[%c0_151, %c31_152] : memref<8x964xf32, #tpu.memory_space<vmem>>, vector<8x100xf32>
    %c24_153 = arith.constant 24 : index
    %c0_154 = arith.constant 0 : index
    %110 = vector.load %arg26[%c24_153, %c0_154] : memref<72x900xf32, #tpu.memory_space<vmem>>, vector<8x100xf32>
    tpu.vector_store %arg26[%c24_153, %c0_154], %109 {strides = array<i32>} : memref<72x900xf32, #tpu.memory_space<vmem>>, vector<8x100xf32>,
    %c0_155 = arith.constant 0 : index
    %c32_156 = arith.constant 32 : index
    %111 = vector.load %arg25[%c0_155, %c32_156] : memref<8x964xf32, #tpu.memory_space<vmem>>, vector<8x100xf32>
    %c32_157 = arith.constant 32 : index
    %c0_158 = arith.constant 0 : index
    %112 = vector.load %arg26[%c32_157, %c0_158] : memref<72x900xf32, #tpu.memory_space<vmem>>, vector<8x100xf32>
    tpu.vector_store %arg26[%c32_157, %c0_158], %111 {strides = array<i32>} : memref<72x900xf32, #tpu.memory_space<vmem>>, vector<8x100xf32>,
    %c0_159 = arith.constant 0 : index
    %c33_160 = arith.constant 33 : index
    %113 = vector.load %arg25[%c0_159, %c33_160] : memref<8x964xf32, #tpu.memory_space<vmem>>, vector<8x100xf32>
    %c40_161 = arith.constant 40 : index
    %c0_162 = arith.constant 0 : index
    %114 = vector.load %arg26[%c40_161, %c0_162] : memref<72x900xf32, #tpu.memory_space<vmem>>, vector<8x100xf32>
    tpu.vector_store %arg26[%c40_161, %c0_162], %113 {strides = array<i32>} : memref<72x900xf32, #tpu.memory_space<vmem>>, vector<8x100xf32>,
    %c0_163 = arith.constant 0 : index
    %c41_164 = arith.constant 41 : index
    %115 = vector.load %arg25[%c0_163, %c41_164] : memref<8x964xf32, #tpu.memory_space<vmem>>, vector<8x100xf32>
    %c48_165 = arith.constant 48 : index
    %c0_166 = arith.constant 0 : index
    %116 = vector.load %arg26[%c48_165, %c0_166] : memref<72x900xf32, #tpu.memory_space<vmem>>, vector<8x100xf32>
    tpu.vector_store %arg26[%c48_165, %c0_166], %115 {strides = array<i32>} : memref<72x900xf32, #tpu.memory_space<vmem>>, vector<8x100xf32>,
    %c0_167 = arith.constant 0 : index
    %c42_168 = arith.constant 42 : index
    %117 = vector.load %arg25[%c0_167, %c42_168] : memref<8x964xf32, #tpu.memory_space<vmem>>, vector<8x100xf32>
    %c56_169 = arith.constant 56 : index
    %c0_170 = arith.constant 0 : index
    %118 = vector.load %arg26[%c56_169, %c0_170] : memref<72x900xf32, #tpu.memory_space<vmem>>, vector<8x100xf32>
    tpu.vector_store %arg26[%c56_169, %c0_170], %117 {strides = array<i32>} : memref<72x900xf32, #tpu.memory_space<vmem>>, vector<8x100xf32>,
    %c0_171 = arith.constant 0 : index
    %c43 = arith.constant 43 : index
    %119 = vector.load %arg25[%c0_171, %c43] : memref<8x964xf32, #tpu.memory_space<vmem>>, vector<8x100xf32>
    %c64_172 = arith.constant 64 : index
    %c0_173 = arith.constant 0 : index
    %120 = vector.load %arg26[%c64_172, %c0_173] : memref<72x900xf32, #tpu.memory_space<vmem>>, vector<8x100xf32>
    tpu.vector_store %arg26[%c64_172, %c0_173], %119 {strides = array<i32>} : memref<72x900xf32, #tpu.memory_space<vmem>>, vector<8x100xf32>,
    %c0_174 = arith.constant 0 : index
    %c0_175 = arith.constant 0 : index
    %121 = vector.load %arg8[%c0_174, %c0_175] : memref<8x72xf32, #tpu.memory_space<vmem>>, vector<8x72xf32>
    %c0_176 = arith.constant 0 : index
    %c0_177 = arith.constant 0 : index
    %122 = vector.load %arg26[%c0_176, %c0_177] : memref<72x900xf32, #tpu.memory_space<vmem>>, vector<72x100xf32>
    %cst_178 = arith.constant dense<0.000000e+00> : vector<8x100xf32>
    %123 = tpu.matmul %121, %122, %cst_178 {dimension_numbers = #tpu.dot_dimension_numbers<[1], [0], [0], [1], [0, 0, 1, 1], [], []>} : vector<8x72xf32>, vector<72x100xf32>, vector<8x100xf32> -> vector<8x100xf32>
    %c0_179 = arith.constant 0 : index
    %c0_180 = arith.constant 0 : index
    %124 = vector.load %arg9[%c0_179, %c0_180] : memref<8x1xf32, #tpu.memory_space<vmem>>, vector<8x1xf32>
    %125 = vector.broadcast %124 : vector<8x1xf32> to vector<8x100xf32>
    %126 = arith.addf %123, %125 : vector<8x100xf32>
    %cst_181 = arith.constant 0.000000e+00 : f32
    %127 = vector.broadcast %cst_181 : f32 to vector<8x100xf32>
    %128 = arith.maximumf %126, %127 : vector<8x100xf32>
    %c0_182 = arith.constant 0 : index
    %c0_183 = arith.constant 0 : index
    %129 = vector.load %arg20[%c0_182, %c0_183] : memref<100x256xf32, #tpu.memory_space<vmem>>, vector<100x256xf32>
    %cst_184 = arith.constant dense<0.000000e+00> : vector<8x256xf32>
    %130 = tpu.matmul %128, %129, %cst_184 {dimension_numbers = #tpu.dot_dimension_numbers<[1], [0], [0], [1], [0, 0, 1, 1], [], []>} : vector<8x100xf32>, vector<100x256xf32>, vector<8x256xf32> -> vector<8x256xf32>
    %cst_185 = arith.constant 0.000000e+00 : f32
    %131 = vector.broadcast %cst_185 : f32 to vector<8x964xf32>
    %c0_186 = arith.constant 0 : index
    %c0_187 = arith.constant 0 : index
    %132 = vector.load %arg25[%c0_186, %c0_187] : memref<8x964xf32, #tpu.memory_space<vmem>>, vector<8x964xf32>
    tpu.vector_store %arg25[%c0_186, %c0_187], %131 {strides = array<i32>} : memref<8x964xf32, #tpu.memory_space<vmem>>, vector<8x964xf32>,
    %c0_188 = arith.constant 0 : index
    %c32_189 = arith.constant 32 : index
    %133 = vector.load %arg25[%c0_188, %c32_189] : memref<8x964xf32, #tpu.memory_space<vmem>>, vector<8x256xf32>
    tpu.vector_store %arg25[%c0_188, %c32_189], %130 {strides = array<i32>} : memref<8x964xf32, #tpu.memory_space<vmem>>, vector<8x256xf32>,
    %c0_190 = arith.constant 0 : index
    %c15_191 = arith.constant 15 : index
    %134 = vector.load %arg25[%c0_190, %c15_191] : memref<8x964xf32, #tpu.memory_space<vmem>>, vector<8x256xf32>
    %c0_192 = arith.constant 0 : index
    %c0_193 = arith.constant 0 : index
    %135 = vector.load %arg26[%c0_192, %c0_193] : memref<72x900xf32, #tpu.memory_space<vmem>>, vector<8x256xf32>
    tpu.vector_store %arg26[%c0_192, %c0_193], %134 {strides = array<i32>} : memref<72x900xf32, #tpu.memory_space<vmem>>, vector<8x256xf32>,
    %c0_194 = arith.constant 0 : index
    %c16_195 = arith.constant 16 : index
    %136 = vector.load %arg25[%c0_194, %c16_195] : memref<8x964xf32, #tpu.memory_space<vmem>>, vector<8x256xf32>
    %c8_196 = arith.constant 8 : index
    %c0_197 = arith.constant 0 : index
    %137 = vector.load %arg26[%c8_196, %c0_197] : memref<72x900xf32, #tpu.memory_space<vmem>>, vector<8x256xf32>
    tpu.vector_store %arg26[%c8_196, %c0_197], %136 {strides = array<i32>} : memref<72x900xf32, #tpu.memory_space<vmem>>, vector<8x256xf32>,
    %c0_198 = arith.constant 0 : index
    %c17_199 = arith.constant 17 : index
    %138 = vector.load %arg25[%c0_198, %c17_199] : memref<8x964xf32, #tpu.memory_space<vmem>>, vector<8x256xf32>
    %c16_200 = arith.constant 16 : index
    %c0_201 = arith.constant 0 : index
    %139 = vector.load %arg26[%c16_200, %c0_201] : memref<72x900xf32, #tpu.memory_space<vmem>>, vector<8x256xf32>
    tpu.vector_store %arg26[%c16_200, %c0_201], %138 {strides = array<i32>} : memref<72x900xf32, #tpu.memory_space<vmem>>, vector<8x256xf32>,
    %c0_202 = arith.constant 0 : index
    %c31_203 = arith.constant 31 : index
    %140 = vector.load %arg25[%c0_202, %c31_203] : memref<8x964xf32, #tpu.memory_space<vmem>>, vector<8x256xf32>
    %c24_204 = arith.constant 24 : index
    %c0_205 = arith.constant 0 : index
    %141 = vector.load %arg26[%c24_204, %c0_205] : memref<72x900xf32, #tpu.memory_space<vmem>>, vector<8x256xf32>
    tpu.vector_store %arg26[%c24_204, %c0_205], %140 {strides = array<i32>} : memref<72x900xf32, #tpu.memory_space<vmem>>, vector<8x256xf32>,
    %c0_206 = arith.constant 0 : index
    %c32_207 = arith.constant 32 : index
    %142 = vector.load %arg25[%c0_206, %c32_207] : memref<8x964xf32, #tpu.memory_space<vmem>>, vector<8x256xf32>
    %c32_208 = arith.constant 32 : index
    %c0_209 = arith.constant 0 : index
    %143 = vector.load %arg26[%c32_208, %c0_209] : memref<72x900xf32, #tpu.memory_space<vmem>>, vector<8x256xf32>
    tpu.vector_store %arg26[%c32_208, %c0_209], %142 {strides = array<i32>} : memref<72x900xf32, #tpu.memory_space<vmem>>, vector<8x256xf32>,
    %c0_210 = arith.constant 0 : index
    %c33_211 = arith.constant 33 : index
    %144 = vector.load %arg25[%c0_210, %c33_211] : memref<8x964xf32, #tpu.memory_space<vmem>>, vector<8x256xf32>
    %c40_212 = arith.constant 40 : index
    %c0_213 = arith.constant 0 : index
    %145 = vector.load %arg26[%c40_212, %c0_213] : memref<72x900xf32, #tpu.memory_space<vmem>>, vector<8x256xf32>
    tpu.vector_store %arg26[%c40_212, %c0_213], %144 {strides = array<i32>} : memref<72x900xf32, #tpu.memory_space<vmem>>, vector<8x256xf32>,
    %c0_214 = arith.constant 0 : index
    %c47_215 = arith.constant 47 : index
    %146 = vector.load %arg25[%c0_214, %c47_215] : memref<8x964xf32, #tpu.memory_space<vmem>>, vector<8x256xf32>
    %c48_216 = arith.constant 48 : index
    %c0_217 = arith.constant 0 : index
    %147 = vector.load %arg26[%c48_216, %c0_217] : memref<72x900xf32, #tpu.memory_space<vmem>>, vector<8x256xf32>
    tpu.vector_store %arg26[%c48_216, %c0_217], %146 {strides = array<i32>} : memref<72x900xf32, #tpu.memory_space<vmem>>, vector<8x256xf32>,
    %c0_218 = arith.constant 0 : index
    %c48_219 = arith.constant 48 : index
    %148 = vector.load %arg25[%c0_218, %c48_219] : memref<8x964xf32, #tpu.memory_space<vmem>>, vector<8x256xf32>
    %c56_220 = arith.constant 56 : index
    %c0_221 = arith.constant 0 : index
    %149 = vector.load %arg26[%c56_220, %c0_221] : memref<72x900xf32, #tpu.memory_space<vmem>>, vector<8x256xf32>
    tpu.vector_store %arg26[%c56_220, %c0_221], %148 {strides = array<i32>} : memref<72x900xf32, #tpu.memory_space<vmem>>, vector<8x256xf32>,
    %c0_222 = arith.constant 0 : index
    %c49_223 = arith.constant 49 : index
    %150 = vector.load %arg25[%c0_222, %c49_223] : memref<8x964xf32, #tpu.memory_space<vmem>>, vector<8x256xf32>
    %c64_224 = arith.constant 64 : index
    %c0_225 = arith.constant 0 : index
    %151 = vector.load %arg26[%c64_224, %c0_225] : memref<72x900xf32, #tpu.memory_space<vmem>>, vector<8x256xf32>
    tpu.vector_store %arg26[%c64_224, %c0_225], %150 {strides = array<i32>} : memref<72x900xf32, #tpu.memory_space<vmem>>, vector<8x256xf32>,
    %c0_226 = arith.constant 0 : index
    %c0_227 = arith.constant 0 : index
    %152 = vector.load %arg10[%c0_226, %c0_227] : memref<8x72xf32, #tpu.memory_space<vmem>>, vector<8x72xf32>
    %c0_228 = arith.constant 0 : index
    %c0_229 = arith.constant 0 : index
    %153 = vector.load %arg26[%c0_228, %c0_229] : memref<72x900xf32, #tpu.memory_space<vmem>>, vector<72x256xf32>
    %cst_230 = arith.constant dense<0.000000e+00> : vector<8x256xf32>
    %154 = tpu.matmul %152, %153, %cst_230 {dimension_numbers = #tpu.dot_dimension_numbers<[1], [0], [0], [1], [0, 0, 1, 1], [], []>} : vector<8x72xf32>, vector<72x256xf32>, vector<8x256xf32> -> vector<8x256xf32>
    %c0_231 = arith.constant 0 : index
    %c0_232 = arith.constant 0 : index
    %155 = vector.load %arg11[%c0_231, %c0_232] : memref<8x1xf32, #tpu.memory_space<vmem>>, vector<8x1xf32>
    %156 = vector.broadcast %155 : vector<8x1xf32> to vector<8x256xf32>
    %157 = arith.addf %154, %156 : vector<8x256xf32>
    %cst_233 = arith.constant 0.000000e+00 : f32
    %158 = vector.broadcast %cst_233 : f32 to vector<8x256xf32>
    %159 = arith.maximumf %157, %158 : vector<8x256xf32>
    %c0_234 = arith.constant 0 : index
    %c0_235 = arith.constant 0 : index
    %160 = vector.load %arg21[%c0_234, %c0_235] : memref<256x900xf32, #tpu.memory_space<vmem>>, vector<256x900xf32>
    %cst_236 = arith.constant dense<0.000000e+00> : vector<8x900xf32>
    %161 = tpu.matmul %159, %160, %cst_236 {dimension_numbers = #tpu.dot_dimension_numbers<[1], [0], [0], [1], [0, 0, 1, 1], [], []>} : vector<8x256xf32>, vector<256x900xf32>, vector<8x900xf32> -> vector<8x900xf32>
    %cst_237 = arith.constant 0.000000e+00 : f32
    %162 = vector.broadcast %cst_237 : f32 to vector<8x964xf32>
    %c0_238 = arith.constant 0 : index
    %c0_239 = arith.constant 0 : index
    %163 = vector.load %arg25[%c0_238, %c0_239] : memref<8x964xf32, #tpu.memory_space<vmem>>, vector<8x964xf32>
    tpu.vector_store %arg25[%c0_238, %c0_239], %162 {strides = array<i32>} : memref<8x964xf32, #tpu.memory_space<vmem>>, vector<8x964xf32>,
    %c0_240 = arith.constant 0 : index
    %c32_241 = arith.constant 32 : index
    %164 = vector.load %arg25[%c0_240, %c32_241] : memref<8x964xf32, #tpu.memory_space<vmem>>, vector<8x900xf32>
    tpu.vector_store %arg25[%c0_240, %c32_241], %161 {strides = array<i32>} : memref<8x964xf32, #tpu.memory_space<vmem>>, vector<8x900xf32>,
    %c0_242 = arith.constant 0 : index
    %c1_243 = arith.constant 1 : index
    %165 = vector.load %arg25[%c0_242, %c1_243] : memref<8x964xf32, #tpu.memory_space<vmem>>, vector<8x900xf32>
    %c0_244 = arith.constant 0 : index
    %c0_245 = arith.constant 0 : index
    %166 = vector.load %arg26[%c0_244, %c0_245] : memref<72x900xf32, #tpu.memory_space<vmem>>, vector<8x900xf32>
    tpu.vector_store %arg26[%c0_244, %c0_245], %165 {strides = array<i32>} : memref<72x900xf32, #tpu.memory_space<vmem>>, vector<8x900xf32>,
    %c0_246 = arith.constant 0 : index
    %c2_247 = arith.constant 2 : index
    %167 = vector.load %arg25[%c0_246, %c2_247] : memref<8x964xf32, #tpu.memory_space<vmem>>, vector<8x900xf32>
    %c8_248 = arith.constant 8 : index
    %c0_249 = arith.constant 0 : index
    %168 = vector.load %arg26[%c8_248, %c0_249] : memref<72x900xf32, #tpu.memory_space<vmem>>, vector<8x900xf32>
    tpu.vector_store %arg26[%c8_248, %c0_249], %167 {strides = array<i32>} : memref<72x900xf32, #tpu.memory_space<vmem>>, vector<8x900xf32>,
    %c0_250 = arith.constant 0 : index
    %c3_251 = arith.constant 3 : index
    %169 = vector.load %arg25[%c0_250, %c3_251] : memref<8x964xf32, #tpu.memory_space<vmem>>, vector<8x900xf32>
    %c16_252 = arith.constant 16 : index
    %c0_253 = arith.constant 0 : index
    %170 = vector.load %arg26[%c16_252, %c0_253] : memref<72x900xf32, #tpu.memory_space<vmem>>, vector<8x900xf32>
    tpu.vector_store %arg26[%c16_252, %c0_253], %169 {strides = array<i32>} : memref<72x900xf32, #tpu.memory_space<vmem>>, vector<8x900xf32>,
    %c0_254 = arith.constant 0 : index
    %c31_255 = arith.constant 31 : index
    %171 = vector.load %arg25[%c0_254, %c31_255] : memref<8x964xf32, #tpu.memory_space<vmem>>, vector<8x900xf32>
    %c24_256 = arith.constant 24 : index
    %c0_257 = arith.constant 0 : index
    %172 = vector.load %arg26[%c24_256, %c0_257] : memref<72x900xf32, #tpu.memory_space<vmem>>, vector<8x900xf32>
    tpu.vector_store %arg26[%c24_256, %c0_257], %171 {strides = array<i32>} : memref<72x900xf32, #tpu.memory_space<vmem>>, vector<8x900xf32>,
    %c0_258 = arith.constant 0 : index
    %c32_259 = arith.constant 32 : index
    %173 = vector.load %arg25[%c0_258, %c32_259] : memref<8x964xf32, #tpu.memory_space<vmem>>, vector<8x900xf32>
    %c32_260 = arith.constant 32 : index
    %c0_261 = arith.constant 0 : index
    %174 = vector.load %arg26[%c32_260, %c0_261] : memref<72x900xf32, #tpu.memory_space<vmem>>, vector<8x900xf32>
    tpu.vector_store %arg26[%c32_260, %c0_261], %173 {strides = array<i32>} : memref<72x900xf32, #tpu.memory_space<vmem>>, vector<8x900xf32>,
    %c0_262 = arith.constant 0 : index
    %c33_263 = arith.constant 33 : index
    %175 = vector.load %arg25[%c0_262, %c33_263] : memref<8x964xf32, #tpu.memory_space<vmem>>, vector<8x900xf32>
    %c40_264 = arith.constant 40 : index
    %c0_265 = arith.constant 0 : index
    %176 = vector.load %arg26[%c40_264, %c0_265] : memref<72x900xf32, #tpu.memory_space<vmem>>, vector<8x900xf32>
    tpu.vector_store %arg26[%c40_264, %c0_265], %175 {strides = array<i32>} : memref<72x900xf32, #tpu.memory_space<vmem>>, vector<8x900xf32>,
    %c0_266 = arith.constant 0 : index
    %c61_267 = arith.constant 61 : index
    %177 = vector.load %arg25[%c0_266, %c61_267] : memref<8x964xf32, #tpu.memory_space<vmem>>, vector<8x900xf32>
    %c48_268 = arith.constant 48 : index
    %c0_269 = arith.constant 0 : index
    %178 = vector.load %arg26[%c48_268, %c0_269] : memref<72x900xf32, #tpu.memory_space<vmem>>, vector<8x900xf32>
    tpu.vector_store %arg26[%c48_268, %c0_269], %177 {strides = array<i32>} : memref<72x900xf32, #tpu.memory_space<vmem>>, vector<8x900xf32>,
    %c0_270 = arith.constant 0 : index
    %c62_271 = arith.constant 62 : index
    %179 = vector.load %arg25[%c0_270, %c62_271] : memref<8x964xf32, #tpu.memory_space<vmem>>, vector<8x900xf32>
    %c56_272 = arith.constant 56 : index
    %c0_273 = arith.constant 0 : index
    %180 = vector.load %arg26[%c56_272, %c0_273] : memref<72x900xf32, #tpu.memory_space<vmem>>, vector<8x900xf32>
    tpu.vector_store %arg26[%c56_272, %c0_273], %179 {strides = array<i32>} : memref<72x900xf32, #tpu.memory_space<vmem>>, vector<8x900xf32>,
    %c0_274 = arith.constant 0 : index
    %c63_275 = arith.constant 63 : index
    %181 = vector.load %arg25[%c0_274, %c63_275] : memref<8x964xf32, #tpu.memory_space<vmem>>, vector<8x900xf32>
    %c64_276 = arith.constant 64 : index
    %c0_277 = arith.constant 0 : index
    %182 = vector.load %arg26[%c64_276, %c0_277] : memref<72x900xf32, #tpu.memory_space<vmem>>, vector<8x900xf32>
    tpu.vector_store %arg26[%c64_276, %c0_277], %181 {strides = array<i32>} : memref<72x900xf32, #tpu.memory_space<vmem>>, vector<8x900xf32>,
    %c0_278 = arith.constant 0 : index
    %c0_279 = arith.constant 0 : index
    %183 = vector.load %arg12[%c0_278, %c0_279] : memref<8x72xf32, #tpu.memory_space<vmem>>, vector<8x72xf32>
    %c0_280 = arith.constant 0 : index
    %c0_281 = arith.constant 0 : index
    %184 = vector.load %arg26[%c0_280, %c0_281] : memref<72x900xf32, #tpu.memory_space<vmem>>, vector<72x900xf32>
    %cst_282 = arith.constant dense<0.000000e+00> : vector<8x900xf32>
    %185 = tpu.matmul %183, %184, %cst_282 {dimension_numbers = #tpu.dot_dimension_numbers<[1], [0], [0], [1], [0, 0, 1, 1], [], []>} : vector<8x72xf32>, vector<72x900xf32>, vector<8x900xf32> -> vector<8x900xf32>
    %c0_283 = arith.constant 0 : index
    %c0_284 = arith.constant 0 : index
    %186 = vector.load %arg13[%c0_283, %c0_284] : memref<8x1xf32, #tpu.memory_space<vmem>>, vector<8x1xf32>
    %187 = vector.broadcast %186 : vector<8x1xf32> to vector<8x900xf32>
    %188 = arith.addf %185, %187 : vector<8x900xf32>
    %cst_285 = arith.constant 0.000000e+00 : f32
    %189 = vector.broadcast %cst_285 : f32 to vector<8x900xf32>
    %190 = arith.maximumf %188, %189 : vector<8x900xf32>
    %c0_286 = arith.constant 0 : index
    %c0_287 = arith.constant 0 : index
    %191 = vector.load %arg22[%c0_286, %c0_287] : memref<1x900xf32, #tpu.memory_space<vmem>>, vector<1x900xf32>
    %192 = vector.broadcast %191 : vector<1x900xf32> to vector<8x900xf32>
    %193 = arith.mulf %190, %192 : vector<8x900xf32>
    %cst_288 = arith.constant 0.000000e+00 : f32
    %194 = vector.broadcast %cst_288 : f32 to vector<8x964xf32>
    %c0_289 = arith.constant 0 : index
    %c0_290 = arith.constant 0 : index
    %195 = vector.load %arg25[%c0_289, %c0_290] : memref<8x964xf32, #tpu.memory_space<vmem>>, vector<8x964xf32>
    tpu.vector_store %arg25[%c0_289, %c0_290], %194 {strides = array<i32>} : memref<8x964xf32, #tpu.memory_space<vmem>>, vector<8x964xf32>,
    %c0_291 = arith.constant 0 : index
    %c32_292 = arith.constant 32 : index
    %196 = vector.load %arg25[%c0_291, %c32_292] : memref<8x964xf32, #tpu.memory_space<vmem>>, vector<8x900xf32>
    tpu.vector_store %arg25[%c0_291, %c32_292], %193 {strides = array<i32>} : memref<8x964xf32, #tpu.memory_space<vmem>>, vector<8x900xf32>,
    %c0_293 = arith.constant 0 : index
    %c1_294 = arith.constant 1 : index
    %197 = vector.load %arg25[%c0_293, %c1_294] : memref<8x964xf32, #tpu.memory_space<vmem>>, vector<8x900xf32>
    %c0_295 = arith.constant 0 : index
    %c0_296 = arith.constant 0 : index
    %198 = vector.load %arg26[%c0_295, %c0_296] : memref<72x900xf32, #tpu.memory_space<vmem>>, vector<8x900xf32>
    tpu.vector_store %arg26[%c0_295, %c0_296], %197 {strides = array<i32>} : memref<72x900xf32, #tpu.memory_space<vmem>>, vector<8x900xf32>,
    %c0_297 = arith.constant 0 : index
    %c2_298 = arith.constant 2 : index
    %199 = vector.load %arg25[%c0_297, %c2_298] : memref<8x964xf32, #tpu.memory_space<vmem>>, vector<8x900xf32>
    %c8_299 = arith.constant 8 : index
    %c0_300 = arith.constant 0 : index
    %200 = vector.load %arg26[%c8_299, %c0_300] : memref<72x900xf32, #tpu.memory_space<vmem>>, vector<8x900xf32>
    tpu.vector_store %arg26[%c8_299, %c0_300], %199 {strides = array<i32>} : memref<72x900xf32, #tpu.memory_space<vmem>>, vector<8x900xf32>,
    %c0_301 = arith.constant 0 : index
    %c3_302 = arith.constant 3 : index
    %201 = vector.load %arg25[%c0_301, %c3_302] : memref<8x964xf32, #tpu.memory_space<vmem>>, vector<8x900xf32>
    %c16_303 = arith.constant 16 : index
    %c0_304 = arith.constant 0 : index
    %202 = vector.load %arg26[%c16_303, %c0_304] : memref<72x900xf32, #tpu.memory_space<vmem>>, vector<8x900xf32>
    tpu.vector_store %arg26[%c16_303, %c0_304], %201 {strides = array<i32>} : memref<72x900xf32, #tpu.memory_space<vmem>>, vector<8x900xf32>,
    %c0_305 = arith.constant 0 : index
    %c31_306 = arith.constant 31 : index
    %203 = vector.load %arg25[%c0_305, %c31_306] : memref<8x964xf32, #tpu.memory_space<vmem>>, vector<8x900xf32>
    %c24_307 = arith.constant 24 : index
    %c0_308 = arith.constant 0 : index
    %204 = vector.load %arg26[%c24_307, %c0_308] : memref<72x900xf32, #tpu.memory_space<vmem>>, vector<8x900xf32>
    tpu.vector_store %arg26[%c24_307, %c0_308], %203 {strides = array<i32>} : memref<72x900xf32, #tpu.memory_space<vmem>>, vector<8x900xf32>,
    %c0_309 = arith.constant 0 : index
    %c32_310 = arith.constant 32 : index
    %205 = vector.load %arg25[%c0_309, %c32_310] : memref<8x964xf32, #tpu.memory_space<vmem>>, vector<8x900xf32>
    %c32_311 = arith.constant 32 : index
    %c0_312 = arith.constant 0 : index
    %206 = vector.load %arg26[%c32_311, %c0_312] : memref<72x900xf32, #tpu.memory_space<vmem>>, vector<8x900xf32>
    tpu.vector_store %arg26[%c32_311, %c0_312], %205 {strides = array<i32>} : memref<72x900xf32, #tpu.memory_space<vmem>>, vector<8x900xf32>,
    %c0_313 = arith.constant 0 : index
    %c33_314 = arith.constant 33 : index
    %207 = vector.load %arg25[%c0_313, %c33_314] : memref<8x964xf32, #tpu.memory_space<vmem>>, vector<8x900xf32>
    %c40_315 = arith.constant 40 : index
    %c0_316 = arith.constant 0 : index
    %208 = vector.load %arg26[%c40_315, %c0_316] : memref<72x900xf32, #tpu.memory_space<vmem>>, vector<8x900xf32>
    tpu.vector_store %arg26[%c40_315, %c0_316], %207 {strides = array<i32>} : memref<72x900xf32, #tpu.memory_space<vmem>>, vector<8x900xf32>,
    %c0_317 = arith.constant 0 : index
    %c61_318 = arith.constant 61 : index
    %209 = vector.load %arg25[%c0_317, %c61_318] : memref<8x964xf32, #tpu.memory_space<vmem>>, vector<8x900xf32>
    %c48_319 = arith.constant 48 : index
    %c0_320 = arith.constant 0 : index
    %210 = vector.load %arg26[%c48_319, %c0_320] : memref<72x900xf32, #tpu.memory_space<vmem>>, vector<8x900xf32>
    tpu.vector_store %arg26[%c48_319, %c0_320], %209 {strides = array<i32>} : memref<72x900xf32, #tpu.memory_space<vmem>>, vector<8x900xf32>,
    %c0_321 = arith.constant 0 : index
    %c62_322 = arith.constant 62 : index
    %211 = vector.load %arg25[%c0_321, %c62_322] : memref<8x964xf32, #tpu.memory_space<vmem>>, vector<8x900xf32>
    %c56_323 = arith.constant 56 : index
    %c0_324 = arith.constant 0 : index
    %212 = vector.load %arg26[%c56_323, %c0_324] : memref<72x900xf32, #tpu.memory_space<vmem>>, vector<8x900xf32>
    tpu.vector_store %arg26[%c56_323, %c0_324], %211 {strides = array<i32>} : memref<72x900xf32, #tpu.memory_space<vmem>>, vector<8x900xf32>,
    %c0_325 = arith.constant 0 : index
    %c63_326 = arith.constant 63 : index
    %213 = vector.load %arg25[%c0_325, %c63_326] : memref<8x964xf32, #tpu.memory_space<vmem>>, vector<8x900xf32>
    %c64_327 = arith.constant 64 : index
    %c0_328 = arith.constant 0 : index
    %214 = vector.load %arg26[%c64_327, %c0_328] : memref<72x900xf32, #tpu.memory_space<vmem>>, vector<8x900xf32>
    tpu.vector_store %arg26[%c64_327, %c0_328], %213 {strides = array<i32>} : memref<72x900xf32, #tpu.memory_space<vmem>>, vector<8x900xf32>,
    %c0_329 = arith.constant 0 : index
    %c0_330 = arith.constant 0 : index
    %215 = vector.load %arg14[%c0_329, %c0_330] : memref<8x72xf32, #tpu.memory_space<vmem>>, vector<8x72xf32>
    %c0_331 = arith.constant 0 : index
    %c0_332 = arith.constant 0 : index
    %216 = vector.load %arg26[%c0_331, %c0_332] : memref<72x900xf32, #tpu.memory_space<vmem>>, vector<72x900xf32>
    %cst_333 = arith.constant dense<0.000000e+00> : vector<8x900xf32>
    %217 = tpu.matmul %215, %216, %cst_333 {dimension_numbers = #tpu.dot_dimension_numbers<[1], [0], [0], [1], [0, 0, 1, 1], [], []>} : vector<8x72xf32>, vector<72x900xf32>, vector<8x900xf32> -> vector<8x900xf32>
    %c0_334 = arith.constant 0 : index
    %c0_335 = arith.constant 0 : index
    %218 = vector.load %arg15[%c0_334, %c0_335] : memref<8x1xf32, #tpu.memory_space<vmem>>, vector<8x1xf32>
    %219 = vector.broadcast %218 : vector<8x1xf32> to vector<8x900xf32>
    %220 = arith.addf %217, %219 : vector<8x900xf32>
    %221 = arith.negf %220 : vector<8x900xf32>
    %222 = math.exp %221 : vector<8x900xf32>
    %cst_336 = arith.constant 1.000000e+00 : f32
    %223 = vector.broadcast %cst_336 : f32 to vector<8x900xf32>
    %224 = arith.addf %223, %222 : vector<8x900xf32>
    %225 = arith.divf %223, %224 : vector<8x900xf32>
    %c0_337 = arith.constant 0 : index
    %c0_338 = arith.constant 0 : index
    %c0_339 = arith.constant 0 : index
    %226 = vector.load %arg23[%c0_337, %c0_338, %c0_339] : memref<1x8x900xf32, #tpu.memory_space<vmem>>, vector<1x8x900xf32>
    %227 = vector.shape_cast %226 : vector<1x8x900xf32> to vector<8x900xf32>
    %228 = vector.shape_cast %225 : vector<8x900xf32> to vector<1x8x900xf32>
    tpu.vector_store %arg23[%c0_337, %c0_338, %c0_339], %228 {strides = array<i32>} : memref<1x8x900xf32, #tpu.memory_space<vmem>>, vector<1x8x900xf32>,
    return
  }
  func.func @transform_0(%arg0: i32) -> (i32, i32, i32) {
    %c0_i32 = arith.constant 0 : i32
    %c0_i32_0 = arith.constant 0 : i32
    %c0_i32_1 = arith.constant 0 : i32
    return %arg0, %c0_i32, %c0_i32_0 : i32, i32, i32
  }
  func.func @transform_1(%arg0: i32) -> (i32, i32) {
    %c0_i32 = arith.constant 0 : i32
    %c0_i32_0 = arith.constant 0 : i32
    %c0_i32_1 = arith.constant 0 : i32
    return %c0_i32, %c0_i32_0 : i32, i32
  }
  func.func @transform_2(%arg0: i32) -> (i32, i32) {
    %c0_i32 = arith.constant 0 : i32
    %c0_i32_0 = arith.constant 0 : i32
    %c0_i32_1 = arith.constant 0 : i32
    return %c0_i32, %c0_i32_0 : i32, i32
  }
  func.func @transform_3(%arg0: i32) -> (i32, i32) {
    %c0_i32 = arith.constant 0 : i32
    %c0_i32_0 = arith.constant 0 : i32
    %c0_i32_1 = arith.constant 0 : i32
    return %c0_i32, %c0_i32_0 : i32, i32
  }
  func.func @transform_4(%arg0: i32) -> (i32, i32) {
    %c0_i32 = arith.constant 0 : i32
    %c0_i32_0 = arith.constant 0 : i32
    %c0_i32_1 = arith.constant 0 : i32
    return %c0_i32, %c0_i32_0 : i32, i32
  }
  func.func @transform_5(%arg0: i32) -> (i32, i32) {
    %c0_i32 = arith.constant 0 : i32
    %c0_i32_0 = arith.constant 0 : i32
    %c0_i32_1 = arith.constant 0 : i32
    return %c0_i32, %c0_i32_0 : i32, i32
  }
  func.func @transform_6(%arg0: i32) -> (i32, i32) {
    %c0_i32 = arith.constant 0 : i32
    %c0_i32_0 = arith.constant 0 : i32
    %c0_i32_1 = arith.constant 0 : i32
    return %c0_i32, %c0_i32_0 : i32, i32
  }
  func.func @transform_7(%arg0: i32) -> (i32, i32) {
    %c0_i32 = arith.constant 0 : i32
    %c0_i32_0 = arith.constant 0 : i32
    %c0_i32_1 = arith.constant 0 : i32
    return %c0_i32, %c0_i32_0 : i32, i32
  }
  func.func @transform_8(%arg0: i32) -> (i32, i32) {
    %c0_i32 = arith.constant 0 : i32
    %c0_i32_0 = arith.constant 0 : i32
    %c0_i32_1 = arith.constant 0 : i32
    return %c0_i32, %c0_i32_0 : i32, i32
  }
  func.func @transform_9(%arg0: i32) -> (i32, i32) {
    %c0_i32 = arith.constant 0 : i32
    %c0_i32_0 = arith.constant 0 : i32
    %c0_i32_1 = arith.constant 0 : i32
    return %c0_i32, %c0_i32_0 : i32, i32
  }
  func.func @transform_10(%arg0: i32) -> (i32, i32) {
    %c0_i32 = arith.constant 0 : i32
    %c0_i32_0 = arith.constant 0 : i32
    %c0_i32_1 = arith.constant 0 : i32
    return %c0_i32, %c0_i32_0 : i32, i32
  }
  func.func @transform_11(%arg0: i32) -> (i32, i32) {
    %c0_i32 = arith.constant 0 : i32
    %c0_i32_0 = arith.constant 0 : i32
    %c0_i32_1 = arith.constant 0 : i32
    return %c0_i32, %c0_i32_0 : i32, i32
  }
  func.func @transform_12(%arg0: i32) -> (i32, i32) {
    %c0_i32 = arith.constant 0 : i32
    %c0_i32_0 = arith.constant 0 : i32
    %c0_i32_1 = arith.constant 0 : i32
    return %c0_i32, %c0_i32_0 : i32, i32
  }
  func.func @transform_13(%arg0: i32) -> (i32, i32) {
    %c0_i32 = arith.constant 0 : i32
    %c0_i32_0 = arith.constant 0 : i32
    %c0_i32_1 = arith.constant 0 : i32
    return %c0_i32, %c0_i32_0 : i32, i32
  }
  func.func @transform_14(%arg0: i32) -> (i32, i32) {
    %c0_i32 = arith.constant 0 : i32
    %c0_i32_0 = arith.constant 0 : i32
    %c0_i32_1 = arith.constant 0 : i32
    return %c0_i32, %c0_i32_0 : i32, i32
  }
  func.func @transform_15(%arg0: i32) -> (i32, i32) {
    %c0_i32 = arith.constant 0 : i32
    %c0_i32_0 = arith.constant 0 : i32
    %c0_i32_1 = arith.constant 0 : i32
    return %c0_i32, %c0_i32_0 : i32, i32
  }
  func.func @transform_16(%arg0: i32) -> (i32, i32) {
    %c0_i32 = arith.constant 0 : i32
    %c0_i32_0 = arith.constant 0 : i32
    %c0_i32_1 = arith.constant 0 : i32
    return %c0_i32, %c0_i32_0 : i32, i32
  }
  func.func @transform_17(%arg0: i32) -> (i32, i32) {
    %c0_i32 = arith.constant 0 : i32
    %c0_i32_0 = arith.constant 0 : i32
    %c0_i32_1 = arith.constant 0 : i32
    return %c0_i32, %c0_i32_0 : i32, i32
  }
  func.func @transform_18(%arg0: i32) -> (i32, i32) {
    %c0_i32 = arith.constant 0 : i32
    %c0_i32_0 = arith.constant 0 : i32
    %c0_i32_1 = arith.constant 0 : i32
    return %c0_i32, %c0_i32_0 : i32, i32
  }
  func.func @transform_19(%arg0: i32) -> (i32, i32) {
    %c0_i32 = arith.constant 0 : i32
    %c0_i32_0 = arith.constant 0 : i32
    %c0_i32_1 = arith.constant 0 : i32
    return %c0_i32, %c0_i32_0 : i32, i32
  }
  func.func @transform_20(%arg0: i32) -> (i32, i32) {
    %c0_i32 = arith.constant 0 : i32
    %c0_i32_0 = arith.constant 0 : i32
    %c0_i32_1 = arith.constant 0 : i32
    return %c0_i32, %c0_i32_0 : i32, i32
  }
  func.func @transform_21(%arg0: i32) -> (i32, i32) {
    %c0_i32 = arith.constant 0 : i32
    %c0_i32_0 = arith.constant 0 : i32
    %c0_i32_1 = arith.constant 0 : i32
    return %c0_i32, %c0_i32_0 : i32, i32
  }
  func.func @transform_22(%arg0: i32) -> (i32, i32, i32) {
    %c0_i32 = arith.constant 0 : i32
    %c0_i32_0 = arith.constant 0 : i32
    %c0_i32_1 = arith.constant 0 : i32
    return %arg0, %c0_i32, %c0_i32_0 : i32, i32, i32
  }
  func.func @transform_23(%arg0: i32) -> (i32, i32, i32) {
    %c0_i32 = arith.constant 0 : i32
    %c0_i32_0 = arith.constant 0 : i32
    %c0_i32_1 = arith.constant 0 : i32
    return %arg0, %c0_i32, %c0_i32_0 : i32, i32, i32
  }
}

</mosaic_0001>

<bundles_post_ra>
// kernel: recon_net_forward.1
= control target key start
LH: loop header
LB: loop body
LE: loop exit
PB: predicated region body
PF: predicated region fallthrough
CT: control target
= control target key end

     0   :  { %s8916_s0 = inlined_call_operand.vmem [shape: f32[2,1,900], index: 0, kind: input, shape index: {}]   ;;  %s8917_s1 = inlined_call_operand.vmem [shape: f32[8,9], index: 1, kind: input, shape index: {}]   ;;  %s8918_s2 = inlined_call_operand.vmem [shape: f32[8,1], index: 2, kind: input, shape index: {}]   ;;  %s8919_s3 = inlined_call_operand.vmem [shape: f32[8,72], index: 3, kind: input, shape index: {}]   ;;  %s8920_s4 = inlined_call_operand.vmem [shape: f32[8,1], index: 4, kind: input, shape index: {}]   ;;  %s8921_s5 = inlined_call_operand.vmem [shape: f32[8,72], index: 5, kind: input, shape index: {}]   ;;  %s8922_s6 = inlined_call_operand.vmem [shape: f32[8,1], index: 6, kind: input, shape index: {}]   ;;  %s8923_s7 = inlined_call_operand.vmem [shape: f32[8,72], index: 7, kind: input, shape index: {}]   ;;  %s8924_s8 = inlined_call_operand.vmem [shape: f32[8,1], index: 8, kind: input, shape index: {}]   ;;  %s8925_s9 = inlined_call_operand.vmem [shape: f32[8,72], index: 9, kind: input, shape index: {}]   ;;  %s8926_s10 = inlined_call_operand.vmem [shape: f32[8,1], index: 10, kind: input, shape index: {}]   ;;  %s8927_s11 = inlined_call_operand.vmem [shape: f32[8,72], index: 11, kind: input, shape index: {}]   ;;  %s8928_s12 = inlined_call_operand.vmem [shape: f32[8,1], index: 12, kind: input, shape index: {}]   ;;  %s8929_s13 = inlined_call_operand.vmem [shape: f32[8,72], index: 13, kind: input, shape index: {}]   ;;  %s8930_s14 = inlined_call_operand.vmem [shape: f32[8,1], index: 14, kind: input, shape index: {}]   ;;  %s8931_s15 = inlined_call_operand.hbm [shape: f32[81,16], index: 15, kind: input, shape index: {}]   ;;  %s8932_s16 = inlined_call_operand.vmem [shape: f32[900,256], index: 16, kind: input, shape index: {}]   ;;  %s8933_s17 = inlined_call_operand.hbm [shape: f32[256,81], index: 17, kind: input, shape index: {}]   ;;  %s8934_s18 = inlined_call_operand.vmem [shape: f32[16,100], index: 18, kind: input, shape index: {}]   ;;  %s8935_s19 = inlined_call_operand.hbm [shape: f32[100,256], index: 19, kind: input, shape index: {}]   ;;  %s8936_s20 = inlined_call_operand.hbm [shape: f32[256,900], index: 20, kind: input, shape index: {}]   ;;  %s8937_s21 = inlined_call_operand.vmem [shape: f32[1,900], index: 21, kind: input, shape index: {}]   ;;  %s8938_s22 = inlined_call_operand.vmem [shape: f32[2,8,900], index: 22, kind: output, shape index: {0}]   ;;  %s8939_s23 = inlined_call_operand.vmem [shape: f32[2,8,16], index: 23, kind: output, shape index: {1}]  }
   0x1   :  { %8970 = sst [smem:[#allocation15_spill]] %s8916_s0 }
   0x2   :  { %8971 = sst [smem:[#allocation16_spill]] %s8917_s1 }
   0x3   :  { %8972 = sst [smem:[#allocation17_spill]] %s8918_s2 }
   0x4   :  { %8973 = sst [smem:[#allocation18_spill]] %s8919_s3 }
   0x5   :  { %8974 = sst [smem:[#allocation19_spill]] %s8920_s4 }
   0x6   :  { %8975 = sst [smem:[#allocation20_spill]] %s8921_s5 }
   0x7   :  { %8976 = sst [smem:[#allocation21_spill]] %s8922_s6 }
   0x8   :  { %8977 = sst [smem:[#allocation22_spill]] %s8923_s7 }
   0x9   :  { %8978 = sst [smem:[#allocation23_spill]] %s8929_s13 }
   0xa   :  { %8979 = sst [smem:[#allocation24_spill]] %s8930_s14 }
   0xb   :  { %8980 = sst [smem:[#allocation25_spill]] %s8938_s22 }
   0xc   :  { %29 = vsyncpa [#allocation5], 0 }
   0xd   :  { %30 = vsyncpa [#allocation7], 0 }
   0xe   :  { %31 = vsyncpa [#allocation10], 0  ;;  %s7081_s4 = smov 0  }
   0xf LB: > { %8981 = sst [smem:[#allocation14_spill]] %s6920_s4  ;;  %s7087_s30 = sadd.s32 4294967295, %s6920_s4   ;;  %s6920_s4 = sphi %s7081_s4, %s37_s4  }
  0x10   : > { %p5699_p0 = scmp.ge.s32.totalorder %s6920_s4, 1  ;;  %p561_p1 = scmp.lt.s32.totalorder %s6920_s4, 3 }
  0x11   : > { %p8941_p2 = scmp.eq.s32.totalorder %s7087_s30, 0  ;;  %s6922_s25 = smov [#allocation6]  }
  0x12   : > { %p7092_p3 = pnand %p5699_p0, %p561_p1  ;;  %s631_s5 = sshll.u32 %s6922_s25, 4  ;;  %s7096_s5 = int_to_ptr.vmem [resolvable:$true] %s631_s5 }
  0x13   : > { %s6923_s1 = smov [#allocation4]   ;;  %s6924_s6 = smov [#allocation8]  }
  0x14   : > { %s8982_s24 = scalar_select %p7092_p3, 1, 0 }
  0x15   : > { %p6686_p4 = pneg %p7092_p3  ;;  %s615_s26 = sshll.u32 %s6923_s1, 4  ;;  %s7100_s26 = int_to_ptr.vmem [resolvable:$true] %s615_s26 }
  0x16   : > { %s647_s27 = sshll.u32 %s6924_s6, 4  ;;  %s6790_s29 = scalar_lea.hbm %s8933_s17, 4096  ;;  %s7108_s27 = int_to_ptr.vmem [resolvable:$true] %s647_s27 }
  0x17   : > { %p7104_p5 = pnand %p8941_p2, %p6686_p4  ;;  %p6791_p6 = scmp.ne.s32.totalorder %s8933_s17, %s6790_s29 }
  0x18   : > { %p6797_p10 = scmp.lt.u32.totalorder %s6790_s29, %s8933_s17 }
  0x19   : > { %p7118_p7 = pneg %p7104_p5 }
  0x1b   : > { %p6793_p8 = pnand %p7118_p7, %p6791_p6 }
  0x1d   : > { %p6794_p9 = pneg %p6793_p8 }
  0x1f   : > { %p6799_p11 = pnand %p6797_p10, %p6794_p9 }
  0x21   : > { %6802 = shalt.err (!%p6799_p11)
}
  0x22   : > { %s6803_s7 = scalar_lea.vmem %s7096_s5, 4096  ;;  %p6811_p1 = scmp.lt.s32.totalorder %s7096_s5, %s7096_s5 }
  0x23   : > { %p6804_p12 = scmp.ne.s32.totalorder %s7096_s5, %s6803_s7  ;;  %p6812_p4 = scmp.lt.s32.totalorder %s6803_s7, %s6803_s7 }
  0x25   : > { %p6806_p13 = pnand %p6804_p12, %p7118_p7  ;;  %p6813_p6 = por %p6812_p4, %p6811_p1 }
  0x27   : > { %p6807_p0 = pneg %p6806_p13 }
  0x29   : > { %p6814_p8 = pnand %p6813_p6, %p6807_p0 }
  0x2b   : > { %6817 = shalt.err (!%p6814_p8)
}
  0x2c   : > { %s6925_s28 = smov 128   ;;  %s6926_s29 = smov 8  }
  0x2d   : > { %6692 = dma.hbm_to_vmem [thread:$0]  (!%p7104_p5), %s8933_s17, 4096, %s7096_s5, [#allocation7], %s6925_s28, %s6925_s28, %s6926_s29  }
  0x2e   : > { %s6818_s4 = scalar_lea.hbm %s8931_s15, 1408 }
  0x2f   : > { %p6819_p9 = scmp.ne.s32.totalorder %s8931_s15, %s6818_s4  ;;  %p6825_p12 = scmp.lt.u32.totalorder %s6818_s4, %s8931_s15 }
  0x31   : > { %p6821_p10 = pnand %p6819_p9, %p7118_p7 }
  0x33   : > { %p6822_p11 = pneg %p6821_p10 }
  0x35   : > { %p6827_p13 = pnand %p6825_p12, %p6822_p11 }
  0x37   : > { %6830 = shalt.err (!%p6827_p13)
}
  0x38   : > { %s6831_s5 = scalar_lea.vmem %s7100_s26, 1408  ;;  %p6839_p6 = scmp.lt.s32.totalorder %s7100_s26, %s7100_s26 }
  0x39   : > { %p6832_p0 = scmp.ne.s32.totalorder %s7100_s26, %s6831_s5  ;;  %p6840_p8 = scmp.lt.s32.totalorder %s6831_s5, %s6831_s5 }
  0x3b   : > { %p6834_p1 = pnand %p6832_p0, %p7118_p7  ;;  %p6841_p9 = por %p6840_p8, %p6839_p6 }
  0x3d   : > { %p6835_p4 = pneg %p6834_p1 }
  0x3f   : > { %p6842_p10 = pnand %p6841_p9, %p6835_p4 }
  0x41   : > { %6845 = shalt.err (!%p6842_p10)
}
  0x42   : > { %6689 = dma.hbm_to_vmem [thread:$0]  (!%p7104_p5), %s8931_s15, 1408, %s7100_s26, [#allocation5], %s6925_s28, %s6925_s28, %s6926_s29  }
  0x43   : > { %s6846_s3 = scalar_lea.hbm %s8935_s19, 3328 }
  0x44   : > { %p6847_p11 = scmp.ne.s32.totalorder %s8935_s19, %s6846_s3  ;;  %p6853_p0 = scmp.lt.u32.totalorder %s6846_s3, %s8935_s19 }
  0x46   : > { %p6849_p12 = pnand %p6847_p11, %p7118_p7 }
  0x48   : > { %p6850_p13 = pneg %p6849_p12 }
  0x4a   : > { %p6855_p1 = pnand %p6853_p0, %p6850_p13 }
  0x4c   : > { %6858 = shalt.err (!%p6855_p1)
}
  0x4d   : > { %s6859_s26 = scalar_lea.vmem %s7108_s27, 3328  ;;  %p6867_p9 = scmp.lt.s32.totalorder %s7108_s27, %s7108_s27 }
  0x4e   : > { %p6860_p4 = scmp.ne.s32.totalorder %s7108_s27, %s6859_s26  ;;  %p6868_p10 = scmp.lt.s32.totalorder %s6859_s26, %s6859_s26 }
  0x50   : > { %p6862_p6 = pnand %p6860_p4, %p7118_p7  ;;  %p6869_p11 = por %p6868_p10, %p6867_p9 }
  0x52   : > { %p6863_p8 = pneg %p6862_p6 }
  0x54   : > { %p6870_p12 = pnand %p6869_p11, %p6863_p8 }
  0x56   : > { %6873 = shalt.err (!%p6870_p12)
}
  0x57   : > { %s6927_s28 = smov 256   ;;  %s6928_s29 = smov 16  }
  0x58   : > { %6695 = dma.hbm_to_vmem [thread:$0]  (!%p7104_p5), %s8935_s19, 3328, %s7108_s27, [#allocation7], %s6927_s28, %s6927_s28, %s6928_s29  }
  0x59   : > { %s6929_s14 = smov [#allocation9]   ;;  %s6874_s0 = scalar_lea.hbm %s8936_s20, 32768 }
  0x5a   : > { %s660_s22 = sshll.u32 %s6929_s14, 4  ;;  %p6875_p13 = scmp.ne.s32.totalorder %s8936_s20, %s6874_s0  ;;  %s661_s22 = int_to_ptr.vmem [resolvable:$true] %s660_s22 }
  0x5b   : > { %p6881_p4 = scmp.lt.u32.totalorder %s6874_s0, %s8936_s20 }
  0x5c   : > { %p6877_p0 = pnand %p6875_p13, %p7118_p7 }
  0x5e   : > { %p6878_p1 = pneg %p6877_p0 }
  0x60   : > { %p6883_p6 = pnand %p6881_p4, %p6878_p1 }
  0x62   : > { %6886 = shalt.err (!%p6883_p6)
}
  0x63   : > { %s6887_s27 = scalar_lea.vmem %s661_s22, 32768  ;;  %p6895_p11 = scmp.lt.s32.totalorder %s661_s22, %s661_s22 }
  0x64   : > { %p6888_p8 = scmp.ne.s32.totalorder %s661_s22, %s6887_s27  ;;  %p6896_p12 = scmp.lt.s32.totalorder %s6887_s27, %s6887_s27 }
  0x66   : > { %p6890_p9 = pnand %p6888_p8, %p7118_p7  ;;  %p6897_p2 = por %p6896_p12, %p6895_p11 }
  0x68   : > { %p6891_p10 = pneg %p6890_p9 }
  0x6a   : > { %p6898_p3 = pnand %p6897_p2, %p6891_p10 }
  0x6c   : > { %6901 = shalt.err (!%p6898_p3)
}
  0x6d   : > { %s6930_s28 = smov 1024   ;;  %s6931_s29 = smov 64  }
  0x6e   : > { %6698 = dma.hbm_to_vmem [thread:$0]  (!%p7104_p5), %s8936_s20, 32768, %s661_s22, [#allocation10], %s6930_s28, %s6930_s28, %s6931_s29  }
  0x6f   : > { %p8985_p13 = scmp.ne.s32.totalorder %s8982_s24, 0 }
  0x70   : > { %p8986_p0 = scmp.eq.s32.totalorder (!%p8985_p13), %s7087_s30, 0 }
  0x71   : > { %686 = sbr.rel (%p8985_p13) target bundleno = 5287 (0x14a7), region = 108 }
  0x78   : > { %6907 = dma.done.wait (%p8986_p0), [#allocation5], 1408   ;;  %p8987_p7 = pmov %p8986_p0 }
  0x79   : > { %p8988_p2 = pmov %p8986_p0 }
  0x7a   : > { %6909 = vsyncadd (%p8987_p7), [#allocation5], 4294965888 }
  0x7b   : > { %6911 = dma.done.wait (%p8988_p2), [#allocation7], 7424   ;;  %p8989_p3 = pmov %p8986_p0 }
  0x7c   : > { %p8990_p1 = pmov %p8986_p0 }
  0x7d   : > { %6913 = vsyncadd (%p8989_p3), [#allocation7], 4294959872 }
  0x7e   : > { %6915 = dma.done.wait (%p8990_p1), [#allocation10], 32768   ;;  %p8991_p5 = pmov %p8986_p0 }
  0x7f   : > { %p765_p4 = scmp.lt.s32.totalorder %s7087_s30, 1  ;;  %vm8959_vm0 = vcmask 556032   ;;  %v6932_v0 = vmov 0.0   ;;  %s8992_s14 = sld [smem:[#allocation15_spill]]  ;;  %v795_v2 = vlaneseq  ;;  %vm792_vm3 = vcmask 261120   ;;  %v1265_v34 = vld [vmem:[%s8932_s16 + $0x8] sm:$0xff] }
  0x80   : > { %6917 = vsyncadd (%p8991_p5), [#allocation10], 4294934528  ;;  %779 = vst [vmem:[#allocation2] sm:$0xff] %v6932_v0  ;;  %1036 = vmatprep.mubr.f32.mxu1 %v6932_v0  ;;  %s6933_s4 = smov 32   ;;  %s8960_s3 = smov 126   ;;  %v1267_v35 = vld [vmem:[%s8932_s16 + $0x18] sm:$0xff] }
  0x81   : > { %780 = vst [vmem:[#allocation2 + $0x8] sm:$0xff] %v6932_v0  ;;  %781 = vst [vmem:[#allocation2 + $0x10] sm:$0xff] %v6932_v0  ;;  %s9123_s30 = smov (!%p765_p4, %s7087_s30), 1  ;;  %vm796_vm1 = vcmp.ge.s32.totalorder %v795_v2, 32  ;;  %vm797_vm2 = vcmp.lt.s32.totalorder %v795_v2, 932  ;;  %s8951_s0 = smov 127   ;;  %v5926_v37 = vpack.c.bf16 %v1267_v35, %v1265_v34 }
  0x82   : > { %782 = vst [vmem:[#allocation2 + $0x18] sm:$0xff] %v6932_v0  ;;  %783 = vst [vmem:[#allocation2 + $0x20] sm:$0xff] %v6932_v0  ;;  %s5710_s24 = sshll.u32 %s9123_s30, 3  ;;  %s8943_s1 = smov 125   ;;  %v6943_v36 = vmov 0   ;;  %v1264_v38 = vld [vmem:[%s8932_s16] sm:$0xff] }
  0x83   : > { %784 = vst [vmem:[#allocation2 + $0x28] sm:$0xff] %v6932_v0  ;;  %785 = vst [vmem:[#allocation2 + $0x30] sm:$0xff] %v6932_v0  ;;  %s6937_s6 = smov 97   ;;  %s6938_s7 = smov 96   ;;  %6754 = vset.pattern.permute.xlu0 %v6943_v36  ;;  %v1266_v39 = vld [vmem:[%s8932_s16 + $0x10] sm:$0xff]  ;;  %v1269_v40 = vld [vmem:[%s8932_s16 + $0x28] sm:$0xff]  ;;  %6755 = vset.pattern.permute.xlu1 %v6943_v36 }
  0x84   : > { %787 = vst.msk [vmem:[#allocation2 + $0x38] sm:$0xff] %vm8959_vm0, %v6932_v0  ;;  %vm798_vm4 = vmand %vm796_vm1, %vm797_vm2  ;;  %s6939_s26 = smov 95   ;;  %s8945_s27 = smov 67   ;;  %v5928_v41 = vpack.c.bf16 %v1266_v39, %v1264_v38  ;;  %v1271_v42 = vld [vmem:[%s8932_s16 + $0x38] sm:$0xff]  ;;  %v1268_v43 = vld [vmem:[%s8932_s16 + $0x20] sm:$0xff]  ;;  %5927 = vmatprep.subr.bf16.mxu0 %v5926_v37  ;;  %vm8958_vm5 = vcmask 1031168  }
  0x85   : > { %s768_s22 = scalar_lea.vmem %s8992_s14, %s5710_s24  ;;  %s8947_s28 = smov 66   ;;  %v1270_v44 = vld [vmem:[%s8932_s16 + $0x30] sm:$0xff]  ;;  %v5930_v45 = vpack.c.bf16 %v1271_v42, %v1269_v40  ;;  %v1273_v46 = vld [vmem:[%s8932_s16 + $0x48] sm:$0xff]  ;;  %v1275_v47 = vld [vmem:[%s8932_s16 + $0x58] sm:$0xff]  ;;  %vm7447_vm6 = vcmp.lt.s32.totalorder %v795_v2, 900  ;;  %vm8957_vm7 = vcmask 1039360  }
  0x86   : > { %v778_v1 = vld [vmem:[%s768_s22] sm:$0xff]  ;;  %s8949_s29 = smov 65   ;;  %s8993_s2 = sld [smem:[#allocation17_spill]]  ;;  %5929 = vmatpush1.bf16.msra.mxu0 %v5928_v41  ;;  %v5932_v48 = vpack.c.bf16 %v1270_v44, %v1268_v43  ;;  %v5934_v49 = vpack.c.bf16 %v1275_v47, %v1273_v46  ;;  %v1274_v51 = vld [vmem:[%s8932_s16 + $0x50] sm:$0xff]  ;;  %v1277_v52 = vld [vmem:[%s8932_s16 + $0x68] sm:$0xff]  ;;  %vm8956_vm8 = vcmask 1022976  }
  0x87   : > { %789 = vrot.lane.b32.xlu0 %v778_v1, %s6933_s4  ;;  %5931 = vmatprep.subr.bf16.mxu0 %v5930_v45  ;;  %v1272_v50 = vld [vmem:[%s8932_s16 + $0x40] sm:$0xff]  ;;  %v1279_v53 = vld [vmem:[%s8932_s16 + $0x78] sm:$0xff]  ;;  %v1278_v57 = vld [vmem:[%s8932_s16 + $0x70] sm:$0xff]  ;;  %vm849_vm9 = vcmask 793600   ;;  %vm862_vm10 = vcmask 785408   ;;  %vm875_vm11 = vcmask 777216  }
  0x88   : > { %v5936_v54 = vpack.c.bf16 %v1274_v51, %v1272_v50  ;;  %v5938_v55 = vpack.c.bf16 %v1279_v53, %v1277_v52  ;;  %v1276_v56 = vld [vmem:[%s8932_s16 + $0x60] sm:$0xff]  ;;  %v1281_v58 = vld [vmem:[%s8932_s16 + $0x88] sm:$0xff]  ;;  %v1283_v59 = vld [vmem:[%s8932_s16 + $0x98] sm:$0xff]  ;;  %vm8955_vm12 = vcmask 547840   ;;  %vm8954_vm13 = vcmask 539648   ;;  %s8998_s25 = sld [smem:[#allocation16_spill]] }
  0x89   : > { %v5940_v60 = vpack.c.bf16 %v1278_v57, %v1276_v56  ;;  %v5942_v61 = vpack.c.bf16 %v1283_v59, %v1281_v58  ;;  %v1280_v62 = vld [vmem:[%s8932_s16 + $0x80] sm:$0xff]  ;;  %v1282_v63 = vld [vmem:[%s8932_s16 + $0x90] sm:$0xff]  ;;  %v1285_v1 = vld [vmem:[%s8932_s16 + $0xa8] sm:$0xff]  ;;  %vm8953_vm14 = vcmask 531456   ;;  %vm947_vm15 = vcmask 1040384   ;;  %s8966_s22 = smov 81  }
  0x8a   : > { %5933 = vmatpush1.bf16.msra.mxu0 %v5932_v48  ;;  %v1304_v36 = vld [vmem:[%s8932_s16 + $0x140] sm:$0xff]  ;;  %v1306_v37 = vld [vmem:[%s8932_s16 + $0x150] sm:$0xff]  ;;  %v1309_v38 = vld [vmem:[%s8932_s16 + $0x168] sm:$0xff]  ;;  %vm6944_vm1 = vmmov 1   ;;  %s8964_s5 = smov 80   ;;  %s8962_s13 = smov 79  }
  0x8b   : > { %5935 = vmatprep.subr.bf16.mxu0 %v5934_v49  ;;  %v1311_v39 = vld [vmem:[%s8932_s16 + $0x178] sm:$0xff]  ;;  %v5968_v40 = vpack.c.bf16 %v1306_v37, %v1304_v36  ;;  %v1308_v42 = vld [vmem:[%s8932_s16 + $0x160] sm:$0xff]  ;;  %v1310_v43 = vld [vmem:[%s8932_s16 + $0x170] sm:$0xff]  ;;  %s6954_s14 = smov 104  }
  0x8c   : > { %v937_v33 = vld [vmem:[%s8993_s2] sm:$0xff]  ;;  %v5970_v41 = vpack.c.bf16 %v1311_v39, %v1309_v38  ;;  %v1313_v44 = vld [vmem:[%s8932_s16 + $0x188] sm:$0xff]  ;;  %v1315_v45 = vld [vmem:[%s8932_s16 + $0x198] sm:$0xff]  ;;  %v5972_v46 = vpack.c.bf16 %v1310_v43, %v1308_v42  ;;  %s6952_s2 = smov 105  }
  0x8d   : > { %v5974_v47 = vpack.c.bf16 %v1315_v45, %v1313_v44  ;;  %v1312_v48 = vld [vmem:[%s8932_s16 + $0x180] sm:$0xff]  ;;  %v1314_v49 = vld [vmem:[%s8932_s16 + $0x190] sm:$0xff]  ;;  %v1317_v50 = vld [vmem:[%s8932_s16 + $0x1a8] sm:$0xff] }
  0x8e   : > { %5937 = vmatpush1.bf16.msra.mxu0 %v5936_v54  ;;  %v1319_v51 = vld [vmem:[%s8932_s16 + $0x1b8] sm:$0xff]  ;;  %v5976_v52 = vpack.c.bf16 %v1314_v49, %v1312_v48  ;;  %v1316_v54 = vld [vmem:[%s8932_s16 + $0x1a0] sm:$0xff]  ;;  %v1321_v56 = vld [vmem:[%s8932_s16 + $0x1c8] sm:$0xff] }
  0x8f   : > { %5939 = vmatprep.subr.bf16.mxu0 %v5938_v55  ;;  %v5978_v53 = vpack.c.bf16 %v1319_v51, %v1317_v50  ;;  %v1318_v55 = vld [vmem:[%s8932_s16 + $0x1b0] sm:$0xff]  ;;  %v1323_v57 = vld [vmem:[%s8932_s16 + $0x1d8] sm:$0xff]  ;;  %vm7497_vm2 = vmpackc.low %vm947_vm15, %vm6944_vm1  ;;  %vm1494_vm1 = vcmask 1043456  }
  0x90   : > { %v5980_v58 = vpack.c.bf16 %v1318_v55, %v1316_v54  ;;  %v5982_v59 = vpack.c.bf16 %v1323_v57, %v1321_v56  ;;  %v1325_v55 = vld [vmem:[%s8932_s16 + $0x1e8] sm:$0xff]  ;;  %v1327_v56 = vld [vmem:[%s8932_s16 + $0x1f8] sm:$0xff]  ;;  %v1324_v57 = vld [vmem:[%s8932_s16 + $0x1e0] sm:$0xff] }
  0x92   : > { %5941 = vmatpush1.bf16.msra.mxu0 %v5940_v60  ;;  %v1320_v60 = vld [vmem:[%s8932_s16 + $0x1c0] sm:$0xff] }
  0x93   : > { %5943 = vmatprep.subr.bf16.mxu0 %v5942_v61  ;;  %v1322_v61 = vld [vmem:[%s8932_s16 + $0x1d0] sm:$0xff] }
  0xf9   : > { %v790_v3 = vpop.permute.xlu0 %789 }
  0xfa   : > { %v791_v4 = vrot.slane %v790_v3, 7 }
  0xfc   : > { %v793_v5 = vsel %vm792_vm3, %v791_v4, %v790_v3  ;;  %v1287_v3 = vld [vmem:[%s8932_s16 + $0xb8] sm:$0xff]  ;;  %v5944_v4 = vpack.c.bf16 %v1282_v63, %v1280_v62  ;;  %v5984_v62 = vpack.c.bf16 %v1322_v61, %v1320_v60 }
  0xfd   : > { %799 = vst.msk [vmem:[#allocation2] ss:$8 sm:$0xf] %vm798_vm4, %v793_v5  ;;  %800 = vst.msk [vmem:[#allocation2] ss:$8 sm:$0xf0] %vm798_vm4, %v793_v5  ;;  %v5946_v5 = vpack.c.bf16 %v1287_v3, %v1285_v1 }
  0xfe   : > { %5945 = vmatpush1.bf16.msra.mxu0 %v5944_v4  ;;  %vm943_vm4 = vcmask 72704   ;;  %v1331_v61 = vld [vmem:[%s8932_s16 + $0x218] sm:$0xff] }
  0xff   : > { %5947 = vmatprep.subr.bf16.mxu0 %v5946_v5 }
 0x104   : > { %v816_v6 = vld [vmem:[#allocation2] ss:$8 sm:$0xf] }
 0x105   : > { %v817_v7 = vld [vmem:[#allocation2] ss:$8 sm:$0xf0] }
 0x106   : > { %v818_v8 = vor.u32 %v817_v7, %v816_v6  ;;  %v801_v9 = vld [vmem:[#allocation2] ss:$8 sm:$0xf] }
 0x107   : > { %v802_v10 = vld [vmem:[#allocation2] ss:$8 sm:$0xf0] }
 0x108   : > { %v803_v11 = vor.u32 %v802_v10, %v801_v9  ;;  %v829_v12 = vld [vmem:[#allocation2] ss:$8 sm:$0xf]  ;;  %820 = vrot.lane.b32.xlu1 %v818_v8, %s8960_s3  ;;  %s9010_s3 = smov 127  }
 0x109   : > { %v830_v13 = vld [vmem:[#allocation2] ss:$8 sm:$0xf0] }
 0x10a   : > { %v842_v14 = vld [vmem:[#allocation2] ss:$8 sm:$0xf]  ;;  %805 = vrot.lane.b32.xlu0 %v803_v11, %s8951_s0  ;;  %v831_v18 = vor.u32 %v830_v13, %v829_v12  ;;  %s6946_s0 = smov 112  }
 0x10b   : > { %v843_v15 = vld [vmem:[#allocation2] ss:$8 sm:$0xf0] }
 0x10c   : > { %v855_v16 = vld [vmem:[#allocation2] ss:$8 sm:$0xf]  ;;  %v844_v21 = vor.u32 %v843_v15, %v842_v14  ;;  %833 = vrot.lane.b32.xlu1 %v831_v18, %s8943_s1  ;;  %s9000_s1 = sld [smem:[#allocation18_spill]] }
 0x10d   : > { %v856_v17 = vld [vmem:[#allocation2] ss:$8 sm:$0xf0] }
 0x10e   : > { %v868_v19 = vld [vmem:[#allocation2] ss:$8 sm:$0xf]  ;;  %846 = vrot.lane.b32.xlu0 %v844_v21, %s6937_s6  ;;  %v857_v28 = vor.u32 %v856_v17, %v855_v16 }
 0x10f   : > { %v869_v20 = vld [vmem:[#allocation2] ss:$8 sm:$0xf0] }
 0x110   : > { %v881_v22 = vld [vmem:[#allocation2] ss:$8 sm:$0xf]  ;;  %v870_v29 = vor.u32 %v869_v20, %v868_v19  ;;  %859 = vrot.lane.b32.xlu1 %v857_v28, %s6938_s7 }
 0x111   : > { %v882_v23 = vld [vmem:[#allocation2] ss:$8 sm:$0xf0] }
 0x112   : > { %v894_v24 = vld [vmem:[#allocation2] ss:$8 sm:$0xf]  ;;  %872 = vrot.lane.b32.xlu0 %v870_v29, %s6939_s26  ;;  %v883_v30 = vor.u32 %v882_v23, %v881_v22 }
 0x113   : > { %v895_v25 = vld [vmem:[#allocation2] ss:$8 sm:$0xf0] }
 0x114   : > { %v907_v26 = vld [vmem:[#allocation2] ss:$8 sm:$0xf]  ;;  %v896_v31 = vor.u32 %v895_v25, %v894_v24  ;;  %885 = vrot.lane.b32.xlu1 %v883_v30, %s8945_s27  ;;  %s6955_s27 = smov 87  }
 0x115   : > { %v908_v27 = vld [vmem:[#allocation2] ss:$8 sm:$0xf0]  ;;  %1785 = vst [vmem:[#allocation2] sm:$0xff] %v6932_v0  ;;  %1787 = vst [vmem:[#allocation2 + $0x10] sm:$0xff] %v6932_v0 }
 0x116   : > { %1792 = vst.msk [vmem:[#allocation2 + $0x38] sm:$0xff] %vm8959_vm0, %v6932_v0  ;;  %2502 = vst [vmem:[#allocation2 + $0x8] sm:$0xff] %v6932_v0  ;;  %898 = vrot.lane.b32.xlu0 %v896_v31, %s8947_s28  ;;  %v909_v32 = vor.u32 %v908_v27, %v907_v26  ;;  %v1284_v6 = vld [vmem:[%s8932_s16 + $0xa0] sm:$0xff]  ;;  %v1286_v7 = vld [vmem:[%s8932_s16 + $0xb0] sm:$0xff]  ;;  %s6945_s28 = smov 113  }
 0x117   : > { %2186 = vst.msk [vmem:[#allocation2 + $0x38] sm:$0xff] %vm8959_vm0, %v6932_v0  ;;  %v1289_v8 = vld [vmem:[%s8932_s16 + $0xc8] sm:$0xff]  ;;  %v1291_v9 = vld [vmem:[%s8932_s16 + $0xd8] sm:$0xff]  ;;  %v5948_v10 = vpack.c.bf16 %v1286_v7, %v1284_v6  ;;  %v1288_v12 = vld [vmem:[%s8932_s16 + $0xc0] sm:$0xff] }
 0x118   : > { %2508 = vst.msk [vmem:[#allocation2 + $0x38] sm:$0xff] %vm8959_vm0, %v6932_v0  ;;  %911 = vrot.lane.b32.xlu1 %v909_v32, %s8949_s29  ;;  %v5950_v11 = vpack.c.bf16 %v1291_v9, %v1289_v8  ;;  %v1290_v13 = vld [vmem:[%s8932_s16 + $0xd0] sm:$0xff]  ;;  %v1293_v14 = vld [vmem:[%s8932_s16 + $0xe8] sm:$0xff]  ;;  %v1295_v15 = vld [vmem:[%s8932_s16 + $0xf8] sm:$0xff]  ;;  %s6947_s29 = smov 111  }
 0x119   : > { %2806 = vst.msk [vmem:[#allocation2 + $0x38] sm:$0xff] %vm8959_vm0, %v6932_v0  ;;  %5949 = vmatpush1.bf16.msra.mxu0 %v5948_v10  ;;  %v5952_v16 = vpack.c.bf16 %v1290_v13, %v1288_v12  ;;  %v5954_v17 = vpack.c.bf16 %v1295_v15, %v1293_v14  ;;  %v1292_v18 = vld [vmem:[%s8932_s16 + $0xe0] sm:$0xff]  ;;  %v1294_v19 = vld [vmem:[%s8932_s16 + $0xf0] sm:$0xff]  ;;  %v1297_v20 = vld [vmem:[%s8932_s16 + $0x108] sm:$0xff] }
 0x11a   : > { %3630 = vst.msk [vmem:[#allocation2 + $0x38] sm:$0xff] %vm8959_vm0, %v6932_v0  ;;  %940 = vperm.xlu0 %6754, %v937_v33   ;;  %5951 = vmatprep.subr.bf16.mxu0 %v5950_v11  ;;  %v1299_v21 = vld [vmem:[%s8932_s16 + $0x118] sm:$0xff]  ;;  %v5956_v22 = vpack.c.bf16 %v1294_v19, %v1292_v18  ;;  %v1296_v24 = vld [vmem:[%s8932_s16 + $0x100] sm:$0xff]  ;;  %v1298_v25 = vld [vmem:[%s8932_s16 + $0x110] sm:$0xff]  ;;  %vm2191_vm0 = vcmask 924928  }
 0x11b   : > { %v5958_v23 = vpack.c.bf16 %v1299_v21, %v1297_v20  ;;  %v1301_v26 = vld [vmem:[%s8932_s16 + $0x128] sm:$0xff]  ;;  %v1303_v27 = vld [vmem:[%s8932_s16 + $0x138] sm:$0xff]  ;;  %v5960_v28 = vpack.c.bf16 %v1298_v25, %v1296_v24  ;;  %v1300_v30 = vld [vmem:[%s8932_s16 + $0x120] sm:$0xff] }
 0x11c   : > { %v5962_v29 = vpack.c.bf16 %v1303_v27, %v1301_v26  ;;  %v1302_v31 = vld [vmem:[%s8932_s16 + $0x130] sm:$0xff]  ;;  %v1305_v32 = vld [vmem:[%s8932_s16 + $0x148] sm:$0xff]  ;;  %v1307_v33 = vld [vmem:[%s8932_s16 + $0x158] sm:$0xff] }
 0x11d   : > { %5953 = vmatpush1.bf16.msra.mxu0 %v5952_v16  ;;  %v5964_v34 = vpack.c.bf16 %v1302_v31, %v1300_v30  ;;  %v5966_v35 = vpack.c.bf16 %v1307_v33, %v1305_v32 }
 0x11e   : > { %5955 = vmatprep.subr.bf16.mxu0 %v5954_v17 }
 0x121   : > { %5957 = vmatpush1.bf16.msra.mxu0 %v5956_v22 }
 0x122   : > { %5959 = vmatprep.subr.bf16.mxu0 %v5958_v23 }
 0x125   : > { %5961 = vmatpush1.bf16.msra.mxu0 %v5960_v28 }
 0x126   : > { %5963 = vmatprep.subr.bf16.mxu0 %v5962_v29 }
 0x129   : > { %5965 = vmatpush1.bf16.msra.mxu0 %v5964_v34 }
 0x12a   : > { %5967 = vmatprep.subr.bf16.mxu0 %v5966_v35 }
 0x12d   : > { %5969 = vmatpush1.bf16.msra.mxu0 %v5968_v40  ;;  %v920_v40 = vld [vmem:[%s8998_s25] sm:$0xff]  ;;  %s8999_s25 = sld [smem:[#allocation19_spill]] }
 0x12e   : > { %5971 = vmatprep.subr.bf16.mxu0 %v5970_v41 }
 0x131   : > { %5973 = vmatpush1.bf16.msra.mxu0 %v5972_v46 }
 0x132   : > { %5975 = vmatprep.subr.bf16.mxu0 %v5974_v47 }
 0x135   : > { %5977 = vmatpush1.bf16.msra.mxu0 %v5976_v52 }
 0x136   : > { %5979 = vmatprep.subr.bf16.mxu0 %v5978_v53 }
 0x139   : > { %5981 = vmatpush1.bf16.msra.mxu0 %v5980_v58  ;;  %v5986_v58 = vpack.c.bf16 %v1327_v56, %v1325_v55  ;;  %v1359_v55 = vld [vmem:[%s8932_s16 + $0x2f8] sm:$0xff] }
 0x13a   : > { %5983 = vmatprep.subr.bf16.mxu0 %v5982_v59  ;;  %v1326_v59 = vld [vmem:[%s8932_s16 + $0x1f0] sm:$0xff] }
 0x13b   : > { %v5988_v60 = vpack.c.bf16 %v1326_v59, %v1324_v57  ;;  %v1358_v59 = vld [vmem:[%s8932_s16 + $0x2f0] sm:$0xff] }
 0x13d   : > { %5985 = vmatpush1.bf16.msra.mxu0 %v5984_v62 }
 0x13e   : > { %5987 = vmatprep.subr.bf16.mxu0 %v5986_v58  ;;  %v1356_v58 = vld [vmem:[%s8932_s16 + $0x2e0] sm:$0xff] }
 0x141   : > { %5989 = vmatpush1.bf16.msra.mxu0 %v5988_v60  ;;  %v1361_v60 = vld [vmem:[%s8932_s16 + $0x308] sm:$0xff] }
 0x17a   : > { %v821_v63 = vpop.permute.xlu1 %820 }
 0x17b   : > { %v822_v3 = vrot.slane %v821_v63, 1 }
 0x17c   : > { %v806_v4 = vpop.permute.xlu0 %805 }
 0x17d   : > { %v807_v5 = vrot.slane %v806_v4, 1  ;;  %v824_v6 = vsel %vm8958_vm5, %v821_v63, %v822_v3  ;;  %vm2000_vm5 = vcmask 588800  }
 0x17e   : > { %827 = vst.msk [vmem:[#allocation3 + $0x1] ss:$8 sm:$0xf] %vm7447_vm6, %v824_v6  ;;  %828 = vst.msk [vmem:[#allocation3 + $0x1] ss:$8 sm:$0xf0] %vm7447_vm6, %v824_v6  ;;  %v834_v8 = vpop.permute.xlu1 %833 }
 0x17f   : > { %v809_v7 = vsel %vm8957_vm7, %v806_v4, %v807_v5  ;;  %v835_v9 = vrot.slane %v834_v8, 1  ;;  %v1328_v5 = vld [vmem:[%s8932_s16 + $0x200] sm:$0xff]  ;;  %v1330_v6 = vld [vmem:[%s8932_s16 + $0x210] sm:$0xff]  ;;  %vm8969_vm7 = vcmask 646144  }
 0x180   : > { %814 = vst.msk [vmem:[#allocation3] ss:$8 sm:$0xf] %vm7447_vm6, %v809_v7  ;;  %815 = vst.msk [vmem:[#allocation3] ss:$8 sm:$0xf0] %vm7447_vm6, %v809_v7  ;;  %v847_v10 = vpop.permute.xlu0 %846 }
 0x181   : > { %v848_v11 = vrot.slane %v847_v10, 1  ;;  %v837_v12 = vsel %vm8956_vm8, %v834_v8, %v835_v9  ;;  %v1333_v8 = vld [vmem:[%s8932_s16 + $0x228] sm:$0xff]  ;;  %v1335_v9 = vld [vmem:[%s8932_s16 + $0x238] sm:$0xff]  ;;  %vm1949_vm8 = vcmask 654336  }
 0x182   : > { %840 = vst.msk [vmem:[#allocation3 + $0x2] ss:$8 sm:$0xf] %vm7447_vm6, %v837_v12  ;;  %841 = vst.msk [vmem:[#allocation3 + $0x2] ss:$8 sm:$0xf0] %vm7447_vm6, %v837_v12  ;;  %v860_v14 = vpop.permute.xlu1 %859  ;;  %v5992_v12 = vpack.c.bf16 %v1330_v6, %v1328_v5 }
 0x183   : > { %v850_v13 = vsel %vm849_vm9, %v847_v10, %v848_v11  ;;  %v861_v15 = vrot.slane %v860_v14, 1  ;;  %v1367_v5 = vld [vmem:[%s8932_s16 + $0x338] sm:$0xff] }
 0x184   : > { %853 = vst.msk [vmem:[#allocation3 + $0x3] ss:$8 sm:$0xf] %vm7447_vm6, %v850_v13  ;;  %854 = vst.msk [vmem:[#allocation3 + $0x3] ss:$8 sm:$0xf0] %vm7447_vm6, %v850_v13  ;;  %v873_v16 = vpop.permute.xlu0 %872 }
 0x185   : > { %v874_v17 = vrot.slane %v873_v16, 1  ;;  %v863_v18 = vsel %vm862_vm10, %v860_v14, %v861_v15  ;;  %v5994_v15 = vpack.c.bf16 %v1335_v9, %v1333_v8  ;;  %v1364_v8 = vld [vmem:[%s8932_s16 + $0x320] sm:$0xff]  ;;  %v1366_v9 = vld [vmem:[%s8932_s16 + $0x330] sm:$0xff] }
 0x186   : > { %866 = vst.msk [vmem:[#allocation3 + $0x4] ss:$8 sm:$0xf] %vm7447_vm6, %v863_v18  ;;  %867 = vst.msk [vmem:[#allocation3 + $0x4] ss:$8 sm:$0xf0] %vm7447_vm6, %v863_v18  ;;  %v886_v20 = vpop.permute.xlu1 %885 }
 0x187   : > { %v876_v19 = vsel %vm875_vm11, %v873_v16, %v874_v17  ;;  %v887_v21 = vrot.slane %v886_v20, 1  ;;  %v1332_v16 = vld [vmem:[%s8932_s16 + $0x220] sm:$0xff]  ;;  %v1334_v17 = vld [vmem:[%s8932_s16 + $0x230] sm:$0xff] }
 0x188   : > { %879 = vst.msk [vmem:[#allocation3 + $0x5] ss:$8 sm:$0xf] %vm7447_vm6, %v876_v19  ;;  %880 = vst.msk [vmem:[#allocation3 + $0x5] ss:$8 sm:$0xf0] %vm7447_vm6, %v876_v19  ;;  %v899_v22 = vpop.permute.xlu0 %898 }
 0x189   : > { %v900_v23 = vrot.slane %v899_v22, 1  ;;  %v889_v24 = vsel %vm8955_vm12, %v886_v20, %v887_v21  ;;  %v1337_v19 = vld [vmem:[%s8932_s16 + $0x248] sm:$0xff]  ;;  %v1339_v20 = vld [vmem:[%s8932_s16 + $0x258] sm:$0xff]  ;;  %vm1930_vm12 = vcmask 662528  }
 0x18a   : > { %892 = vst.msk [vmem:[#allocation3 + $0x6] ss:$8 sm:$0xf] %vm7447_vm6, %v889_v24  ;;  %893 = vst.msk [vmem:[#allocation3 + $0x6] ss:$8 sm:$0xf0] %vm7447_vm6, %v889_v24  ;;  %v912_v26 = vpop.permute.xlu1 %911 }
 0x18b   : > { %v902_v25 = vsel %vm8954_vm13, %v899_v22, %v900_v23  ;;  %v913_v27 = vrot.slane %v912_v26, 1  ;;  %v5996_v23 = vpack.c.bf16 %v1334_v17, %v1332_v16  ;;  %v1370_v16 = vld [vmem:[%s8932_s16 + $0x350] sm:$0xff]  ;;  %v1373_v17 = vld [vmem:[%s8932_s16 + $0x368] sm:$0xff]  ;;  %vm1857_vm13 = vcmask 908288  }
 0x18c   : > { %905 = vst.msk [vmem:[#allocation3 + $0x7] ss:$8 sm:$0xf] %vm7447_vm6, %v902_v25  ;;  %906 = vst.msk [vmem:[#allocation3 + $0x7] ss:$8 sm:$0xf0] %vm7447_vm6, %v902_v25  ;;  %v5998_v25 = vpack.c.bf16 %v1339_v20, %v1337_v19 }
 0x18d   : > { %v915_v28 = vsel %vm8953_vm14, %v912_v26, %v913_v27  ;;  %v1336_v26 = vld [vmem:[%s8932_s16 + $0x240] sm:$0xff]  ;;  %v1338_v27 = vld [vmem:[%s8932_s16 + $0x250] sm:$0xff]  ;;  %vm1838_vm14 = vcmask 916480  }
 0x18e   : > { %918 = vst.msk [vmem:[#allocation3 + $0x40] ss:$8 sm:$0xf] %vm7447_vm6, %v915_v28  ;;  %919 = vst.msk [vmem:[#allocation3 + $0x40] ss:$8 sm:$0xf0] %vm7447_vm6, %v915_v28 }
 0x18f   : > { %v1341_v28 = vld [vmem:[%s8932_s16 + $0x268] sm:$0xff]  ;;  %vm8968_vm6 = vcmask 31744  }
 0x193   : > { %v922_v29 = vld [vmem:[#allocation3 + $0x8] sm:$0xff]  ;;  %v921_v31 = vld [vmem:[#allocation3] sm:$0xff]  ;;  %v924_v37 = vld [vmem:[#allocation3 + $0x18] sm:$0xff] }
 0x194   : > { %v923_v42 = vld [vmem:[#allocation3 + $0x10] sm:$0xff]  ;;  %v926_v44 = vld [vmem:[#allocation3 + $0x28] sm:$0xff]  ;;  %v925_v48 = vld [vmem:[#allocation3 + $0x20] sm:$0xff] }
 0x195   : > { %v930_v32 = vld [vmem:[#allocation3 + $0x48] sm:$0x1]  ;;  %v929_v33 = vld [vmem:[#allocation3 + $0x40] sm:$0x1]  ;;  %v932_v34 = vld [vmem:[#allocation3 + $0x58] sm:$0x1] }
 0x196   : > { %v5902_v35 = vpack.c.bf16 %v930_v32, %v922_v29  ;;  %v5905_v36 = vpack.c.bf16 %v929_v33, %v921_v31  ;;  %v5908_v38 = vpack.c.bf16 %v932_v34, %v924_v37  ;;  %v931_v39 = vld [vmem:[#allocation3 + $0x50] sm:$0x1]  ;;  %v934_v41 = vld [vmem:[#allocation3 + $0x68] sm:$0x1]  ;;  %v933_v46 = vld [vmem:[#allocation3 + $0x60] sm:$0x1]  ;;  %v6000_v31 = vpack.c.bf16 %v1338_v27, %v1336_v26 }
 0x197   : > { %v5911_v43 = vpack.c.bf16 %v931_v39, %v923_v42  ;;  %v5914_v45 = vpack.c.bf16 %v934_v41, %v926_v44  ;;  %v936_v47 = vld [vmem:[#allocation3 + $0x78] sm:$0x1]  ;;  %v5917_v49 = vpack.c.bf16 %v933_v46, %v925_v48  ;;  %v935_v52 = vld [vmem:[#allocation3 + $0x70] sm:$0x1]  ;;  %v1340_v34 = vld [vmem:[%s8932_s16 + $0x260] sm:$0xff] }
 0x198   : > { %5904 = vmatprep.subr.msk.bf16.mxu1 %vm7497_vm2, %v5902_v35  ;;  %v928_v50 = vld [vmem:[#allocation3 + $0x38] sm:$0xff]  ;;  %v927_v53 = vld [vmem:[#allocation3 + $0x30] sm:$0xff]  ;;  %v1349_v42 = vld [vmem:[%s8932_s16 + $0x2a8] sm:$0xff] }
 0x199   : > { %5907 = vmatpush1.bf16.msk.msra.mxu1 %vm7497_vm2, %v5905_v36  ;;  %v5920_v51 = vpack.c.bf16 %v936_v47, %v928_v50  ;;  %v5923_v54 = vpack.c.bf16 %v935_v52, %v927_v53  ;;  %v7546_v63 = vpop.permute.xlu0 %940  ;;  %v1343_v29 = vld [vmem:[%s8932_s16 + $0x278] sm:$0xff]  ;;  %v1342_v35 = vld [vmem:[%s8932_s16 + $0x270] sm:$0xff]  ;;  %v1345_v36 = vld [vmem:[%s8932_s16 + $0x288] sm:$0xff] }
 0x19a   : > { %5910 = vmatprep.subr.msk.bf16.mxu1 %vm7497_vm2, %v5908_v38  ;;  %v6002_v33 = vpack.c.bf16 %v1343_v29, %v1341_v28  ;;  %v1347_v37 = vld [vmem:[%s8932_s16 + $0x298] sm:$0xff]  ;;  %v6004_v38 = vpack.c.bf16 %v1342_v35, %v1340_v34  ;;  %v1346_v41 = vld [vmem:[%s8932_s16 + $0x290] sm:$0xff]  ;;  %v1348_v46 = vld [vmem:[%s8932_s16 + $0x2a0] sm:$0xff] }
 0x19b   : > { %v6006_v39 = vpack.c.bf16 %v1347_v37, %v1345_v36  ;;  %v1350_v47 = vld [vmem:[%s8932_s16 + $0x2b0] sm:$0xff]  ;;  %v1353_v48 = vld [vmem:[%s8932_s16 + $0x2c8] sm:$0xff]  ;;  %v1352_v52 = vld [vmem:[%s8932_s16 + $0x2c0] sm:$0xff] }
 0x19c   : > { %5716 = vmatmul.mubr.msk.f32.vlgmr.msra.gmra.mrb[0].mxu1 %vm943_vm4, %v920_v40  ;;  %v6012_v50 = vpack.c.bf16 %v1350_v47, %v1348_v46  ;;  %v1354_v53 = vld [vmem:[%s8932_s16 + $0x2d0] sm:$0xff]  ;;  %v1379_v26 = vld [vmem:[%s8932_s16 + $0x398] sm:$0xff]  ;;  %v1376_v29 = vld [vmem:[%s8932_s16 + $0x380] sm:$0xff] }
 0x19d   : > { %5913 = vmatpush1.bf16.msk.msra.mxu1 %vm7497_vm2, %v5911_v43  ;;  %1107 = vmatprep.mubr.f32.mxu1 %v6932_v0  ;;  %v1351_v43 = vld [vmem:[%s8932_s16 + $0x2b8] sm:$0xff]  ;;  %v6016_v56 = vpack.c.bf16 %v1354_v53, %v1352_v52  ;;  %v1380_v37 = vld [vmem:[%s8932_s16 + $0x3a0] sm:$0xff] }
 0x19e   : > { %5916 = vmatprep.subr.msk.bf16.mxu1 %vm7497_vm2, %v5914_v45  ;;  %v6010_v45 = vpack.c.bf16 %v1351_v43, %v1349_v42  ;;  %v1383_v34 = vld [vmem:[%s8932_s16 + $0x3b8] sm:$0xff]  ;;  %v1384_v43 = vld [vmem:[%s8932_s16 + $0x3c0] sm:$0xff] }
 0x19f   : > { %v1391_v46 = vld [vmem:[%s8932_s16 + $0x3f8] sm:$0xff] }
 0x1a0   : > { %5719 = vmatmul.mubr.msk.f32.vlgmr.msra.gmra.mrb[2].mxu1 %vm943_vm4, %v920_v40  ;;  %v1395_v52 = vld [vmem:[%s8932_s16 + $0x418] sm:$0xff] }
 0x1a1   : > { %5919 = vmatpush1.bf16.msk.msra.mxu1 %vm7497_vm2, %v5917_v49  ;;  %1178 = vmatprep.mubr.f32.mxu1 %v6932_v0  ;;  %v1355_v49 = vld [vmem:[%s8932_s16 + $0x2d8] sm:$0xff] }
 0x1a2   : > { %5922 = vmatprep.subr.msk.bf16.mxu1 %vm7497_vm2, %v5920_v51  ;;  %v6014_v51 = vpack.c.bf16 %v1355_v49, %v1353_v48  ;;  %v1388_v49 = vld [vmem:[%s8932_s16 + $0x3e0] sm:$0xff] }
 0x1a4   : > { %5722 = vmatmul.mubr.msk.f32.vlgmr.msra.gmra.mrb[4].mxu1 %vm943_vm4, %v920_v40 }
 0x1a5   : > { %5925 = vmatpush1.bf16.msk.msra.mxu1 %vm7497_vm2, %v5923_v54  ;;  %1249 = vmatprep.mubr.f32.mxu1 %v6932_v0  ;;  %v1357_v54 = vld [vmem:[%s8932_s16 + $0x2e8] sm:$0xff]  ;;  %vm1803_vm2 = vcmask 1047808  }
 0x1a6   : > { %v6018_v57 = vpack.c.bf16 %v1359_v55, %v1357_v54 }
 0x1a8   : > { %5725 = vmatmul.mubr.msk.f32.vlgmr.msra.gmra.mrb[6].mxu1 %vm943_vm4, %v920_v40  ;;  %v1344_v40 = vld [vmem:[%s8932_s16 + $0x280] sm:$0xff]  ;;  %vm1819_vm4 = vcmask 924672  }
 0x1a9   : > { %2068 = vmatprep.mubr.f32.mxu1 %v6932_v0  ;;  %v1329_v0 = vld [vmem:[%s8932_s16 + $0x208] sm:$0xff]  ;;  %v6008_v44 = vpack.c.bf16 %v1346_v41, %v1344_v40  ;;  %v1387_v40 = vld [vmem:[%s8932_s16 + $0x3d8] sm:$0xff] }
 0x1aa   : > { %v5990_v62 = vpack.c.bf16 %v1331_v61, %v1329_v0  ;;  %v1363_v0 = vld [vmem:[%s8932_s16 + $0x318] sm:$0xff]  ;;  %v6020_v61 = vpack.c.bf16 %v1358_v59, %v1356_v58  ;;  %v1397_v59 = vld [vmem:[%s8932_s16 + $0x428] sm:$0xff] }
 0x1ac   : > { %5991 = vmatprep.subr.bf16.mxu0 %v5990_v62  ;;  %v6022_v62 = vpack.c.bf16 %v1363_v0, %v1361_v60 }
 0x26f   : > { %v1038_v1 = vpop.f32.mrb[0].mxu1 }
 0x270   : > { %v1040_v3 = vpop.f32.mrb[1].mxu1  ;;  %v1039_v4 = vadd.f32 %v1038_v1, %v7546_v63  ;;  %v1360_v1 = vld [vmem:[%s8932_s16 + $0x300] sm:$0xff] }
 0x271   : > { %v1041_v7 = vadd.f32 %v1040_v3, %v7546_v63  ;;  %v1362_v3 = vld [vmem:[%s8932_s16 + $0x310] sm:$0xff] }
 0x272   : > { %v1256_v14 = vmax.f32 %v1039_v4, 0.0  ;;  %v1365_v4 = vld [vmem:[%s8932_s16 + $0x328] sm:$0xff]  ;;  %v6024_v6 = vpack.c.bf16 %v1362_v3, %v1360_v1 }
 0x273   : > { %v7562_v10 = vpop.f32.mrb[2].mxu1  ;;  %v1257_v11 = vmax.f32 %v1041_v7, 0.0  ;;  %v6026_v7 = vpack.c.bf16 %v1367_v5, %v1365_v4  ;;  %v1401_v3 = vld [vmem:[%s8932_s16 + $0x448] sm:$0xff]  ;;  %v1403_v4 = vld [vmem:[%s8932_s16 + $0x458] sm:$0xff] }
 0x274   : > { %v1111_v13 = vpop.f32.mrb[3].mxu1  ;;  %v1110_v54 = vadd.f32 %v7562_v10, %v7546_v63  ;;  %v1399_v10 = vld [vmem:[%s8932_s16 + $0x438] sm:$0xff] }
 0x275   : > { %v1112_v18 = vadd.f32 %v1111_v13, %v7546_v63  ;;  %1565 = vmatprep.mubr.f32.mxu0 %v1257_v11  ;;  %v1369_v11 = vld [vmem:[%s8932_s16 + $0x348] sm:$0xff]  ;;  %v6028_v13 = vpack.c.bf16 %v1366_v9, %v1364_v8  ;;  %v1402_v8 = vld [vmem:[%s8932_s16 + $0x450] sm:$0xff] }
 0x276   : > { %1566 = vmatmul.mubr.f32.vlgmr.msra.gmra.mrb[0].mxu0 %v1256_v14  ;;  %v1258_v0 = vmax.f32 %v1110_v54, 0.0  ;;  %v1405_v9 = vld [vmem:[%s8932_s16 + $0x468] sm:$0xff]  ;;  %v1428_v54 = vld [vmem:[%s8932_s16 + $0x520] sm:$0xff] }
 0x277   : > { %v1259_v21 = vmax.f32 %v1112_v18, 0.0  ;;  %5993 = vmatpush1.bf16.msra.mxu0 %v5992_v12  ;;  %v7577_v22 = vpop.f32.mrb[4].mxu1  ;;  %v1371_v12 = vld [vmem:[%s8932_s16 + $0x358] sm:$0xff] }
 0x278   : > { %v7579_v24 = vpop.f32.mrb[5].mxu1  ;;  %5995 = vmatprep.subr.bf16.mxu0 %v5994_v15  ;;  %v6030_v14 = vpack.c.bf16 %v1371_v12, %v1369_v11  ;;  %v1368_v15 = vld [vmem:[%s8932_s16 + $0x340] sm:$0xff]  ;;  %v1375_v18 = vld [vmem:[%s8932_s16 + $0x378] sm:$0xff] }
 0x279   : > { %1636 = vmatprep.mubr.f32.mxu0 %v1259_v21  ;;  %v6032_v19 = vpack.c.bf16 %v1370_v16, %v1368_v15  ;;  %v6034_v20 = vpack.c.bf16 %v1375_v18, %v1373_v17  ;;  %v1372_v21 = vld [vmem:[%s8932_s16 + $0x360] sm:$0xff]  ;;  %v1183_v58 = vadd.f32 %v7579_v24, %v7546_v63  ;;  %v1398_v24 = vld [vmem:[%s8932_s16 + $0x430] sm:$0xff]  ;;  %v1407_v11 = vld [vmem:[%s8932_s16 + $0x478] sm:$0xff] }
 0x27a   : > { %v1406_v15 = vld [vmem:[%s8932_s16 + $0x470] sm:$0xff]  ;;  %v1409_v16 = vld [vmem:[%s8932_s16 + $0x488] sm:$0xff]  ;;  %v1411_v17 = vld [vmem:[%s8932_s16 + $0x498] sm:$0xff] }
 0x27b   : > { %5997 = vmatpush1.bf16.msra.mxu0 %v5996_v23  ;;  %v7593_v30 = vpop.f32.mrb[6].mxu1  ;;  %v1374_v23 = vld [vmem:[%s8932_s16 + $0x370] sm:$0xff]  ;;  %v1261_v1 = vmax.f32 %v1183_v58, 0.0 }
 0x27c   : > { %v7595_v32 = vpop.f32.mrb[7].mxu1  ;;  %5999 = vmatprep.subr.bf16.mxu0 %v5998_v25  ;;  %v1377_v25 = vld [vmem:[%s8932_s16 + $0x388] sm:$0xff]  ;;  %v6036_v27 = vpack.c.bf16 %v1374_v23, %v1372_v21  ;;  %v1410_v21 = vld [vmem:[%s8932_s16 + $0x490] sm:$0xff] }
 0x27d   : > { %v6038_v28 = vpack.c.bf16 %v1379_v26, %v1377_v25  ;;  %v1413_v23 = vld [vmem:[%s8932_s16 + $0x4a8] sm:$0xff]  ;;  %v1415_v25 = vld [vmem:[%s8932_s16 + $0x4b8] sm:$0xff] }
 0x27f   : > { %6001 = vmatpush1.bf16.msra.mxu0 %v6000_v31  ;;  %v1378_v31 = vld [vmem:[%s8932_s16 + $0x390] sm:$0xff] }
 0x280   : > { %6003 = vmatprep.subr.bf16.mxu0 %v6002_v33  ;;  %v1381_v33 = vld [vmem:[%s8932_s16 + $0x3a8] sm:$0xff]  ;;  %v6040_v35 = vpack.c.bf16 %v1378_v31, %v1376_v29  ;;  %v1414_v29 = vld [vmem:[%s8932_s16 + $0x4b0] sm:$0xff] }
 0x281   : > { %v6042_v36 = vpack.c.bf16 %v1383_v34, %v1381_v33  ;;  %v1417_v31 = vld [vmem:[%s8932_s16 + $0x4c8] sm:$0xff]  ;;  %v1419_v33 = vld [vmem:[%s8932_s16 + $0x4d8] sm:$0xff] }
 0x283   : > { %6005 = vmatpush1.bf16.msra.mxu0 %v6004_v38  ;;  %v1382_v38 = vld [vmem:[%s8932_s16 + $0x3b0] sm:$0xff] }
 0x284   : > { %6007 = vmatprep.subr.bf16.mxu0 %v6006_v39  ;;  %v1385_v39 = vld [vmem:[%s8932_s16 + $0x3c8] sm:$0xff]  ;;  %v6044_v41 = vpack.c.bf16 %v1382_v38, %v1380_v37  ;;  %v1418_v37 = vld [vmem:[%s8932_s16 + $0x4d0] sm:$0xff] }
 0x285   : > { %v6046_v42 = vpack.c.bf16 %v1387_v40, %v1385_v39  ;;  %v1421_v38 = vld [vmem:[%s8932_s16 + $0x4e8] sm:$0xff]  ;;  %v1423_v39 = vld [vmem:[%s8932_s16 + $0x4f8] sm:$0xff] }
 0x287   : > { %6009 = vmatpush1.bf16.msra.mxu0 %v6008_v44  ;;  %v1386_v44 = vld [vmem:[%s8932_s16 + $0x3d0] sm:$0xff] }
 0x288   : > { %6011 = vmatprep.subr.bf16.mxu0 %v6010_v45  ;;  %v1389_v45 = vld [vmem:[%s8932_s16 + $0x3e8] sm:$0xff]  ;;  %v6048_v47 = vpack.c.bf16 %v1386_v44, %v1384_v43  ;;  %v1422_v43 = vld [vmem:[%s8932_s16 + $0x4f0] sm:$0xff] }
 0x289   : > { %v6050_v48 = vpack.c.bf16 %v1391_v46, %v1389_v45  ;;  %v1425_v44 = vld [vmem:[%s8932_s16 + $0x508] sm:$0xff]  ;;  %v1427_v45 = vld [vmem:[%s8932_s16 + $0x518] sm:$0xff] }
 0x28b   : > { %6013 = vmatpush1.bf16.msra.mxu0 %v6012_v50  ;;  %v1390_v50 = vld [vmem:[%s8932_s16 + $0x3f0] sm:$0xff] }
 0x28c   : > { %6015 = vmatprep.subr.bf16.mxu0 %v6014_v51  ;;  %v1393_v51 = vld [vmem:[%s8932_s16 + $0x408] sm:$0xff]  ;;  %v6052_v53 = vpack.c.bf16 %v1390_v50, %v1388_v49  ;;  %v1426_v49 = vld [vmem:[%s8932_s16 + $0x510] sm:$0xff] }
 0x28d   : > { %v6054_v55 = vpack.c.bf16 %v1395_v52, %v1393_v51  ;;  %v1429_v50 = vld [vmem:[%s8932_s16 + $0x528] sm:$0xff]  ;;  %v1431_v51 = vld [vmem:[%s8932_s16 + $0x538] sm:$0xff] }
 0x28f   : > { %6017 = vmatpush1.bf16.msra.mxu0 %v6016_v56  ;;  %v1392_v56 = vld [vmem:[%s8932_s16 + $0x400] sm:$0xff] }
 0x290   : > { %6019 = vmatprep.subr.bf16.mxu0 %v6018_v57  ;;  %v1394_v57 = vld [vmem:[%s8932_s16 + $0x410] sm:$0xff] }
 0x291   : > { %v6056_v60 = vpack.c.bf16 %v1394_v57, %v1392_v56  ;;  %v1433_v56 = vld [vmem:[%s8932_s16 + $0x548] sm:$0xff]  ;;  %v1435_v57 = vld [vmem:[%s8932_s16 + $0x558] sm:$0xff] }
 0x293   : > { %6021 = vmatpush1.bf16.msra.mxu0 %v6020_v61  ;;  %v6058_v61 = vpack.c.bf16 %v1399_v10, %v1397_v59  ;;  %v6094_v59 = vpack.c.bf16 %v1435_v57, %v1433_v56  ;;  %v1432_v10 = vld [vmem:[%s8932_s16 + $0x540] sm:$0xff] }
 0x294   : > { %6023 = vmatprep.subr.bf16.mxu0 %v6022_v62  ;;  %v1396_v62 = vld [vmem:[%s8932_s16 + $0x420] sm:$0xff] }
 0x295   : > { %v6060_v5 = vpack.c.bf16 %v1398_v24, %v1396_v62  ;;  %v1468_v57 = vld [vmem:[%s8932_s16 + $0x660] sm:$0xff] }
 0x297   : > { %6025 = vmatpush1.bf16.msra.mxu0 %v6024_v6  ;;  %v6062_v6 = vpack.c.bf16 %v1403_v4, %v1401_v3  ;;  %v1438_v3 = vld [vmem:[%s8932_s16 + $0x570] sm:$0xff]  ;;  %v1441_v4 = vld [vmem:[%s8932_s16 + $0x588] sm:$0xff] }
 0x298   : > { %6027 = vmatprep.subr.bf16.mxu0 %v6026_v7  ;;  %v1400_v7 = vld [vmem:[%s8932_s16 + $0x440] sm:$0xff] }
 0x299   : > { %v6064_v12 = vpack.c.bf16 %v1402_v8, %v1400_v7  ;;  %v1440_v8 = vld [vmem:[%s8932_s16 + $0x580] sm:$0xff] }
 0x29b   : > { %6029 = vmatpush1.bf16.msra.mxu0 %v6028_v13  ;;  %v6066_v13 = vpack.c.bf16 %v1407_v11, %v1405_v9  ;;  %v1442_v9 = vld [vmem:[%s8932_s16 + $0x590] sm:$0xff]  ;;  %v1445_v11 = vld [vmem:[%s8932_s16 + $0x5a8] sm:$0xff] }
 0x29c   : > { %6031 = vmatprep.subr.bf16.mxu0 %v6030_v14  ;;  %v1404_v14 = vld [vmem:[%s8932_s16 + $0x460] sm:$0xff] }
 0x29d   : > { %v6068_v18 = vpack.c.bf16 %v1406_v15, %v1404_v14  ;;  %v1444_v15 = vld [vmem:[%s8932_s16 + $0x5a0] sm:$0xff] }
 0x29f   : > { %6033 = vmatpush1.bf16.msra.mxu0 %v6032_v19  ;;  %v6070_v19 = vpack.c.bf16 %v1411_v17, %v1409_v16  ;;  %v1446_v16 = vld [vmem:[%s8932_s16 + $0x5b0] sm:$0xff]  ;;  %v1449_v17 = vld [vmem:[%s8932_s16 + $0x5c8] sm:$0xff] }
 0x2a0   : > { %6035 = vmatprep.subr.bf16.mxu0 %v6034_v20  ;;  %v1408_v20 = vld [vmem:[%s8932_s16 + $0x480] sm:$0xff] }
 0x2a1   : > { %v6072_v26 = vpack.c.bf16 %v1410_v21, %v1408_v20  ;;  %v1448_v21 = vld [vmem:[%s8932_s16 + $0x5c0] sm:$0xff] }
 0x2a3   : > { %6037 = vmatpush1.bf16.msra.mxu0 %v6036_v27  ;;  %v6074_v27 = vpack.c.bf16 %v1415_v25, %v1413_v23  ;;  %v1450_v23 = vld [vmem:[%s8932_s16 + $0x5d0] sm:$0xff]  ;;  %v1453_v25 = vld [vmem:[%s8932_s16 + $0x5e8] sm:$0xff] }
 0x2a4   : > { %6039 = vmatprep.subr.bf16.mxu0 %v6038_v28  ;;  %v1412_v28 = vld [vmem:[%s8932_s16 + $0x4a0] sm:$0xff] }
 0x2a5   : > { %v6076_v34 = vpack.c.bf16 %v1414_v29, %v1412_v28  ;;  %v1452_v29 = vld [vmem:[%s8932_s16 + $0x5e0] sm:$0xff] }
 0x2a7   : > { %6041 = vmatpush1.bf16.msra.mxu0 %v6040_v35  ;;  %v6078_v35 = vpack.c.bf16 %v1419_v33, %v1417_v31  ;;  %v1454_v31 = vld [vmem:[%s8932_s16 + $0x5f0] sm:$0xff]  ;;  %v1457_v33 = vld [vmem:[%s8932_s16 + $0x608] sm:$0xff] }
 0x2a8   : > { %6043 = vmatprep.subr.bf16.mxu0 %v6042_v36  ;;  %v1416_v36 = vld [vmem:[%s8932_s16 + $0x4c0] sm:$0xff] }
 0x2a9   : > { %v6080_v40 = vpack.c.bf16 %v1418_v37, %v1416_v36  ;;  %v1181_v36 = vadd.f32 %v7577_v22, %v7546_v63  ;;  %v1463_v22 = vld [vmem:[%s8932_s16 + $0x638] sm:$0xff] }
 0x2ab   : > { %6045 = vmatpush1.bf16.msra.mxu0 %v6044_v41  ;;  %v6082_v41 = vpack.c.bf16 %v1423_v39, %v1421_v38  ;;  %v1456_v38 = vld [vmem:[%s8932_s16 + $0x600] sm:$0xff]  ;;  %v1458_v39 = vld [vmem:[%s8932_s16 + $0x610] sm:$0xff] }
 0x2ac   : > { %6047 = vmatprep.subr.bf16.mxu0 %v6046_v42  ;;  %v1420_v42 = vld [vmem:[%s8932_s16 + $0x4e0] sm:$0xff] }
 0x2ad   : > { %v6084_v46 = vpack.c.bf16 %v1422_v43, %v1420_v42  ;;  %v6120_v42 = vpack.c.bf16 %v1458_v39, %v1456_v38  ;;  %v1260_v43 = vmax.f32 %v1181_v36, 0.0 }
 0x2af   : > { %6049 = vmatpush1.bf16.msra.mxu0 %v6048_v47  ;;  %v6086_v47 = vpack.c.bf16 %v1427_v45, %v1425_v44  ;;  %v1460_v45 = vld [vmem:[%s8932_s16 + $0x620] sm:$0xff] }
 0x2b0   : > { %6051 = vmatprep.subr.bf16.mxu0 %v6050_v48  ;;  %v1424_v48 = vld [vmem:[%s8932_s16 + $0x500] sm:$0xff] }
 0x2b1   : > { %v6088_v52 = vpack.c.bf16 %v1426_v49, %v1424_v48  ;;  %v1467_v48 = vld [vmem:[%s8932_s16 + $0x658] sm:$0xff] }
 0x2b3   : > { %6053 = vmatpush1.bf16.msra.mxu0 %v6052_v53  ;;  %v6090_v53 = vpack.c.bf16 %v1431_v51, %v1429_v50  ;;  %v1464_v51 = vld [vmem:[%s8932_s16 + $0x640] sm:$0xff] }
 0x2b4   : > { %6055 = vmatprep.subr.bf16.mxu0 %v6054_v55  ;;  %v1430_v55 = vld [vmem:[%s8932_s16 + $0x530] sm:$0xff] }
 0x2b5   : > { %v6092_v58 = vpack.c.bf16 %v1430_v55, %v1428_v54  ;;  %v1471_v54 = vld [vmem:[%s8932_s16 + $0x678] sm:$0xff] }
 0x2b6   : > { %1637 = vmatmul.mubr.f32.vlgmr.msra.gmra.mrb[0].mxu0 %v1258_v0  ;;  %v1437_v0 = vld [vmem:[%s8932_s16 + $0x568] sm:$0xff] }
 0x2b7   : > { %6057 = vmatpush1.bf16.msra.mxu0 %v6056_v60  ;;  %1707 = vmatprep.mubr.f32.mxu0 %v1261_v1  ;;  %v1434_v60 = vld [vmem:[%s8932_s16 + $0x550] sm:$0xff]  ;;  %v1436_v1 = vld [vmem:[%s8932_s16 + $0x560] sm:$0xff] }
 0x2b8   : > { %6059 = vmatprep.subr.bf16.mxu0 %v6058_v61  ;;  %v1439_v61 = vld [vmem:[%s8932_s16 + $0x578] sm:$0xff]  ;;  %v6096_v62 = vpack.c.bf16 %v1434_v60, %v1432_v10 }
 0x2b9   : > { %v6098_v24 = vpack.c.bf16 %v1439_v61, %v1437_v0  ;;  %v1475_v10 = vld [vmem:[%s8932_s16 + $0x698] sm:$0xff]  ;;  %v1472_v61 = vld [vmem:[%s8932_s16 + $0x680] sm:$0xff] }
 0x2bb   : > { %6061 = vmatpush1.bf16.msra.mxu0 %v6060_v5  ;;  %v1443_v5 = vld [vmem:[%s8932_s16 + $0x598] sm:$0xff] }
 0x2bc   : > { %6063 = vmatprep.subr.bf16.mxu0 %v6062_v6  ;;  %v6100_v6 = vpack.c.bf16 %v1438_v3, %v1436_v1  ;;  %v6102_v7 = vpack.c.bf16 %v1443_v5, %v1441_v4  ;;  %v1479_v1 = vld [vmem:[%s8932_s16 + $0x6b8] sm:$0xff]  ;;  %v1476_v5 = vld [vmem:[%s8932_s16 + $0x6a0] sm:$0xff] }
 0x2bf   : > { %6065 = vmatpush1.bf16.msra.mxu0 %v6064_v12  ;;  %v1447_v12 = vld [vmem:[%s8932_s16 + $0x5b8] sm:$0xff] }
 0x2c0   : > { %6067 = vmatprep.subr.bf16.mxu0 %v6066_v13  ;;  %v6104_v13 = vpack.c.bf16 %v1442_v9, %v1440_v8  ;;  %v6106_v14 = vpack.c.bf16 %v1447_v12, %v1445_v11  ;;  %v1483_v8 = vld [vmem:[%s8932_s16 + $0x6d8] sm:$0xff]  ;;  %v1480_v12 = vld [vmem:[%s8932_s16 + $0x6c0] sm:$0xff] }
 0x2c3   : > { %6069 = vmatpush1.bf16.msra.mxu0 %v6068_v18  ;;  %v1451_v18 = vld [vmem:[%s8932_s16 + $0x5d8] sm:$0xff] }
 0x2c4   : > { %6071 = vmatprep.subr.bf16.mxu0 %v6070_v19  ;;  %v6108_v19 = vpack.c.bf16 %v1446_v16, %v1444_v15  ;;  %v6110_v20 = vpack.c.bf16 %v1451_v18, %v1449_v17  ;;  %v1487_v15 = vld [vmem:[%s8932_s16 + $0x6f8] sm:$0xff]  ;;  %v1484_v18 = vld [vmem:[%s8932_s16 + $0x6e0] sm:$0xff] }
 0x2c7   : > { %6073 = vmatpush1.bf16.msra.mxu0 %v6072_v26  ;;  %v1455_v26 = vld [vmem:[%s8932_s16 + $0x5f8] sm:$0xff] }
 0x2c8   : > { %6075 = vmatprep.subr.bf16.mxu0 %v6074_v27  ;;  %v6112_v27 = vpack.c.bf16 %v1450_v23, %v1448_v21  ;;  %v6114_v28 = vpack.c.bf16 %v1455_v26, %v1453_v25  ;;  %v1489_v21 = vld [vmem:[%s8932_s16 + $0x708] sm:$0xf]  ;;  %v1252_v23 = vadd.f32 %v7593_v30, %v7546_v63  ;;  %v1488_v25 = vld [vmem:[%s8932_s16 + $0x700] sm:$0xf] }
 0x2ca   : > { %v1262_v26 = vmax.f32 %v1252_v23, 0.0  ;;  %v2094_v23 = vld [vmem:[#allocation6 + $0x88] sm:$0xff] }
 0x2cb   : > { %6077 = vmatpush1.bf16.msra.mxu0 %v6076_v34  ;;  %v1459_v34 = vld [vmem:[%s8932_s16 + $0x618] sm:$0xff] }
 0x2cc   : > { %6079 = vmatprep.subr.bf16.mxu0 %v6078_v35  ;;  %v6116_v35 = vpack.c.bf16 %v1454_v31, %v1452_v29  ;;  %v6118_v37 = vpack.c.bf16 %v1459_v34, %v1457_v33  ;;  %v8060_v31 = vld [vmem:[#allocation2 + $0x8] sm:$0xff] }
 0x2cf   : > { %6081 = vmatpush1.bf16.msra.mxu0 %v6080_v40  ;;  %v1254_v40 = vadd.f32 %v7595_v32, %v7546_v63  ;;  %v1462_v32 = vld [vmem:[%s8932_s16 + $0x630] sm:$0xff] }
 0x2d0   : > { %6083 = vmatprep.subr.bf16.mxu0 %v6082_v41  ;;  %v1461_v41 = vld [vmem:[%s8932_s16 + $0x628] sm:$0xff]  ;;  %v6124_v49 = vpack.c.bf16 %v1462_v32, %v1460_v45 }
 0x2d1   : > { %v6122_v44 = vpack.c.bf16 %v1463_v22, %v1461_v41 }
 0x2d3   : > { %6085 = vmatpush1.bf16.msra.mxu0 %v6084_v46  ;;  %v1263_v46 = vmax.f32 %v1254_v40, 0.0 }
 0x2d4   : > { %6087 = vmatprep.subr.bf16.mxu0 %v6086_v47  ;;  %v1465_v47 = vld [vmem:[%s8932_s16 + $0x648] sm:$0xff] }
 0x2d5   : > { %v6126_v50 = vpack.c.bf16 %v1467_v48, %v1465_v47 }
 0x2d7   : > { %6089 = vmatpush1.bf16.msra.mxu0 %v6088_v52  ;;  %v1466_v52 = vld [vmem:[%s8932_s16 + $0x650] sm:$0xff] }
 0x2d8   : > { %6091 = vmatprep.subr.bf16.mxu0 %v6090_v53  ;;  %v1469_v53 = vld [vmem:[%s8932_s16 + $0x668] sm:$0xff]  ;;  %v6128_v55 = vpack.c.bf16 %v1466_v52, %v1464_v51 }
 0x2d9   : > { %v6130_v56 = vpack.c.bf16 %v1471_v54, %v1469_v53 }
 0x2db   : > { %6093 = vmatpush1.bf16.msra.mxu0 %v6092_v58  ;;  %v1470_v58 = vld [vmem:[%s8932_s16 + $0x670] sm:$0xff] }
 0x2dc   : > { %6095 = vmatprep.subr.bf16.mxu0 %v6094_v59  ;;  %v1473_v59 = vld [vmem:[%s8932_s16 + $0x688] sm:$0xff]  ;;  %v6132_v60 = vpack.c.bf16 %v1470_v58, %v1468_v57 }
 0x2dd   : > { %v6134_v0 = vpack.c.bf16 %v1475_v10, %v1473_v59 }
 0x2df   : > { %6097 = vmatpush1.bf16.msra.mxu0 %v6096_v62  ;;  %v1474_v62 = vld [vmem:[%s8932_s16 + $0x690] sm:$0xff] }
 0x2e0   : > { %6099 = vmatprep.subr.bf16.mxu0 %v6098_v24  ;;  %v1477_v24 = vld [vmem:[%s8932_s16 + $0x6a8] sm:$0xff]  ;;  %v6136_v3 = vpack.c.bf16 %v1474_v62, %v1472_v61 }
 0x2e1   : > { %v6138_v4 = vpack.c.bf16 %v1479_v1, %v1477_v24 }
 0x2e3   : > { %6101 = vmatpush1.bf16.msra.mxu0 %v6100_v6  ;;  %v1478_v6 = vld [vmem:[%s8932_s16 + $0x6b0] sm:$0xff] }
 0x2e4   : > { %6103 = vmatprep.subr.bf16.mxu0 %v6102_v7  ;;  %v1481_v7 = vld [vmem:[%s8932_s16 + $0x6c8] sm:$0xff]  ;;  %v6140_v9 = vpack.c.bf16 %v1478_v6, %v1476_v5 }
 0x2e5   : > { %v6142_v11 = vpack.c.bf16 %v1483_v8, %v1481_v7 }
 0x2e7   : > { %6105 = vmatpush1.bf16.msra.mxu0 %v6104_v13  ;;  %v1482_v13 = vld [vmem:[%s8932_s16 + $0x6d0] sm:$0xff] }
 0x2e8   : > { %6107 = vmatprep.subr.bf16.mxu0 %v6106_v14  ;;  %v1485_v14 = vld [vmem:[%s8932_s16 + $0x6e8] sm:$0xff]  ;;  %v6144_v16 = vpack.c.bf16 %v1482_v13, %v1480_v12 }
 0x2e9   : > { %v6146_v17 = vpack.c.bf16 %v1487_v15, %v1485_v14 }
 0x2eb   : > { %6109 = vmatpush1.bf16.msra.mxu0 %v6108_v19  ;;  %v1486_v19 = vld [vmem:[%s8932_s16 + $0x6f0] sm:$0xff] }
 0x2ec   : > { %6111 = vmatprep.subr.bf16.mxu0 %v6110_v20  ;;  %v6148_v20 = vpack.c.bf16 %v1486_v19, %v1484_v18 }
 0x2ef   : > { %6113 = vmatpush1.bf16.msra.mxu0 %v6112_v27 }
 0x2f0   : > { %6115 = vmatprep.subr.bf16.mxu0 %v6114_v28 }
 0x2f3   : > { %6117 = vmatpush1.bf16.msra.mxu0 %v6116_v35  ;;  %v1994_v35 = vld [vmem:[%s8999_s25] sm:$0xff]  ;;  %s6953_s25 = smov 106  }
 0x2f4   : > { %6119 = vmatprep.subr.bf16.mxu0 %v6118_v37 }
 0x2f6   : > { %1708 = vmatmul.mubr.f32.vlgmr.msra.gmra.mrb[0].mxu0 %v1260_v43 }
 0x2f7   : > { %6121 = vmatpush1.bf16.msra.mxu0 %v6120_v42  ;;  %5728 = vmatprep.mubr.msk.f32.mxu0 %vm8968_vm6, %v1263_v46 }
 0x2f8   : > { %6123 = vmatprep.subr.bf16.mxu0 %v6122_v44 }
 0x2fb   : > { %6125 = vmatpush1.bf16.msra.mxu0 %v6124_v49 }
 0x2fc   : > { %6127 = vmatprep.subr.bf16.mxu0 %v6126_v50 }
 0x2ff   : > { %6129 = vmatpush1.bf16.msra.mxu0 %v6128_v55 }
 0x300   : > { %6131 = vmatprep.subr.bf16.mxu0 %v6130_v56 }
 0x303   : > { %6133 = vmatpush1.bf16.msra.mxu0 %v6132_v60 }
 0x304   : > { %6135 = vmatprep.subr.bf16.mxu0 %v6134_v0 }
 0x307   : > { %6137 = vmatpush1.bf16.msra.mxu0 %v6136_v3 }
 0x308   : > { %6139 = vmatprep.subr.bf16.mxu0 %v6138_v4 }
 0x30b   : > { %6141 = vmatpush1.bf16.msra.mxu0 %v6140_v9 }
 0x30c   : > { %6143 = vmatprep.subr.bf16.mxu0 %v6142_v11 }
 0x30f   : > { %6145 = vmatpush1.bf16.msra.mxu0 %v6144_v16 }
 0x310   : > { %6147 = vmatprep.subr.bf16.mxu0 %v6146_v17 }
 0x313   : > { %6149 = vmatpush1.bf16.msra.mxu0 %v6148_v20 }
 0x314   : > { %5726 = vmatprep.subr.msk.mxu0 %vm1494_vm1, %v1489_v21  ;;  %v2093_v21 = vld [vmem:[#allocation6 + $0x80] sm:$0xff] }
 0x317   : > { %5727 = vmatpush1.msk.msra.mxu0 %vm1494_vm1, %v1488_v25 }
 0x318   : > { %1779 = vmatmul.mubr.f32.vlgmr.msra.gmra.mrb[0].mxu0 %v1262_v26  ;;  %v2077_v26 = vld [vmem:[#allocation6] sm:$0xff] }
 0x3eb   : > { %v1780_v27 = vpop.f32.mrb[0].mxu0 }
 0x3ec   : > { %1795 = vrot.lane.b32.xlu1 %v1780_v27, %s6933_s4  ;;  %v1782_v28 = vpop.f32.mrb[1].mxu0  ;;  %v2078_v27 = vld [vmem:[#allocation6 + $0x8] sm:$0xff] }
 0x3f0   : > { %1797 = vrot.lane.b32.xlu1 %v1782_v28, %s6933_s4  ;;  %v2095_v28 = vld [vmem:[#allocation6 + $0x90] sm:$0xff] }
 0x45e   : > { %v1796_v29 = vpop.permute.xlu1 %1795 }
 0x45f   : > { %1804 = vst.msk [vmem:[#allocation2] sm:$0xff] %vm1803_vm2, %v1796_v29 }
 0x462   : > { %v1798_v63 = vpop.permute.xlu1 %1797 }
 0x463   : > { %1806 = vst.msk [vmem:[#allocation2 + $0x10] sm:$0xff] %vm792_vm3, %v1798_v63  ;;  %v1799_v34 = vsel %vm792_vm3, %v1796_v29, %v1798_v63  ;;  %v2096_v29 = vld [vmem:[#allocation6 + $0x98] sm:$0xff]  ;;  %v6166_v63 = vpack.c.bf16 %v2094_v23, %v2093_v21  ;;  %v6951_v23 = vmov 0.0|0.0  }
 0x466   : > { %v1807_v30 = vld [vmem:[#allocation2] sm:$0xff] }
 0x467   : > { %1813 = vrot.lane.b32.xlu0 %v1807_v30, %s6945_s28  ;;  %1832 = vrot.lane.b32.xlu1 %v1807_v30, %s6946_s0  ;;  %2179 = vst [vmem:[#allocation2] sm:$0xff] %v8060_v31 }
 0x46a   : > { %v1809_v33 = vld [vmem:[#allocation2 + $0x10] sm:$0xff] }
 0x46b   : > { %1851 = vrot.lane.b32.xlu0 %v1807_v30, %s6947_s29  ;;  %1870 = vrot.lane.b32.xlu1 %v1807_v30, %s6937_s6  ;;  %2801 = vst [vmem:[#allocation2 + $0x10] sm:$0xff] %v8060_v31 }
 0x46f   : > { %1888 = vrot.lane.b32.xlu0 %v1807_v30, %s6938_s7  ;;  %1906 = vrot.lane.b32.xlu1 %v1807_v30, %s6939_s26 }
 0x473   : > { %1924 = vrot.lane.b32.xlu0 %v1807_v30, %s8966_s22  ;;  %1817 = vrot.lane.b32.xlu1 %v1809_v33, %s6945_s28 }
 0x477   : > { %1836 = vrot.lane.b32.xlu1 %v1809_v33, %s6946_s0  ;;  %1815 = vrot.lane.b32.xlu0 %v1799_v34, %s6945_s28 }
 0x47b   : > { %1855 = vrot.lane.b32.xlu1 %v1809_v33, %s6947_s29  ;;  %1834 = vrot.lane.b32.xlu0 %v1799_v34, %s6946_s0 }
 0x47f   : > { %1874 = vrot.lane.b32.xlu1 %v1809_v33, %s6937_s6  ;;  %1853 = vrot.lane.b32.xlu0 %v1799_v34, %s6947_s29 }
 0x483   : > { %1892 = vrot.lane.b32.xlu1 %v1809_v33, %s6938_s7  ;;  %1872 = vrot.lane.b32.xlu0 %v1799_v34, %s6937_s6 }
 0x487   : > { %1910 = vrot.lane.b32.xlu1 %v1809_v33, %s6939_s26  ;;  %1890 = vrot.lane.b32.xlu0 %v1799_v34, %s6938_s7 }
 0x48b   : > { %1928 = vrot.lane.b32.xlu1 %v1809_v33, %s8966_s22  ;;  %1908 = vrot.lane.b32.xlu0 %v1799_v34, %s6939_s26 }
 0x48f   : > { %1947 = vrot.lane.b32.xlu1 %v1809_v33, %s8964_s5  ;;  %1926 = vrot.lane.b32.xlu0 %v1799_v34, %s8966_s22  ;;  %s6958_s22 = smov 86  }
 0x493   : > { %1943 = vrot.lane.b32.xlu1 %v1807_v30, %s8964_s5  ;;  %1945 = vrot.lane.b32.xlu0 %v1799_v34, %s8964_s5  ;;  %s9001_s5 = sld [smem:[#allocation21_spill]] }
 0x497   : > { %1966 = vrot.lane.b32.xlu1 %v1809_v33, %s8962_s13  ;;  %1964 = vrot.lane.b32.xlu0 %v1799_v34, %s8962_s13  ;;  %v1975_v33 = vld [vmem:[%s9000_s1] sm:$0xff]  ;;  %v6168_v34 = vpack.c.bf16 %v2078_v27, %v2077_v26  ;;  %s6956_s1 = smov 88  }
 0x499   : > { %v2257_v26 = vld [vmem:[%s9001_s5] sm:$0xff]  ;;  %s9011_s5 = smov 125  }
 0x49b   : > { %1962 = vrot.lane.b32.xlu0 %v1807_v30, %s8962_s13  ;;  %1997 = vperm.xlu1 %6755, %v1994_v35   ;;  %s9002_s13 = sld [smem:[#allocation20_spill]] }
 0x4d9   : > { %v1814_v36 = vpop.permute.xlu0 %1813  ;;  %v1833_v37 = vpop.permute.xlu1 %1832 }
 0x4dd   : > { %v1852_v38 = vpop.permute.xlu0 %1851  ;;  %v1871_v39 = vpop.permute.xlu1 %1870 }
 0x4e1   : > { %v1889_v40 = vpop.permute.xlu0 %1888  ;;  %v1907_v41 = vpop.permute.xlu1 %1906 }
 0x4e5   : > { %v1925_v22 = vpop.permute.xlu0 %1924  ;;  %v1818_v42 = vpop.permute.xlu1 %1817 }
 0x4e9   : > { %v1816_v43 = vpop.permute.xlu0 %1815  ;;  %v1837_v44 = vpop.permute.xlu1 %1836 }
 0x4ea   : > { %v1820_v45 = vsel %vm1819_vm4, %v1814_v36, %v1816_v43  ;;  %v1821_v47 = vsel %vm1819_vm4, %v1816_v43, %v1818_v42  ;;  %v6170_v36 = vpack.c.bf16 %v2096_v29, %v2095_v28  ;;  %v2081_v42 = vld [vmem:[#allocation6 + $0x20] sm:$0xff]  ;;  %v2082_v43 = vld [vmem:[#allocation6 + $0x28] sm:$0xff] }
 0x4eb   : > { %1824 = vst [vmem:[#allocation3] sm:$0xff] %v1820_v45 }
 0x4ed   : > { %v1835_v32 = vpop.permute.xlu0 %1834  ;;  %v1856_v46 = vpop.permute.xlu1 %1855 }
 0x4ee   : > { %v1839_v48 = vsel %vm1838_vm14, %v1833_v37, %v1835_v32  ;;  %v1840_v49 = vsel %vm1838_vm14, %v1835_v32, %v1837_v44  ;;  %v2079_v37 = vld [vmem:[#allocation6 + $0x10] sm:$0xff]  ;;  %v6176_v32 = vpack.c.bf16 %v2082_v43, %v2081_v42 }
 0x4ef   : > { %1843 = vst [vmem:[#allocation3 + $0x40] sm:$0xff] %v1839_v48  ;;  %v6150_v50 = vpack.c.bf16 %v1840_v49, %v1821_v47  ;;  %v6152_v51 = vpack.c.bf16 %v1839_v48, %v1820_v45  ;;  %v2099_v44 = vld [vmem:[#allocation6 + $0xb0] sm:$0xff]  ;;  %v2100_v45 = vld [vmem:[#allocation6 + $0xb8] sm:$0xff]  ;;  %v2101_v49 = vld [vmem:[#allocation6 + $0xc0] sm:$0xff] }
 0x4f0   : > { %v2083_v47 = vld [vmem:[#allocation6 + $0x30] sm:$0xff]  ;;  %v2084_v48 = vld [vmem:[#allocation6 + $0x38] sm:$0xff] }
 0x4f1   : > { %v1854_v52 = vpop.permute.xlu0 %1853  ;;  %v1875_v53 = vpop.permute.xlu1 %1874  ;;  %6151 = vmatprep.subr.bf16.mxu1 %v6150_v50  ;;  %v2102_v50 = vld [vmem:[#allocation6 + $0xc8] sm:$0xff] }
 0x4f2   : > { %v1858_v54 = vsel %vm1857_vm13, %v1852_v38, %v1854_v52  ;;  %6153 = vmatpush1.bf16.msra.mxu1 %v6152_v51  ;;  %v1859_v57 = vsel %vm1857_vm13, %v1854_v52, %v1856_v46  ;;  %v2080_v38 = vld [vmem:[#allocation6 + $0x18] sm:$0xff]  ;;  %v6178_v46 = vpack.c.bf16 %v2100_v45, %v2099_v44  ;;  %v6180_v51 = vpack.c.bf16 %v2084_v48, %v2083_v47  ;;  %v2337_v47 = vld [vmem:[#allocation4] sm:$0xff]  ;;  %v2338_v48 = vld [vmem:[#allocation4 + $0x8] sm:$0xff] }
 0x4f3   : > { %1862 = vst [vmem:[#allocation3 + $0x80] sm:$0xff] %v1858_v54  ;;  %v6182_v52 = vpack.c.bf16 %v2102_v50, %v2101_v49  ;;  %v2247_v49 = vld [vmem:[%s9002_s13] sm:$0xff]  ;;  %v6211_v50 = vpack.c.bf16 %v2338_v48, %v2337_v47  ;;  %s9004_s13 = smov 81  }
 0x4f5   : > { %v1873_v55 = vpop.permute.xlu0 %1872  ;;  %v1893_v56 = vpop.permute.xlu1 %1892 }
 0x4f6   : > { %v1876_v58 = vsel %vm849_vm9, %v1871_v39, %v1873_v55  ;;  %v1877_v59 = vsel %vm849_vm9, %v1873_v55, %v1875_v53  ;;  %v2097_v39 = vld [vmem:[#allocation6 + $0xa0] sm:$0xff]  ;;  %v2103_v55 = vld [vmem:[#allocation6 + $0xd0] sm:$0xff] }
 0x4f7   : > { %1880 = vst [vmem:[#allocation3 + $0xc0] sm:$0xff] %v1876_v58  ;;  %v6154_v10 = vpack.c.bf16 %v1877_v59, %v1859_v57  ;;  %v6156_v60 = vpack.c.bf16 %v1876_v58, %v1858_v54  ;;  %v2085_v53 = vld [vmem:[#allocation6 + $0x40] sm:$0xff]  ;;  %v2086_v54 = vld [vmem:[#allocation6 + $0x48] sm:$0xff]  ;;  %v2087_v59 = vld [vmem:[#allocation6 + $0x50] sm:$0xff] }
 0x4f8   : > { %v6184_v57 = vpack.c.bf16 %v2086_v54, %v2085_v53  ;;  %v2340_v53 = vld [vmem:[#allocation4 + $0x18] sm:$0xff] }
 0x4f9   : > { %v1891_v0 = vpop.permute.xlu0 %1890  ;;  %v1911_v61 = vpop.permute.xlu1 %1910  ;;  %6155 = vmatprep.subr.bf16.mxu1 %v6154_v10  ;;  %v2088_v10 = vld [vmem:[#allocation6 + $0x58] sm:$0xff] }
 0x4fa   : > { %v1894_v62 = vsel %vm862_vm10, %v1889_v40, %v1891_v0  ;;  %6157 = vmatpush1.bf16.msra.mxu1 %v6156_v60  ;;  %v1895_v3 = vsel %vm862_vm10, %v1891_v0, %v1893_v56  ;;  %v2098_v40 = vld [vmem:[#allocation6 + $0xa8] sm:$0xff]  ;;  %v2104_v56 = vld [vmem:[#allocation6 + $0xd8] sm:$0xff]  ;;  %v2105_v60 = vld [vmem:[#allocation6 + $0xe0] sm:$0xff] }
 0x4fb   : > { %1898 = vst [vmem:[#allocation3 + $0x100] sm:$0xff] %v1894_v62  ;;  %v6186_v58 = vpack.c.bf16 %v2104_v56, %v2103_v55  ;;  %v2106_v0 = vld [vmem:[#allocation6 + $0xe8] sm:$0xff]  ;;  %v2342_v56 = vld [vmem:[#allocation4 + $0x28] sm:$0xff] }
 0x4fc   : > { %v2341_v55 = vld [vmem:[#allocation4 + $0x20] sm:$0xff] }
 0x4fd   : > { %v1909_v24 = vpop.permute.xlu0 %1908  ;;  %v1929_v1 = vpop.permute.xlu1 %1928 }
 0x4fe   : > { %v1912_v4 = vsel %vm875_vm11, %v1907_v41, %v1909_v24  ;;  %v1913_v5 = vsel %vm875_vm11, %v1909_v24, %v1911_v61  ;;  %v6172_v41 = vpack.c.bf16 %v2080_v38, %v2079_v37  ;;  %v6188_v61 = vpack.c.bf16 %v2088_v10, %v2087_v59  ;;  %v2089_v24 = vld [vmem:[#allocation6 + $0x60] sm:$0xff] }
 0x4ff   : > { %1916 = vst [vmem:[#allocation3 + $0x140] sm:$0xff] %v1912_v4  ;;  %v6158_v6 = vpack.c.bf16 %v1913_v5, %v1895_v3  ;;  %v6160_v7 = vpack.c.bf16 %v1912_v4, %v1894_v62  ;;  %v6190_v62 = vpack.c.bf16 %v2106_v0, %v2105_v60  ;;  %v2107_v4 = vld [vmem:[#allocation6 + $0xf0] sm:$0xff]  ;;  %v2108_v5 = vld [vmem:[#allocation6 + $0xf8] sm:$0xff]  ;;  %v2344_v59 = vld [vmem:[#allocation4 + $0x38] sm:$0xff] }
 0x500   : > { %v2345_v60 = vld [vmem:[#allocation4 + $0x40] sm:$0xff]  ;;  %v2346_v0 = vld [vmem:[#allocation4 + $0x48] sm:$0xff] }
 0x501   : > { %v1927_v8 = vpop.permute.xlu0 %1926  ;;  %v1948_v9 = vpop.permute.xlu1 %1947  ;;  %6159 = vmatprep.subr.bf16.mxu1 %v6158_v6  ;;  %v2091_v6 = vld [vmem:[#allocation6 + $0x70] sm:$0xff] }
 0x502   : > { %v1931_v11 = vsel %vm1930_vm12, %v1925_v22, %v1927_v8  ;;  %6161 = vmatpush1.bf16.msra.mxu1 %v6160_v7  ;;  %v1932_v14 = vsel %vm1930_vm12, %v1927_v8, %v1929_v1  ;;  %v6174_v22 = vpack.c.bf16 %v2098_v40, %v2097_v39  ;;  %v2090_v1 = vld [vmem:[#allocation6 + $0x68] sm:$0xff]  ;;  %v6194_v7 = vpack.c.bf16 %v2108_v5, %v2107_v4  ;;  %v2092_v8 = vld [vmem:[#allocation6 + $0x78] sm:$0xff] }
 0x503   : > { %1935 = vst [vmem:[#allocation3 + $0x180] sm:$0xff] %v1931_v11  ;;  %v6192_v3 = vpack.c.bf16 %v2090_v1, %v2089_v24  ;;  %v2426_v24 = vld [vmem:[%s8934_s18] sm:$0xff]  ;;  %v2427_v1 = vld [vmem:[%s8934_s18 + $0x8] sm:$0xff] }
 0x505   : > { %v1946_v12 = vpop.permute.xlu0 %1945  ;;  %v1944_v13 = vpop.permute.xlu1 %1943 }
 0x506   : > { %v1951_v15 = vsel %vm1949_vm8, %v1946_v12, %v1948_v9  ;;  %v1950_v16 = vsel %vm1949_vm8, %v1944_v13, %v1946_v12  ;;  %v6196_v9 = vpack.c.bf16 %v2092_v8, %v2091_v6 }
 0x507   : > { %1954 = vst [vmem:[#allocation3 + $0x1c0] sm:$0xff] %v1950_v16  ;;  %v6162_v17 = vpack.c.bf16 %v1951_v15, %v1932_v14  ;;  %v6164_v18 = vpack.c.bf16 %v1950_v16, %v1931_v11 }
 0x509   : > { %v1965_v19 = vpop.permute.xlu0 %1964  ;;  %v1967_v20 = vpop.permute.xlu1 %1966  ;;  %6163 = vmatprep.subr.bf16.mxu1 %v6162_v17 }
 0x50a   : > { %v1970_v25 = vsel %vm8969_vm7, %v1965_v19, %v1967_v20  ;;  %6165 = vmatpush1.bf16.msra.mxu1 %v6164_v18 }
 0x50b   : > { %2020 = vmatprep.subr.mxu1 %v1970_v25 }
 0x50d   : > { %v1963_v30 = vpop.permute.xlu0 %1962 }
 0x50e   : > { %v1969_v35 = vsel %vm8969_vm7, %v1963_v30, %v1965_v19  ;;  %vm2599_vm7 = vcmask 695296  }
 0x50f   : > { %1973 = vst [vmem:[#allocation3 + $0x200] sm:$0xff] %v1969_v35  ;;  %2021 = vmatpush1.msra.mxu1 %v1969_v35 }
 0x510   : > { %5729 = vmatmul.mubr.msk.f32.vlgmr.msra.gmra.mrb[8].mxu1 %vm2000_vm5, %v1975_v33  ;;  %6167 = vmatprep.subr.bf16.mxu1 %v6166_v63 }
 0x511   : > { %6169 = vmatpush3.bf16.msra.mxu1 %v6168_v34 }
 0x512   : > { %6171 = vmatprep.subr.bf16.mxu1 %v6170_v36 }
 0x515   : > { %6173 = vmatpush3.bf16.msra.mxu1 %v6172_v41 }
 0x516   : > { %6175 = vmatprep.subr.bf16.mxu1 %v6174_v22 }
 0x519   : > { %6177 = vmatpush3.bf16.msra.mxu1 %v6176_v32 }
 0x51a   : > { %6179 = vmatprep.subr.bf16.mxu1 %v6178_v46  ;;  %v1998_v11 = vpop.permute.xlu1 %1997 }
 0x51d   : > { %6181 = vmatpush3.bf16.msra.mxu1 %v6180_v51 }
 0x51e   : > { %6183 = vmatprep.subr.bf16.mxu1 %v6182_v52  ;;  %v2339_v52 = vld [vmem:[#allocation4 + $0x10] sm:$0xff] }
 0x51f   : > { %v6214_v54 = vpack.c.bf16 %v2340_v53, %v2339_v52  ;;  %v2694_v53 = vld [vmem:[#allocation8 + $0x8] sm:$0xff] }
 0x521   : > { %6185 = vmatpush3.bf16.msra.mxu1 %v6184_v57  ;;  %v6217_v57 = vpack.c.bf16 %v2342_v56, %v2341_v55  ;;  %v2693_v55 = vld [vmem:[#allocation8] sm:$0xff]  ;;  %v2695_v56 = vld [vmem:[#allocation8 + $0x10] sm:$0xff] }
 0x522   : > { %6187 = vmatprep.subr.bf16.mxu1 %v6186_v58  ;;  %v2343_v58 = vld [vmem:[#allocation4 + $0x30] sm:$0xff] }
 0x523   : > { %v6220_v10 = vpack.c.bf16 %v2344_v59, %v2343_v58  ;;  %v2700_v58 = vld [vmem:[#allocation8 + $0x38] sm:$0xff] }
 0x525   : > { %6189 = vmatpush3.bf16.msra.mxu1 %v6188_v61  ;;  %v6223_v61 = vpack.c.bf16 %v2346_v0, %v2345_v60 }
 0x526   : > { %6191 = vmatprep.subr.bf16.mxu1 %v6190_v62  ;;  %v2347_v62 = vld [vmem:[#allocation4 + $0x50] sm:$0x1] }
 0x529   : > { %6193 = vmatpush3.bf16.msra.mxu1 %v6192_v3 }
 0x52a   : > { %6195 = vmatprep.subr.bf16.mxu1 %v6194_v7  ;;  %v6226_v7 = vpack.c.bf16 %v2427_v1, %v2426_v24  ;;  %v2702_v24 = vld [vmem:[#allocation8 + $0x48] sm:$0xff]  ;;  %v2704_v1 = vld [vmem:[#allocation8 + $0x58] sm:$0xff] }
 0x52d   : > { %6197 = vmatpush3.bf16.msra.mxu1 %v6196_v9 }
 0x52e   : > { %6198 = vmatprep.subr.bf16.mxu1 %v6951_v23 }
 0x5e3   : > { %v2070_v12 = vpop.f32.mrb[8].mxu1 }
 0x5e4   : > { %v2071_v13 = vadd.f32 %v2070_v12, %v1998_v11  ;;  %v2072_v14 = vpop.f32.mrb[9].mxu1 }
 0x5e5   : > { %v2073_v15 = vadd.f32 %v2072_v14, %v1998_v11 }
 0x5e6   : > { %v2075_v17 = vmax.f32 %v2071_v13, 0.0 }
 0x5e7   : > { %v2076_v16 = vmax.f32 %v2073_v15, 0.0 }
 0x5e9   : > { %2173 = vmatprep.mubr.f32.mxu1 %v2076_v16 }
 0x5ea   : > { %2174 = vmatmul.mubr.f32.vlgmr.msra.gmra.mrb[10].mxu1 %v2075_v17  ;;  %v2613_v17 = vld [vmem:[%s8924_s8] sm:$0xff] }
 0x6bd   : > { %v5790_v18 = vpop.f32.mrb[10].mxu1 }
 0x6be   : > { %v5791_v19 = vpop.f32.mrb[11].mxu1 }
 0x6bf   : > { %v5792_v20 = vadd.f32 %v5791_v19, %v5790_v18 }
 0x6c1   : > { %2188 = vrot.lane.b32.xlu0 %v5792_v20, %s6933_s4 }
 0x733   : > { %v2189_v21 = vpop.permute.xlu0 %2188 }
 0x734   : > { %2192 = vst.msk [vmem:[#allocation2] sm:$0xff] %vm2191_vm0, %v2189_v21  ;;  %vm6957_vm0 = vmmov 0  }
 0x735   : > { %5846 = vmatprep.mubr.msk.f32.mxu1 %vm6957_vm0, %v8060_v31 }
 0x73b   : > { %v2199_v25 = vld [vmem:[#allocation2] sm:$0xff] }
 0x73c   : > { %2201 = vrot.lane.b32.xlu0 %v2199_v25, %s6952_s2  ;;  %2195 = vrot.lane.b32.xlu1 %v2199_v25, %s6953_s25  ;;  %2501 = vst [vmem:[#allocation2] sm:$0xff] %v8060_v31 }
 0x740   : > { %2213 = vrot.lane.b32.xlu0 %v2199_v25, %s6937_s6  ;;  %2207 = vrot.lane.b32.xlu1 %v2199_v25, %s6954_s14 }
 0x744   : > { %2225 = vrot.lane.b32.xlu0 %v2199_v25, %s6939_s26  ;;  %2219 = vrot.lane.b32.xlu1 %v2199_v25, %s6938_s7 }
 0x748   : > { %2237 = vrot.lane.b32.xlu0 %v2199_v25, %s6955_s27  ;;  %2231 = vrot.lane.b32.xlu1 %v2199_v25, %s6956_s1  ;;  %s777_s1 = scalar_lea.vmem %s8939_s23, %s5710_s24  ;;  %s6959_s24 = smov 107  }
 0x74c   : > { %2260 = vperm.xlu0 %6754, %v2257_v26   ;;  %2243 = vrot.lane.b32.xlu1 %v2199_v25, %s6958_s22 }
 0x7ae   : > { %v2202_v27 = vpop.permute.xlu0 %2201  ;;  %v2196_v28 = vpop.permute.xlu1 %2195 }
 0x7af   : > { %2204 = vst.msk [vmem:[#allocation3 + $0x40] sm:$0xff] %vm1930_vm12, %v2202_v27  ;;  %2198 = vst.msk [vmem:[#allocation3] sm:$0xff] %vm1930_vm12, %v2196_v28 }
 0x7b2   : > { %v2214_v29 = vpop.permute.xlu0 %2213  ;;  %v2208_v63 = vpop.permute.xlu1 %2207 }
 0x7b3   : > { %2216 = vst.msk [vmem:[#allocation3 + $0xc0] sm:$0xff] %vm1930_vm12, %v2214_v29  ;;  %2210 = vst.msk [vmem:[#allocation3 + $0x80] sm:$0xff] %vm1930_vm12, %v2208_v63 }
 0x7b6   : > { %v2226_v30 = vpop.permute.xlu0 %2225  ;;  %v2220_v33 = vpop.permute.xlu1 %2219  ;;  %v2248_v34 = vld [vmem:[#allocation3] sm:$0xff] }
 0x7b7   : > { %v2249_v35 = vld [vmem:[#allocation3 + $0x40] sm:$0xff]  ;;  %2228 = vst.msk [vmem:[#allocation3 + $0x140] sm:$0xff] %vm1930_vm12, %v2226_v30  ;;  %2222 = vst.msk [vmem:[#allocation3 + $0x100] sm:$0xff] %vm1930_vm12, %v2220_v33 }
 0x7b8   : > { %v6199_v36 = vpack.c.bf16 %v2249_v35, %v2248_v34 }
 0x7ba   : > { %6200 = vmatpush3.bf16.msra.mxu1 %v6199_v36  ;;  %v2238_v37 = vpop.permute.xlu0 %2237  ;;  %v2232_v38 = vpop.permute.xlu1 %2231  ;;  %v2250_v39 = vld [vmem:[#allocation3 + $0x80] sm:$0xff] }
 0x7bb   : > { %6201 = vmatprep.subr.bf16.mxu1 %v6951_v23  ;;  %v2251_v40 = vld [vmem:[#allocation3 + $0xc0] sm:$0xff]  ;;  %2240 = vst.msk [vmem:[#allocation3 + $0x1c0] sm:$0xff] %vm1930_vm12, %v2238_v37  ;;  %2234 = vst.msk [vmem:[#allocation3 + $0x180] sm:$0xff] %vm1930_vm12, %v2232_v38 }
 0x7bc   : > { %v6202_v41 = vpack.c.bf16 %v2251_v40, %v2250_v39 }
 0x7be   : > { %6203 = vmatpush3.bf16.msra.mxu1 %v6202_v41  ;;  %v2244_v22 = vpop.permute.xlu1 %2243  ;;  %v2252_v42 = vld [vmem:[#allocation3 + $0x100] sm:$0xff] }
 0x7bf   : > { %6204 = vmatprep.subr.bf16.mxu1 %v6951_v23  ;;  %v2253_v43 = vld [vmem:[#allocation3 + $0x140] sm:$0xff]  ;;  %2246 = vst.msk [vmem:[#allocation3 + $0x200] sm:$0xff] %vm1930_vm12, %v2244_v22 }
 0x7c0   : > { %v6205_v44 = vpack.c.bf16 %v2253_v43, %v2252_v42 }
 0x7c2   : > { %6206 = vmatpush3.bf16.msra.mxu1 %v6205_v44  ;;  %v2254_v45 = vld [vmem:[#allocation3 + $0x180] sm:$0xff] }
 0x7c3   : > { %6207 = vmatprep.subr.bf16.mxu1 %v6951_v23  ;;  %v2255_v32 = vld [vmem:[#allocation3 + $0x1c0] sm:$0xff] }
 0x7c4   : > { %v6208_v46 = vpack.c.bf16 %v2255_v32, %v2254_v45 }
 0x7c6   : > { %6209 = vmatpush3.bf16.msra.mxu1 %v6208_v46  ;;  %v2256_v51 = vld [vmem:[#allocation3 + $0x200] sm:$0xff] }
 0x7c7   : > { %5844 = vmatprep.subr.mxu1 %v8060_v31 }
 0x7ca   : > { %5845 = vmatpush3.msra.mxu1 %v2256_v51 }
 0x7cb   : > { %5847 = vmatmul.mubr.msk.f32.vlgmr.msra.gmra.mrb[12].mxu1 %vm2000_vm5, %v2247_v49  ;;  %6210 = vmatprep.subr.bf16.mxu1 %v6951_v23  ;;  %v2261_v3 = vpop.permute.xlu0 %2260 }
 0x7cc   : > { %6212 = vmatpush3.bf16.msra.mxu1 %v6211_v50  ;;  %5871 = vmatprep.mubr.msk.f32.mxu1 %vm6957_vm0, %v8060_v31 }
 0x7cd   : > { %6213 = vmatprep.subr.bf16.mxu1 %v6951_v23 }
 0x7d0   : > { %6215 = vmatpush3.bf16.msra.mxu1 %v6214_v54  ;;  %v2696_v54 = vld [vmem:[#allocation8 + $0x18] sm:$0xff] }
 0x7d1   : > { %6216 = vmatprep.subr.bf16.mxu1 %v6951_v23  ;;  %v6240_v59 = vpack.c.bf16 %v2696_v54, %v2694_v53  ;;  %v3111_v54 = vld [vmem:[#allocation9 + $0xe0] sm:$0xff] }
 0x7d4   : > { %6218 = vmatpush3.bf16.msra.mxu1 %v6217_v57  ;;  %v2698_v57 = vld [vmem:[#allocation8 + $0x28] sm:$0xff] }
 0x7d5   : > { %6219 = vmatprep.subr.bf16.mxu1 %v6951_v23  ;;  %v6244_v0 = vpack.c.bf16 %v2700_v58, %v2698_v57  ;;  %v3128_v57 = vld [vmem:[#allocation9 + $0x168] sm:$0xff]  ;;  %v3119_v58 = vld [vmem:[#allocation9 + $0x120] sm:$0xff] }
 0x7d8   : > { %6221 = vmatpush3.bf16.msra.mxu1 %v6220_v10 }
 0x7d9   : > { %6222 = vmatprep.subr.bf16.mxu1 %v6951_v23 }
 0x7dc   : > { %6224 = vmatpush3.bf16.msra.mxu1 %v6223_v61  ;;  %v2697_v61 = vld [vmem:[#allocation8 + $0x20] sm:$0xff] }
 0x7dd   : > { %5869 = vmatprep.subr.mxu1 %v8060_v31 }
 0x7e0   : > { %5870 = vmatpush3.msk.msra.mxu1 %vm947_vm15, %v2347_v62  ;;  %vm2424_vm15 = vcmask 130048   ;;  %v2699_v62 = vld [vmem:[#allocation8 + $0x30] sm:$0xff] }
 0x7e1   : > { %6225 = vmatprep.subr.bf16.mxu1 %v6951_v23 }
 0x89e   : > { %v2332_v4 = vpop.f32.mrb[12].mxu1 }
 0x89f   : > { %v2333_v5 = vadd.f32 %v2332_v4, %v2261_v3  ;;  %v5848_v6 = vpop.f32.mrb[13].mxu1  ;;  %v6246_v3 = vpack.c.bf16 %v2699_v62, %v2697_v61  ;;  %v6248_v4 = vpack.c.bf16 %v2704_v1, %v2702_v24  ;;  %v3135_v62 = vld [vmem:[#allocation9 + $0x1a0] sm:$0xff]  ;;  %v3152_v1 = vld [vmem:[#allocation9 + $0x228] sm:$0xff] }
 0x8a0   : > { %v2703_v6 = vld [vmem:[#allocation8 + $0x50] sm:$0xff] }
 0x8a1   : > { %v2336_v8 = vmax.f32 %v2333_v5, 0.0  ;;  %v2701_v5 = vld [vmem:[#allocation8 + $0x40] sm:$0xff]  ;;  %v3143_v24 = vld [vmem:[#allocation9 + $0x1e0] sm:$0xff] }
 0x8a3   : > { %5872 = vmatmul.mubr.msk.f32.vlgmr.msra.gmra.mrb[14].mxu1 %vm1930_vm12, %v2336_v8  ;;  %v2708_v8 = vld [vmem:[#allocation8 + $0x78] sm:$0xff] }
 0x8a4   : > { %6227 = vmatpush3.bf16.msra.mxu1 %v6226_v7  ;;  %5878 = vmatprep.mubr.msk.f32.mxu1 %vm6957_vm0, %v8060_v31  ;;  %v2706_v7 = vld [vmem:[#allocation8 + $0x68] sm:$0xff] }
 0x8a5   : > { %6228 = vmatprep.subr.bf16.mxu1 %v6951_v23 }
 0x976   : > { %v2420_v9 = vpop.f32.mrb[14].mxu1 }
 0x977   : > { %2425 = vst.msk [vmem:[%s777_s1] sm:$0xff] %vm2424_vm15, %v2420_v9  ;;  %v5873_v11 = vpop.f32.mrb[15].mxu1  ;;  %5879 = vmatmul.mubr.msk.f32.vlgmr.msra.gmra.mrb[16].mxu1 %vm2424_vm15, %v2420_v9  ;;  %vm2575_vm15 = vcmask 711680   ;;  %v6250_v9 = vpack.c.bf16 %v2703_v6, %v2701_v5  ;;  %v3151_v6 = vld [vmem:[#allocation9 + $0x220] sm:$0xff] }
 0x978   : > { %5899 = vmatprep.mubr.msk.f32.mxu1 %vm6957_vm0, %v8060_v31  ;;  %vm2520_vm0 = vcmask 818176   ;;  %v6252_v11 = vpack.c.bf16 %v2708_v8, %v2706_v7  ;;  %v3159_v7 = vld [vmem:[#allocation9 + $0x260] sm:$0xff]  ;;  %v3168_v8 = vld [vmem:[#allocation9 + $0x2a8] sm:$0xff] }
 0xa4a   : > { %v2497_v12 = vpop.f32.mrb[16].mxu1 }
 0xa4b   : > { %2510 = vrot.lane.b32.xlu1 %v2497_v12, %s6933_s4  ;;  %v5880_v13 = vpop.f32.mrb[17].mxu1  ;;  %v2705_v12 = vld [vmem:[#allocation8 + $0x60] sm:$0xff] }
 0xa4c   : > { %v2707_v13 = vld [vmem:[#allocation8 + $0x70] sm:$0xff] }
 0xabd   : > { %v2511_v14 = vpop.permute.xlu1 %2510 }
 0xabe   : > { %2513 = vst.msk [vmem:[#allocation2] sm:$0xff] %vm1803_vm2, %v2511_v14 }
 0xabf   : > { %2514 = vst.msk [vmem:[#allocation2 + $0x8] sm:$0xff] %vm8968_vm6, %v2511_v14  ;;  %vm2587_vm6 = vcmask 703488   ;;  %v2710_v14 = vld [vmem:[#allocation8 + $0x88] sm:$0xff] }
 0xac5   : > { %v2522_v15 = vld [vmem:[#allocation2] sm:$0xff] }
 0xac6   : > { %2524 = vrot.lane.b32.xlu1 %v2522_v15, %s6953_s25  ;;  %2517 = vrot.lane.b32.xlu0 %v2522_v15, %s6959_s24  ;;  %2799 = vst [vmem:[#allocation2] sm:$0xff] %v8060_v31  ;;  %v2535_v16 = vld [vmem:[#allocation2 + $0x8] sm:$0xff]  ;;  %s6960_s25 = smov 85  }
 0xaca   : > { %2540 = vrot.lane.b32.xlu1 %v2535_v16, %s6937_s6  ;;  %2538 = vrot.lane.b32.xlu0 %v2522_v15, %s6937_s6 }
 0xace   : > { %2549 = vrot.lane.b32.xlu1 %v2522_v15, %s6938_s7  ;;  %2530 = vrot.lane.b32.xlu0 %v2522_v15, %s6952_s2  ;;  %s9013_s2 = smov 67  }
 0xad2   : > { %2560 = vrot.lane.b32.xlu1 %v2522_v15, %s6939_s26  ;;  %2551 = vrot.lane.b32.xlu0 %v2535_v16, %s6938_s7 }
 0xad6   : > { %2571 = vrot.lane.b32.xlu1 %v2522_v15, %s6955_s27  ;;  %2562 = vrot.lane.b32.xlu0 %v2535_v16, %s6939_s26 }
 0xada   : > { %2583 = vrot.lane.b32.xlu1 %v2522_v15, %s6958_s22  ;;  %2573 = vrot.lane.b32.xlu0 %v2535_v16, %s6955_s27  ;;  %s9003_s27 = sld [smem:[#allocation22_spill]] }
 0xade   : > { %2595 = vrot.lane.b32.xlu1 %v2522_v15, %s6960_s25  ;;  %2585 = vrot.lane.b32.xlu0 %v2535_v16, %s6958_s22  ;;  %v2712_v15 = vld [vmem:[#allocation8 + $0x98] sm:$0xff]  ;;  %s9012_s22 = smov 66  }
 0xae0   : > { %v2603_v10 = vld [vmem:[%s9003_s27] sm:$0xff]  ;;  %s9014_s27 = smov 65  }
 0xae2   : > { %2616 = vperm.xlu1 %6755, %v2613_v17   ;;  %2597 = vrot.lane.b32.xlu0 %v2535_v16, %s6960_s25  ;;  %v6254_v16 = vpack.c.bf16 %v2707_v13, %v2705_v12  ;;  %v6256_v17 = vpack.c.bf16 %v2712_v15, %v2710_v14  ;;  %v3167_v13 = vld [vmem:[#allocation9 + $0x2a0] sm:$0xff]  ;;  %v3184_v15 = vld [vmem:[#allocation9 + $0x328] sm:$0xff]  ;;  %s9009_s25 = smov 126  }
 0xae3   : > { %v3175_v14 = vld [vmem:[#allocation9 + $0x2e0] sm:$0xff] }
 0xb38   : > { %v2525_v18 = vpop.permute.xlu1 %2524  ;;  %v2518_v19 = vpop.permute.xlu0 %2517 }
 0xb39   : > { %2527 = vst.msk [vmem:[#allocation3 + $0x40] sm:$0xff] %vm2520_vm0, %v2525_v18  ;;  %2521 = vst.msk [vmem:[#allocation3] sm:$0xff] %vm2520_vm0, %v2518_v19  ;;  %v2709_v18 = vld [vmem:[#allocation8 + $0x80] sm:$0xff]  ;;  %v2711_v19 = vld [vmem:[#allocation8 + $0x90] sm:$0xff] }
 0xb3c   : > { %v2541_v20 = vpop.permute.xlu1 %2540  ;;  %v2539_v21 = vpop.permute.xlu0 %2538 }
 0xb3d   : > { %v2542_v25 = vsel %vm849_vm9, %v2539_v21, %v2541_v20  ;;  %v2714_v20 = vld [vmem:[#allocation8 + $0xa8] sm:$0xff]  ;;  %v2716_v21 = vld [vmem:[#allocation8 + $0xb8] sm:$0xff] }
 0xb3e   : > { %2544 = vst.msk [vmem:[#allocation3 + $0xc0] sm:$0xff] %vm2520_vm0, %v2542_v25  ;;  %v6258_v25 = vpack.c.bf16 %v2711_v19, %v2709_v18  ;;  %v3183_v19 = vld [vmem:[#allocation9 + $0x320] sm:$0xff] }
 0xb40   : > { %v2550_v26 = vpop.permute.xlu1 %2549  ;;  %v2531_v27 = vpop.permute.xlu0 %2530  ;;  %v2604_v28 = vld [vmem:[#allocation3] sm:$0xff] }
 0xb41   : > { %v2605_v29 = vld [vmem:[#allocation3 + $0x40] sm:$0xff]  ;;  %2533 = vst.msk [vmem:[#allocation3 + $0x80] sm:$0xff] %vm2520_vm0, %v2531_v27  ;;  %v2713_v27 = vld [vmem:[#allocation8 + $0xa0] sm:$0xff] }
 0xb42   : > { %v6229_v63 = vpack.c.bf16 %v2605_v29, %v2604_v28  ;;  %v2715_v28 = vld [vmem:[#allocation8 + $0xb0] sm:$0xff] }
 0xb43   : > { %v6262_v29 = vpack.c.bf16 %v2715_v28, %v2713_v27  ;;  %v3199_v28 = vld [vmem:[#allocation9 + $0x3a0] sm:$0xff] }
 0xb44   : > { %6230 = vmatpush3.bf16.msra.mxu1 %v6229_v63  ;;  %v2561_v30 = vpop.permute.xlu1 %2560  ;;  %v2552_v33 = vpop.permute.xlu0 %2551  ;;  %v2718_v63 = vld [vmem:[#allocation8 + $0xc8] sm:$0xf] }
 0xb45   : > { %6231 = vmatprep.subr.bf16.mxu1 %v6951_v23  ;;  %v2553_v34 = vsel %vm862_vm10, %v2550_v26, %v2552_v33  ;;  %v2607_v38 = vld [vmem:[#allocation3 + $0xc0] sm:$0xff]  ;;  %v6260_v26 = vpack.c.bf16 %v2716_v21, %v2714_v20  ;;  %v3191_v20 = vld [vmem:[#allocation9 + $0x360] sm:$0xff]  ;;  %v3200_v21 = vld [vmem:[#allocation9 + $0x3a8] sm:$0xff] }
 0xb46   : > { %2555 = vst.msk [vmem:[#allocation3 + $0x100] sm:$0xff] %vm2520_vm0, %v2553_v34 }
 0xb48   : > { %v2572_v35 = vpop.permute.xlu1 %2571  ;;  %v2563_v36 = vpop.permute.xlu0 %2562  ;;  %v2606_v37 = vld [vmem:[#allocation3 + $0x80] sm:$0xff] }
 0xb49   : > { %v2564_v39 = vsel %vm875_vm11, %v2561_v30, %v2563_v36  ;;  %v6232_v40 = vpack.c.bf16 %v2607_v38, %v2606_v37  ;;  %v2717_v30 = vld [vmem:[#allocation8 + $0xc0] sm:$0xf] }
 0xb4a   : > { %2566 = vst.msk [vmem:[#allocation3 + $0x140] sm:$0xff] %vm2520_vm0, %v2564_v39 }
 0xb4b   : > { %6233 = vmatpush3.bf16.msra.mxu1 %v6232_v40 }
 0xb4c   : > { %v2574_v41 = vpop.permute.xlu0 %2573  ;;  %6234 = vmatprep.subr.bf16.mxu1 %v6951_v23  ;;  %v2584_v42 = vpop.permute.xlu1 %2583 }
 0xb4d   : > { %v2576_v22 = vsel %vm2575_vm15, %v2572_v35, %v2574_v41  ;;  %v2608_v45 = vld [vmem:[#allocation3 + $0x100] sm:$0xff] }
 0xb4e   : > { %2578 = vst.msk [vmem:[#allocation3 + $0x180] sm:$0xff] %vm2520_vm0, %v2576_v22 }
 0xb50   : > { %v2586_v43 = vpop.permute.xlu0 %2585  ;;  %v2596_v47 = vpop.permute.xlu1 %2595 }
 0xb51   : > { %v2588_v44 = vsel %vm2587_vm6, %v2584_v42, %v2586_v43  ;;  %v2609_v32 = vld [vmem:[#allocation3 + $0x140] sm:$0xff]  ;;  %vm9017_vm6 = vcmask 1039360  }
 0xb52   : > { %2590 = vst.msk [vmem:[#allocation3 + $0x1c0] sm:$0xff] %vm2520_vm0, %v2588_v44  ;;  %v6235_v46 = vpack.c.bf16 %v2609_v32, %v2608_v45  ;;  %v3001_v44 = vld [vmem:[%s8926_s10] sm:$0xff]  ;;  %v3088_v45 = vld [vmem:[#allocation9 + $0x28] sm:$0xff] }
 0xb53   : > { %v3096_v32 = vld [vmem:[#allocation9 + $0x68] sm:$0xff] }
 0xb54   : > { %6236 = vmatpush3.bf16.msra.mxu1 %v6235_v46  ;;  %v2598_v48 = vpop.permute.xlu0 %2597  ;;  %v6408_v46 = vpack.c.bf16 %v3096_v32, %v3088_v45  ;;  %v3247_v32 = vld [vmem:[#allocation9 + $0x520] sm:$0xff] }
 0xb55   : > { %v2600_v49 = vsel %vm2599_vm7, %v2596_v47, %v2598_v48  ;;  %6237 = vmatprep.subr.bf16.mxu1 %v6951_v23  ;;  %v2610_v50 = vld [vmem:[#allocation3 + $0x180] sm:$0xff]  ;;  %v6242_v23 = vpack.c.bf16 %v2695_v56, %v2693_v55  ;;  %v3087_v47 = vld [vmem:[#allocation9 + $0x20] sm:$0xff]  ;;  %v3120_v56 = vld [vmem:[#allocation9 + $0x128] sm:$0xff]  ;;  %vm9007_vm7 = vcmask 646144  }
 0xb56   : > { %2602 = vst.msk [vmem:[#allocation3 + $0x200] sm:$0xff] %vm2520_vm0, %v2600_v49  ;;  %v3095_v48 = vld [vmem:[#allocation9 + $0x60] sm:$0xff]  ;;  %6409 = vmatprep.subr.bf16.mxu0 %v6408_v46 }
 0xb57   : > { %v6410_v49 = vpack.c.bf16 %v3095_v48, %v3087_v47  ;;  %v3255_v46 = vld [vmem:[#allocation9 + $0x560] sm:$0xff]  ;;  %v3264_v47 = vld [vmem:[#allocation9 + $0x5a8] sm:$0xff] }
 0xb58   : > { %v3272_v48 = vld [vmem:[#allocation9 + $0x5e8] sm:$0xff] }
 0xb59   : > { %v2611_v51 = vld [vmem:[#allocation3 + $0x1c0] sm:$0xff]  ;;  %6411 = vmatpush1.bf16.msra.mxu0 %v6410_v49  ;;  %v6450_v49 = vpack.c.bf16 %v3255_v46, %v3247_v32 }
 0xb5a   : > { %v6238_v52 = vpack.c.bf16 %v2611_v51, %v2610_v50  ;;  %v3104_v50 = vld [vmem:[#allocation9 + $0xa8] sm:$0xff] }
 0xb5b   : > { %v3112_v51 = vld [vmem:[#allocation9 + $0xe8] sm:$0xff] }
 0xb5c   : > { %6239 = vmatpush3.bf16.msra.mxu1 %v6238_v52  ;;  %v3103_v52 = vld [vmem:[#allocation9 + $0xa0] sm:$0xff]  ;;  %v6412_v53 = vpack.c.bf16 %v3112_v51, %v3104_v50  ;;  %v6452_v50 = vpack.c.bf16 %v3272_v48, %v3264_v47 }
 0xb5d   : > { %5897 = vmatprep.subr.mxu1 %v8060_v31  ;;  %v2612_v60 = vld [vmem:[#allocation3 + $0x200] sm:$0xff]  ;;  %v6414_v55 = vpack.c.bf16 %v3111_v54, %v3103_v52  ;;  %v3263_v51 = vld [vmem:[#allocation9 + $0x5a0] sm:$0xff]  ;;  %v3288_v54 = vld [vmem:[#allocation9 + $0x668] sm:$0xff] }
 0xb5e   : > { %6413 = vmatprep.subr.bf16.mxu0 %v6412_v53  ;;  %v3271_v52 = vld [vmem:[#allocation9 + $0x5e0] sm:$0xff]  ;;  %v3280_v53 = vld [vmem:[#allocation9 + $0x628] sm:$0xff] }
 0xb5f   : > { %6415 = vmatpush1.bf16.msra.mxu0 %v6414_v55  ;;  %v6454_v55 = vpack.c.bf16 %v3271_v52, %v3263_v51 }
 0xb60   : > { %5898 = vmatpush3.msra.mxu1 %v2612_v60  ;;  %v3136_v60 = vld [vmem:[#allocation9 + $0x1a8] sm:$0xff] }
 0xb61   : > { %5900 = vmatmul.mubr.msk.f32.vlgmr.msra.gmra.mrb[18].mxu1 %vm2000_vm5, %v2603_v10  ;;  %6241 = vmatprep.subr.bf16.mxu1 %v6240_v59  ;;  %v2617_v33 = vpop.permute.xlu1 %2616  ;;  %v3127_v59 = vld [vmem:[#allocation9 + $0x160] sm:$0xff]  ;;  %v6416_v10 = vpack.c.bf16 %v3128_v57, %v3120_v56  ;;  %v6456_v56 = vpack.c.bf16 %v3288_v54, %v3280_v53 }
 0xb62   : > { %6243 = vmatpush1.bf16.msra.mxu1 %v6242_v23  ;;  %2792 = vmatprep.mubr.f32.mxu1 %v8060_v31  ;;  %v6418_v23 = vpack.c.bf16 %v3127_v59, %v3119_v58  ;;  %v3279_v57 = vld [vmem:[#allocation9 + $0x620] sm:$0xff]  ;;  %v3296_v59 = vld [vmem:[#allocation9 + $0x6a8] sm:$0xff] }
 0xb63   : > { %6245 = vmatprep.subr.bf16.mxu1 %v6244_v0  ;;  %v3144_v0 = vld [vmem:[#allocation9 + $0x1e8] sm:$0xff]  ;;  %6417 = vmatprep.subr.bf16.mxu0 %v6416_v10  ;;  %v3287_v58 = vld [vmem:[#allocation9 + $0x660] sm:$0xff] }
 0xb64   : > { %v6420_v61 = vpack.c.bf16 %v3144_v0, %v3136_v60  ;;  %6419 = vmatpush1.bf16.msra.mxu0 %v6418_v23  ;;  %v3304_v10 = vld [vmem:[#allocation9 + $0x6e8] sm:$0xff]  ;;  %v6458_v23 = vpack.c.bf16 %v3287_v58, %v3279_v57  ;;  %v3295_v0 = vld [vmem:[#allocation9 + $0x6a0] sm:$0xff] }
 0xb65   : > { %v6460_v60 = vpack.c.bf16 %v3304_v10, %v3296_v59  ;;  %v3084_v57 = vld [vmem:[#allocation9 + $0x8] sm:$0xff]  ;;  %v3083_v10 = vld [vmem:[#allocation9] sm:$0xff] }
 0xb66   : > { %6247 = vmatpush1.bf16.msra.mxu1 %v6246_v3  ;;  %v3160_v3 = vld [vmem:[#allocation9 + $0x268] sm:$0xff]  ;;  %6421 = vmatprep.subr.bf16.mxu0 %v6420_v61  ;;  %v3303_v61 = vld [vmem:[#allocation9 + $0x6e0] sm:$0xff] }
 0xb67   : > { %6249 = vmatprep.subr.bf16.mxu1 %v6248_v4  ;;  %v6422_v4 = vpack.c.bf16 %v3143_v24, %v3135_v62  ;;  %v6424_v5 = vpack.c.bf16 %v3160_v3, %v3152_v1  ;;  %v3312_v62 = vld [vmem:[#allocation9 + $0x728] sm:$0xff]  ;;  %v6462_v1 = vpack.c.bf16 %v3303_v61, %v3295_v0 }
 0xb68   : > { %v3320_v24 = vld [vmem:[#allocation9 + $0x768] sm:$0xff] }
 0xb69   : > { %6423 = vmatpush1.bf16.msra.mxu0 %v6422_v4  ;;  %v6464_v3 = vpack.c.bf16 %v3320_v24, %v3312_v62  ;;  %v3092_v58 = vld [vmem:[#allocation9 + $0x48] sm:$0xff]  ;;  %v2982_v24 = vld [vmem:[%s8925_s9] sm:$0xff] }
 0xb6a   : > { %6251 = vmatpush1.bf16.msra.mxu1 %v6250_v9  ;;  %v3176_v9 = vld [vmem:[#allocation9 + $0x2e8] sm:$0xff]  ;;  %6425 = vmatprep.subr.bf16.mxu0 %v6424_v5  ;;  %v6280_v61 = vpack.c.bf16 %v3092_v58, %v3084_v57  ;;  %v3235_v57 = vld [vmem:[#allocation9 + $0x4c0] sm:$0xff] }
 0xb6b   : > { %6253 = vmatprep.subr.bf16.mxu1 %v6252_v11  ;;  %v6426_v11 = vpack.c.bf16 %v3159_v7, %v3151_v6  ;;  %v6428_v12 = vpack.c.bf16 %v3176_v9, %v3168_v8  ;;  %v3108_v0 = vld [vmem:[#allocation9 + $0xc8] sm:$0xff] }
 0xb6c   : > { %v3244_v58 = vld [vmem:[#allocation9 + $0x508] sm:$0xff] }
 0xb6d   : > { %6427 = vmatpush1.bf16.msra.mxu0 %v6426_v11 }
 0xb6e   : > { %6255 = vmatpush1.bf16.msra.mxu1 %v6254_v16  ;;  %v3192_v16 = vld [vmem:[#allocation9 + $0x368] sm:$0xff]  ;;  %6429 = vmatprep.subr.bf16.mxu0 %v6428_v12 }
 0xb6f   : > { %6257 = vmatprep.subr.bf16.mxu1 %v6256_v17  ;;  %v6430_v17 = vpack.c.bf16 %v3175_v14, %v3167_v13  ;;  %v6432_v18 = vpack.c.bf16 %v3192_v16, %v3184_v15 }
 0xb71   : > { %6431 = vmatpush1.bf16.msra.mxu0 %v6430_v17 }
 0xb72   : > { %6259 = vmatpush1.bf16.msra.mxu1 %v6258_v25  ;;  %v3208_v25 = vld [vmem:[#allocation9 + $0x3e8] sm:$0xff]  ;;  %6433 = vmatprep.subr.bf16.mxu0 %v6432_v18 }
 0xb73   : > { %6261 = vmatprep.subr.bf16.mxu1 %v6260_v26  ;;  %v6434_v26 = vpack.c.bf16 %v3191_v20, %v3183_v19  ;;  %v6436_v27 = vpack.c.bf16 %v3208_v25, %v3200_v21 }
 0xb75   : > { %6435 = vmatpush1.bf16.msra.mxu0 %v6434_v26 }
 0xb76   : > { %6263 = vmatpush1.bf16.msra.mxu1 %v6262_v29  ;;  %v3207_v29 = vld [vmem:[#allocation9 + $0x3e0] sm:$0xff]  ;;  %6437 = vmatprep.subr.bf16.mxu0 %v6436_v27 }
 0xb77   : > { %5735 = vmatprep.subr.msk.mxu1 %vm1494_vm1, %v2718_v63  ;;  %v3216_v63 = vld [vmem:[#allocation9 + $0x428] sm:$0xff] }
 0xb7a   : > { %5736 = vmatpush1.msk.msra.mxu1 %vm1494_vm1, %v2717_v30  ;;  %v3224_v30 = vld [vmem:[#allocation9 + $0x468] sm:$0xff] }
 0xc34   : > { %v2688_v34 = vpop.f32.mrb[18].mxu1 }
 0xc35   : > { %v2689_v35 = vadd.f32 %v2688_v34, %v2617_v33  ;;  %v5901_v36 = vpop.f32.mrb[19].mxu1  ;;  %v6438_v33 = vpack.c.bf16 %v3207_v29, %v3199_v28  ;;  %v6440_v34 = vpack.c.bf16 %v3224_v30, %v3216_v63 }
 0xc36   : > { %v3223_v36 = vld [vmem:[#allocation9 + $0x460] sm:$0xff] }
 0xc37   : > { %v2692_v37 = vmax.f32 %v2689_v35, 0.0  ;;  %v3215_v35 = vld [vmem:[#allocation9 + $0x420] sm:$0xff]  ;;  %6439 = vmatpush1.bf16.msra.mxu0 %v6438_v33 }
 0xc38   : > { %6441 = vmatprep.subr.bf16.mxu0 %v6440_v34 }
 0xc39   : > { %5737 = vmatmul.mubr.msk.f32.vlgmr.msra.gmra.mrb[20].mxu1 %vm2520_vm0, %v2692_v37  ;;  %v3232_v37 = vld [vmem:[#allocation9 + $0x4a8] sm:$0xff]  ;;  %vm9020_vm0 = vcmask 1022976  }
 0xc3a   : > { %3074 = vmatprep.mubr.f32.mxu1 %v8060_v31  ;;  %vm9021_vm15 = vmmov %vm9020_vm0 }
 0xd0c   : > { %v2794_v38 = vpop.f32.mrb[20].mxu1 }
 0xd0d   : > { %2809 = vrot.lane.b32.xlu0 %v2794_v38, %s6933_s4  ;;  %v2796_v39 = vpop.f32.mrb[21].mxu1  ;;  %v3240_v38 = vld [vmem:[#allocation9 + $0x4e8] sm:$0xff] }
 0xd0e   : > { %2811 = vrot.lane.b32.xlu1 %v2796_v39, %s6933_s4  ;;  %v6442_v39 = vpack.c.bf16 %v3223_v36, %v3215_v35 }
 0xd10   : > { %6443 = vmatpush1.bf16.msra.mxu0 %v6442_v39 }
 0xd7f   : > { %v2810_v40 = vpop.permute.xlu0 %2809 }
 0xd80   : > { %2817 = vst.msk [vmem:[#allocation2] sm:$0xff] %vm1803_vm2, %v2810_v40  ;;  %v2812_v41 = vpop.permute.xlu1 %2811 }
 0xd81   : > { %2819 = vst.msk [vmem:[#allocation2 + $0x10] sm:$0xff] %vm792_vm3, %v2812_v41  ;;  %v2813_v43 = vsel %vm792_vm3, %v2810_v40, %v2812_v41  ;;  %v6444_v40 = vpack.c.bf16 %v3240_v38, %v3232_v37  ;;  %v3231_v41 = vld [vmem:[#allocation9 + $0x4a0] sm:$0xff] }
 0xd83   : > { %6445 = vmatprep.subr.bf16.mxu0 %v6444_v40 }
 0xd87   : > { %v2838_v22 = vld [vmem:[#allocation2] sm:$0xff] }
 0xd88   : > { %2844 = vrot.lane.b32.xlu1 %v2838_v22, %s6946_s0  ;;  %2826 = vrot.lane.b32.xlu0 %v2838_v22, %s6945_s28  ;;  %3623 = vst [vmem:[#allocation2] sm:$0xff] %v8060_v31  ;;  %v2822_v42 = vld [vmem:[#allocation2 + $0x10] sm:$0xff] }
 0xd8c   : > { %2880 = vrot.lane.b32.xlu1 %v2838_v22, %s6937_s6  ;;  %2862 = vrot.lane.b32.xlu0 %v2838_v22, %s6947_s29 }
 0xd90   : > { %2916 = vrot.lane.b32.xlu1 %v2838_v22, %s6939_s26  ;;  %2898 = vrot.lane.b32.xlu0 %v2838_v22, %s6938_s7 }
 0xd94   : > { %2830 = vrot.lane.b32.xlu1 %v2822_v42, %s6945_s28  ;;  %2934 = vrot.lane.b32.xlu0 %v2838_v22, %s9004_s13 }
 0xd98   : > { %2848 = vrot.lane.b32.xlu1 %v2822_v42, %s6946_s0  ;;  %2828 = vrot.lane.b32.xlu0 %v2813_v43, %s6945_s28  ;;  %s9005_s28 = smov 80  }
 0xd9c   : > { %2866 = vrot.lane.b32.xlu1 %v2822_v42, %s6947_s29  ;;  %2846 = vrot.lane.b32.xlu0 %v2813_v43, %s6946_s0  ;;  %s9006_s0 = smov 79  }
 0xda0   : > { %2884 = vrot.lane.b32.xlu1 %v2822_v42, %s6937_s6  ;;  %2864 = vrot.lane.b32.xlu0 %v2813_v43, %s6947_s29 }
 0xda4   : > { %2902 = vrot.lane.b32.xlu1 %v2822_v42, %s6938_s7  ;;  %2882 = vrot.lane.b32.xlu0 %v2813_v43, %s6937_s6 }
 0xda8   : > { %2920 = vrot.lane.b32.xlu1 %v2822_v42, %s6939_s26  ;;  %2900 = vrot.lane.b32.xlu0 %v2813_v43, %s6938_s7 }
 0xdac   : > { %2938 = vrot.lane.b32.xlu1 %v2822_v42, %s9004_s13  ;;  %2918 = vrot.lane.b32.xlu0 %v2813_v43, %s6939_s26 }
 0xdb0   : > { %2956 = vrot.lane.b32.xlu1 %v2822_v42, %s9005_s28  ;;  %2936 = vrot.lane.b32.xlu0 %v2813_v43, %s9004_s13 }
 0xdb4   : > { %2952 = vrot.lane.b32.xlu1 %v2838_v22, %s9005_s28  ;;  %2954 = vrot.lane.b32.xlu0 %v2813_v43, %s9005_s28 }
 0xdb8   : > { %2974 = vrot.lane.b32.xlu1 %v2822_v42, %s9006_s0  ;;  %2972 = vrot.lane.b32.xlu0 %v2813_v43, %s9006_s0  ;;  %v3248_v42 = vld [vmem:[#allocation9 + $0x528] sm:$0xff] }
 0xdb9   : > { %v3256_v43 = vld [vmem:[#allocation9 + $0x568] sm:$0xff] }
 0xdba   : > { %v6448_v45 = vpack.c.bf16 %v3256_v43, %v3248_v42 }
 0xdbc   : > { %3004 = vperm.xlu1 %6755, %v3001_v44   ;;  %2970 = vrot.lane.b32.xlu0 %v2838_v22, %s9006_s0  ;;  %v3239_v22 = vld [vmem:[#allocation9 + $0x4e0] sm:$0xff] }
 0xdbd   : > { %v6446_v44 = vpack.c.bf16 %v3239_v22, %v3231_v41 }
 0xdbf   : > { %6447 = vmatpush1.bf16.msra.mxu0 %v6446_v44 }
 0xdc0   : > { %6449 = vmatprep.subr.bf16.mxu0 %v6448_v45 }
 0xdc3   : > { %6451 = vmatpush1.bf16.msra.mxu0 %v6450_v49 }
 0xdc4   : > { %6453 = vmatprep.subr.bf16.mxu0 %v6452_v50 }
 0xdc7   : > { %6455 = vmatpush1.bf16.msra.mxu0 %v6454_v55 }
 0xdc8   : > { %6457 = vmatprep.subr.bf16.mxu0 %v6456_v56 }
 0xdcb   : > { %6459 = vmatpush1.bf16.msra.mxu0 %v6458_v23  ;;  %v3091_v23 = vld [vmem:[#allocation9 + $0x40] sm:$0xff] }
 0xdcc   : > { %6461 = vmatprep.subr.bf16.mxu0 %v6460_v60  ;;  %v3100_v60 = vld [vmem:[#allocation9 + $0x88] sm:$0xff] }
 0xdcf   : > { %6463 = vmatpush1.bf16.msra.mxu0 %v6462_v1  ;;  %v6282_v1 = vpack.c.bf16 %v3091_v23, %v3083_v10 }
 0xdd0   : > { %6465 = vmatprep.subr.bf16.mxu0 %v6464_v3 }
 0xdfa   : > { %v2845_v4 = vpop.permute.xlu1 %2844  ;;  %v2827_v5 = vpop.permute.xlu0 %2826 }
 0xdfe   : > { %v2881_v6 = vpop.permute.xlu1 %2880  ;;  %v2863_v7 = vpop.permute.xlu0 %2862 }
 0xe02   : > { %v2917_v8 = vpop.permute.xlu1 %2916  ;;  %v2899_v9 = vpop.permute.xlu0 %2898 }
 0xe06   : > { %v2831_v11 = vpop.permute.xlu1 %2830  ;;  %v2935_v12 = vpop.permute.xlu0 %2934 }
 0xe0a   : > { %v2849_v13 = vpop.permute.xlu1 %2848  ;;  %v2829_v14 = vpop.permute.xlu0 %2828 }
 0xe0b   : > { %v2832_v17 = vsel %vm1819_vm4, %v2827_v5, %v2829_v14  ;;  %v2833_v18 = vsel %vm1819_vm4, %v2829_v14, %v2831_v11  ;;  %v3099_v5 = vld [vmem:[#allocation9 + $0x80] sm:$0xff]  ;;  %v3132_v14 = vld [vmem:[#allocation9 + $0x188] sm:$0xff]  ;;  %vm9019_vm4 = vmmov %vm9017_vm6 }
 0xe0e   : > { %v2867_v15 = vpop.permute.xlu1 %2866  ;;  %v2847_v16 = vpop.permute.xlu0 %2846 }
 0xe0f   : > { %v2850_v19 = vsel %vm1838_vm14, %v2845_v4, %v2847_v16  ;;  %v2851_v20 = vsel %vm1838_vm14, %v2847_v16, %v2849_v13  ;;  %v6284_v4 = vpack.c.bf16 %v3108_v0, %v3100_v60  ;;  %v3123_v13 = vld [vmem:[#allocation9 + $0x140] sm:$0xff]  ;;  %vm9016_vm14 = vcmask 1031168  }
 0xe10   : > { %v6264_v21 = vpack.c.bf16 %v2851_v20, %v2833_v18  ;;  %v6266_v25 = vpack.c.bf16 %v2850_v19, %v2832_v17  ;;  %v3131_v18 = vld [vmem:[#allocation9 + $0x180] sm:$0xff]  ;;  %v3148_v20 = vld [vmem:[#allocation9 + $0x208] sm:$0xff]  ;;  %vm9018_vm1 = vmmov %vm9016_vm14 }
 0xe11   : > { %v3139_v19 = vld [vmem:[#allocation9 + $0x1c0] sm:$0xff] }
 0xe12   : > { %v2885_v26 = vpop.permute.xlu1 %2884  ;;  %v2865_v27 = vpop.permute.xlu0 %2864  ;;  %6265 = vmatprep.subr.bf16.mxu1 %v6264_v21  ;;  %v3156_v21 = vld [vmem:[#allocation9 + $0x248] sm:$0xff]  ;;  %v3243_v60 = vld [vmem:[#allocation9 + $0x500] sm:$0xff] }
 0xe13   : > { %6267 = vmatpush1.bf16.msra.mxu1 %v6266_v25  ;;  %v2868_v63 = vsel %vm1857_vm13, %v2863_v7, %v2865_v27  ;;  %v2869_v30 = vsel %vm1857_vm13, %v2865_v27, %v2867_v15  ;;  %v3116_v7 = vld [vmem:[#allocation9 + $0x108] sm:$0xff]  ;;  %v6294_v25 = vpack.c.bf16 %v3139_v19, %v3131_v18  ;;  %v3147_v27 = vld [vmem:[#allocation9 + $0x200] sm:$0xff]  ;;  %vm9015_vm13 = vcmask 556032  }
 0xe14   : > { %v3140_v15 = vld [vmem:[#allocation9 + $0x1c8] sm:$0xff]  ;;  %v3251_v0 = vld [vmem:[#allocation9 + $0x540] sm:$0xff] }
 0xe15   : > { %v6292_v17 = vpack.c.bf16 %v3140_v15, %v3132_v14  ;;  %v3308_v18 = vld [vmem:[#allocation9 + $0x708] sm:$0xff] }
 0xe16   : > { %v2903_v28 = vpop.permute.xlu1 %2902  ;;  %v2883_v29 = vpop.permute.xlu0 %2882  ;;  %v3316_v19 = vld [vmem:[#allocation9 + $0x748] sm:$0xff] }
 0xe17   : > { %v2886_v33 = vsel %vm849_vm9, %v2881_v6, %v2883_v29  ;;  %v2887_v34 = vsel %vm849_vm9, %v2883_v29, %v2885_v26  ;;  %v3107_v6 = vld [vmem:[#allocation9 + $0xc0] sm:$0xff]  ;;  %v6296_v26 = vpack.c.bf16 %v3156_v21, %v3148_v20  ;;  %v3164_v29 = vld [vmem:[#allocation9 + $0x288] sm:$0xff]  ;;  %v6336_v21 = vpack.c.bf16 %v3316_v19, %v3308_v18  ;;  %v3165_v18 = vld [vmem:[#allocation9 + $0x290] sm:$0xff] }
 0xe18   : > { %v6268_v35 = vpack.c.bf16 %v2887_v34, %v2869_v30  ;;  %v6270_v36 = vpack.c.bf16 %v2886_v33, %v2868_v63  ;;  %v3172_v63 = vld [vmem:[#allocation9 + $0x2c8] sm:$0xff]  ;;  %v3163_v34 = vld [vmem:[#allocation9 + $0x280] sm:$0xff]  ;;  %v3173_v19 = vld [vmem:[#allocation9 + $0x2d0] sm:$0xff] }
 0xe19   : > { %v6300_v33 = vpack.c.bf16 %v3172_v63, %v3164_v29  ;;  %v3319_v29 = vld [vmem:[#allocation9 + $0x760] sm:$0xff] }
 0xe1a   : > { %v2921_v37 = vpop.permute.xlu1 %2920  ;;  %v2901_v38 = vpop.permute.xlu0 %2900  ;;  %6269 = vmatprep.subr.bf16.mxu1 %v6268_v35  ;;  %v3171_v35 = vld [vmem:[#allocation9 + $0x2c0] sm:$0xff] }
 0xe1b   : > { %6271 = vmatpush1.bf16.msra.mxu1 %v6270_v36  ;;  %v2904_v41 = vsel %vm862_vm10, %v2899_v9, %v2901_v38  ;;  %v2905_v22 = vsel %vm862_vm10, %v2901_v38, %v2903_v28  ;;  %v6286_v9 = vpack.c.bf16 %v3107_v6, %v3099_v5  ;;  %v3155_v28 = vld [vmem:[#allocation9 + $0x240] sm:$0xff]  ;;  %v3180_v36 = vld [vmem:[#allocation9 + $0x308] sm:$0xff]  ;;  %v6302_v38 = vpack.c.bf16 %v3171_v35, %v3163_v34 }
 0xe1c   : > { %v6298_v30 = vpack.c.bf16 %v3155_v28, %v3147_v27  ;;  %v3276_v5 = vld [vmem:[#allocation9 + $0x608] sm:$0xff]  ;;  %v3311_v28 = vld [vmem:[#allocation9 + $0x720] sm:$0xff] }
 0xe1d   : > { %v3284_v6 = vld [vmem:[#allocation9 + $0x648] sm:$0xff]  ;;  %v6466_v63 = vpack.c.bf16 %v3319_v29, %v3311_v28  ;;  %v3323_v34 = vld [vmem:[#allocation9 + $0x780] sm:$0xff]  ;;  %v3189_v28 = vld [vmem:[#allocation9 + $0x350] sm:$0xff] }
 0xe1e   : > { %v2939_v39 = vpop.permute.xlu1 %2938  ;;  %v2919_v40 = vpop.permute.xlu0 %2918  ;;  %v3198_v29 = vld [vmem:[#allocation9 + $0x398] sm:$0xff] }
 0xe1f   : > { %v2922_v42 = vsel %vm875_vm11, %v2917_v8, %v2919_v40  ;;  %v2923_v43 = vsel %vm875_vm11, %v2919_v40, %v2921_v37  ;;  %v3124_v8 = vld [vmem:[#allocation9 + $0x148] sm:$0xff]  ;;  %v3179_v40 = vld [vmem:[#allocation9 + $0x300] sm:$0xff]  ;;  %6467 = vmatpush1.bf16.msra.mxu0 %v6466_v63  ;;  %v3206_v63 = vld [vmem:[#allocation9 + $0x3d8] sm:$0xff] }
 0xe20   : > { %v6272_v44 = vpack.c.bf16 %v2923_v43, %v2905_v22  ;;  %v6274_v45 = vpack.c.bf16 %v2922_v42, %v2904_v41  ;;  %v6288_v11 = vpack.c.bf16 %v3124_v8, %v3116_v7  ;;  %v3188_v37 = vld [vmem:[#allocation9 + $0x348] sm:$0xff]  ;;  %v3187_v41 = vld [vmem:[#allocation9 + $0x340] sm:$0xff]  ;;  %v6328_v8 = vpack.c.bf16 %v3284_v6, %v3276_v5  ;;  %v3133_v5 = vld [vmem:[#allocation9 + $0x190] sm:$0xff] }
 0xe21   : > { %v3196_v22 = vld [vmem:[#allocation9 + $0x388] sm:$0xff]  ;;  %v6306_v43 = vpack.c.bf16 %v3187_v41, %v3179_v40  ;;  %v3327_v41 = vld [vmem:[#allocation9 + $0x7a0] sm:$0xff]  ;;  %v3141_v6 = vld [vmem:[#allocation9 + $0x1d0] sm:$0xff] }
 0xe22   : > { %v2957_v32 = vpop.permute.xlu1 %2956  ;;  %v2937_v46 = vpop.permute.xlu0 %2936  ;;  %6273 = vmatprep.subr.bf16.mxu1 %v6272_v44  ;;  %v3204_v42 = vld [vmem:[#allocation9 + $0x3c8] sm:$0xff] }
 0xe23   : > { %6275 = vmatpush1.bf16.msra.mxu1 %v6274_v45  ;;  %v2940_v49 = vsel %vm1930_vm12, %v2935_v12, %v2937_v46  ;;  %v2941_v50 = vsel %vm1930_vm12, %v2937_v46, %v2939_v39  ;;  %v3115_v12 = vld [vmem:[#allocation9 + $0x100] sm:$0xff]  ;;  %v6304_v39 = vpack.c.bf16 %v3188_v37, %v3180_v36  ;;  %v6308_v44 = vpack.c.bf16 %v3204_v42, %v3196_v22  ;;  %v3212_v46 = vld [vmem:[#allocation9 + $0x408] sm:$0xff]  ;;  %v3086_v42 = vld [vmem:[#allocation9 + $0x18] sm:$0xff] }
 0xe24   : > { %v6290_v16 = vpack.c.bf16 %v3123_v13, %v3115_v12  ;;  %v3195_v45 = vld [vmem:[#allocation9 + $0x380] sm:$0xff]  ;;  %v3292_v12 = vld [vmem:[#allocation9 + $0x688] sm:$0xff]  ;;  %vm3677_vm12 = vcmask 293888  }
 0xe25   : > { %v3300_v13 = vld [vmem:[#allocation9 + $0x6c8] sm:$0xff]  ;;  %v3331_v36 = vld [vmem:[#allocation9 + $0x7c0] sm:$0xff] }
 0xe26   : > { %v2953_v47 = vpop.permute.xlu1 %2952  ;;  %v2955_v48 = vpop.permute.xlu0 %2954  ;;  %v6332_v15 = vpack.c.bf16 %v3300_v13, %v3292_v12  ;;  %v3328_v37 = vld [vmem:[#allocation9 + $0x7a8] sm:$0xff]  ;;  %v3335_v22 = vld [vmem:[#allocation9 + $0x7e0] sm:$0xff]  ;;  %v3149_v12 = vld [vmem:[#allocation9 + $0x210] sm:$0xff] }
 0xe27   : > { %v2958_v51 = vsel %vm1949_vm8, %v2953_v47, %v2955_v48  ;;  %v2959_v52 = vsel %vm1949_vm8, %v2955_v48, %v2957_v32  ;;  %vm9008_vm8 = vmmov %vm9007_vm7  ;;  %v3203_v32 = vld [vmem:[#allocation9 + $0x3c0] sm:$0xff]  ;;  %v3220_v47 = vld [vmem:[#allocation9 + $0x448] sm:$0xff] }
 0xe28   : > { %v6276_v53 = vpack.c.bf16 %v2959_v52, %v2941_v50  ;;  %v6278_v54 = vpack.c.bf16 %v2958_v51, %v2940_v49  ;;  %v6310_v48 = vpack.c.bf16 %v3203_v32, %v3195_v45  ;;  %v6312_v49 = vpack.c.bf16 %v3220_v47, %v3212_v46  ;;  %v3211_v50 = vld [vmem:[#allocation9 + $0x400] sm:$0xff]  ;;  %v3228_v52 = vld [vmem:[#allocation9 + $0x488] sm:$0xff]  ;;  %v3157_v13 = vld [vmem:[#allocation9 + $0x250] sm:$0xff] }
 0xe29   : > { %v3219_v51 = vld [vmem:[#allocation9 + $0x440] sm:$0xff] }
 0xe2a   : > { %v2975_v55 = vpop.permute.xlu1 %2974  ;;  %v2973_v56 = vpop.permute.xlu0 %2972  ;;  %6277 = vmatprep.subr.bf16.mxu1 %v6276_v53  ;;  %v3236_v53 = vld [vmem:[#allocation9 + $0x4c8] sm:$0xff] }
 0xe2b   : > { %v2977_v59 = vsel %vm9007_vm7, %v2973_v56, %v2975_v55  ;;  %6279 = vmatpush1.bf16.msra.mxu1 %v6278_v54  ;;  %v6314_v54 = vpack.c.bf16 %v3219_v51, %v3211_v50  ;;  %v6316_v55 = vpack.c.bf16 %v3236_v53, %v3228_v52  ;;  %v3093_v50 = vld [vmem:[#allocation9 + $0x50] sm:$0xff]  ;;  %v3102_v52 = vld [vmem:[#allocation9 + $0x98] sm:$0xff]  ;;  %vm9022_vm7 = vcmask 547840  }
 0xe2c   : > { %3026 = vmatprep.subr.mxu1 %v2977_v59  ;;  %v3252_v59 = vld [vmem:[#allocation9 + $0x548] sm:$0xff]  ;;  %v3110_v53 = vld [vmem:[#allocation9 + $0xd8] sm:$0xff] }
 0xe2d   : > { %v6320_v23 = vpack.c.bf16 %v3252_v59, %v3244_v58  ;;  %v3101_v58 = vld [vmem:[#allocation9 + $0x90] sm:$0xff] }
 0xe2e   : > { %v2971_v62 = vpop.permute.xlu0 %2970  ;;  %v3109_v59 = vld [vmem:[#allocation9 + $0xd0] sm:$0xff] }
 0xe2f   : > { %v2976_v3 = vsel %vm9008_vm8, %v2971_v62, %v2973_v56  ;;  %v3227_v56 = vld [vmem:[#allocation9 + $0x480] sm:$0xff]  ;;  %v3268_v62 = vld [vmem:[#allocation9 + $0x5c8] sm:$0xff]  ;;  %vm9023_vm8 = vmmov %vm9022_vm7 }
 0xe30   : > { %3027 = vmatpush1.msra.mxu1 %v2976_v3  ;;  %v6318_v10 = vpack.c.bf16 %v3235_v57, %v3227_v56  ;;  %v3259_v3 = vld [vmem:[#allocation9 + $0x580] sm:$0xff]  ;;  %v6348_v57 = vpack.c.bf16 %v3110_v53, %v3102_v52  ;;  %v3262_v52 = vld [vmem:[#allocation9 + $0x598] sm:$0xff] }
 0xe31   : > { %5738 = vmatmul.mubr.msk.f32.vlgmr.msra.gmra.mrb[22].mxu1 %vm2000_vm5, %v2982_v24  ;;  %6281 = vmatprep.subr.bf16.mxu1 %v6280_v61  ;;  %v3260_v61 = vld [vmem:[#allocation9 + $0x588] sm:$0xff]  ;;  %v6322_v24 = vpack.c.bf16 %v3251_v0, %v3243_v60  ;;  %v6350_v60 = vpack.c.bf16 %v3109_v59, %v3101_v58  ;;  %v3270_v53 = vld [vmem:[#allocation9 + $0x5d8] sm:$0xff]  ;;  %v3261_v58 = vld [vmem:[#allocation9 + $0x590] sm:$0xff] }
 0xe32   : > { %6283 = vmatpush1.bf16.msra.mxu1 %v6282_v1  ;;  %v6324_v1 = vpack.c.bf16 %v3268_v62, %v3260_v61  ;;  %v3117_v61 = vld [vmem:[#allocation9 + $0x110] sm:$0xff] }
 0xe33   : > { %6285 = vmatprep.subr.bf16.mxu1 %v6284_v4  ;;  %v3267_v4 = vld [vmem:[#allocation9 + $0x5c0] sm:$0xff]  ;;  %v3125_v62 = vld [vmem:[#allocation9 + $0x150] sm:$0xff] }
 0xe34   : > { %v6326_v7 = vpack.c.bf16 %v3267_v4, %v3259_v3  ;;  %v6354_v3 = vpack.c.bf16 %v3125_v62, %v3117_v61  ;;  %v3269_v59 = vld [vmem:[#allocation9 + $0x5d0] sm:$0xff] }
 0xe35   : > { %v3277_v61 = vld [vmem:[#allocation9 + $0x610] sm:$0xff] }
 0xe36   : > { %6287 = vmatpush1.bf16.msra.mxu1 %v6286_v9  ;;  %v3275_v9 = vld [vmem:[#allocation9 + $0x600] sm:$0xff]  ;;  %v3285_v62 = vld [vmem:[#allocation9 + $0x650] sm:$0xff] }
 0xe37   : > { %6289 = vmatprep.subr.bf16.mxu1 %v6288_v11  ;;  %v3283_v11 = vld [vmem:[#allocation9 + $0x640] sm:$0xff] }
 0xe38   : > { %v6330_v14 = vpack.c.bf16 %v3283_v11, %v3275_v9  ;;  %v6358_v9 = vpack.c.bf16 %v3141_v6, %v3133_v5  ;;  %v3293_v5 = vld [vmem:[#allocation9 + $0x690] sm:$0xff] }
 0xe39   : > { %v3301_v6 = vld [vmem:[#allocation9 + $0x6d0] sm:$0xff] }
 0xe3a   : > { %6291 = vmatpush1.bf16.msra.mxu1 %v6290_v16  ;;  %v3291_v16 = vld [vmem:[#allocation9 + $0x680] sm:$0xff] }
 0xe3b   : > { %6293 = vmatprep.subr.bf16.mxu1 %v6292_v17  ;;  %v3299_v17 = vld [vmem:[#allocation9 + $0x6c0] sm:$0xff]  ;;  %v3005_v32 = vpop.permute.xlu1 %3004 }
 0xe3c   : > { %v6334_v20 = vpack.c.bf16 %v3299_v17, %v3291_v16  ;;  %v6362_v16 = vpack.c.bf16 %v3157_v13, %v3149_v12  ;;  %v3309_v12 = vld [vmem:[#allocation9 + $0x710] sm:$0xff] }
 0xe3d   : > { %v3317_v13 = vld [vmem:[#allocation9 + $0x750] sm:$0xff] }
 0xe3e   : > { %6295 = vmatpush1.bf16.msra.mxu1 %v6294_v25  ;;  %v3307_v25 = vld [vmem:[#allocation9 + $0x700] sm:$0xff] }
 0xe3f   : > { %6297 = vmatprep.subr.bf16.mxu1 %v6296_v26  ;;  %v3315_v26 = vld [vmem:[#allocation9 + $0x740] sm:$0xff] }
 0xe40   : > { %v6338_v27 = vpack.c.bf16 %v3315_v26, %v3307_v25  ;;  %v6366_v25 = vpack.c.bf16 %v3173_v19, %v3165_v18  ;;  %v3325_v18 = vld [vmem:[#allocation9 + $0x790] sm:$0xff] }
 0xe41   : > { %v3333_v19 = vld [vmem:[#allocation9 + $0x7d0] sm:$0xff] }
 0xe42   : > { %6299 = vmatpush1.bf16.msra.mxu1 %v6298_v30  ;;  %v3324_v30 = vld [vmem:[#allocation9 + $0x788] sm:$0xff] }
 0xe43   : > { %6301 = vmatprep.subr.bf16.mxu1 %v6300_v33  ;;  %v3332_v33 = vld [vmem:[#allocation9 + $0x7c8] sm:$0xff] }
 0xe44   : > { %v6340_v35 = vpack.c.bf16 %v3332_v33, %v3324_v30  ;;  %v6372_v33 = vpack.c.bf16 %v3206_v63, %v3198_v29  ;;  %v3106_v29 = vld [vmem:[#allocation9 + $0xb8] sm:$0xff] }
 0xe45   : > { %v3114_v63 = vld [vmem:[#allocation9 + $0xf8] sm:$0xff] }
 0xe46   : > { %6303 = vmatpush1.bf16.msra.mxu1 %v6302_v38  ;;  %v3336_v38 = vld [vmem:[#allocation9 + $0x7e8] sm:$0xff] }
 0xe47   : > { %6305 = vmatprep.subr.bf16.mxu1 %v6304_v39  ;;  %v6342_v39 = vpack.c.bf16 %v3331_v36, %v3323_v34  ;;  %v6468_v40 = vpack.c.bf16 %v3336_v38, %v3328_v37  ;;  %v3197_v34 = vld [vmem:[#allocation9 + $0x390] sm:$0xff]  ;;  %v3214_v36 = vld [vmem:[#allocation9 + $0x418] sm:$0xff] }
 0xe48   : > { %v3222_v37 = vld [vmem:[#allocation9 + $0x458] sm:$0xff] }
 0xe49   : > { %6469 = vmatprep.subr.bf16.mxu0 %v6468_v40  ;;  %v3213_v40 = vld [vmem:[#allocation9 + $0x410] sm:$0xff] }
 0xe4a   : > { %6307 = vmatpush1.bf16.msra.mxu1 %v6306_v43  ;;  %v6470_v43 = vpack.c.bf16 %v3335_v22, %v3327_v41  ;;  %v3221_v41 = vld [vmem:[#allocation9 + $0x450] sm:$0xff]  ;;  %v3230_v22 = vld [vmem:[#allocation9 + $0x498] sm:$0xff] }
 0xe4b   : > { %6309 = vmatprep.subr.bf16.mxu1 %v6308_v44  ;;  %v3094_v44 = vld [vmem:[#allocation9 + $0x58] sm:$0xff] }
 0xe4c   : > { %v6344_v45 = vpack.c.bf16 %v3094_v44, %v3086_v42  ;;  %6471 = vmatpush1.bf16.msra.mxu0 %v6470_v43  ;;  %v3238_v42 = vld [vmem:[#allocation9 + $0x4d8] sm:$0xff]  ;;  %v6378_v43 = vpack.c.bf16 %v3221_v41, %v3213_v40  ;;  %v3121_v40 = vld [vmem:[#allocation9 + $0x130] sm:$0xff] }
 0xe4d   : > { %v6380_v44 = vpack.c.bf16 %v3238_v42, %v3230_v22  ;;  %v3129_v41 = vld [vmem:[#allocation9 + $0x170] sm:$0xff]  ;;  %v3138_v22 = vld [vmem:[#allocation9 + $0x1b8] sm:$0xff] }
 0xe4e   : > { %6311 = vmatpush1.bf16.msra.mxu1 %v6310_v48  ;;  %v3146_v42 = vld [vmem:[#allocation9 + $0x1f8] sm:$0xff] }
 0xe4f   : > { %6313 = vmatprep.subr.bf16.mxu1 %v6312_v49  ;;  %v3085_v49 = vld [vmem:[#allocation9 + $0x10] sm:$0xff] }
 0xe52   : > { %6315 = vmatpush1.bf16.msra.mxu1 %v6314_v54 }
 0xe53   : > { %6317 = vmatprep.subr.bf16.mxu1 %v6316_v55  ;;  %v6346_v55 = vpack.c.bf16 %v3093_v50, %v3085_v49  ;;  %v3245_v50 = vld [vmem:[#allocation9 + $0x510] sm:$0xff] }
 0xe56   : > { %6319 = vmatpush1.bf16.msra.mxu1 %v6318_v10  ;;  %v3118_v10 = vld [vmem:[#allocation9 + $0x118] sm:$0xff] }
 0xe57   : > { %6321 = vmatprep.subr.bf16.mxu1 %v6320_v23  ;;  %v3126_v23 = vld [vmem:[#allocation9 + $0x158] sm:$0xff] }
 0xe58   : > { %v6352_v0 = vpack.c.bf16 %v3126_v23, %v3118_v10  ;;  %v3278_v10 = vld [vmem:[#allocation9 + $0x618] sm:$0xff] }
 0xe59   : > { %v3286_v23 = vld [vmem:[#allocation9 + $0x658] sm:$0xff] }
 0xe5a   : > { %6323 = vmatpush1.bf16.msra.mxu1 %v6322_v24  ;;  %v3134_v24 = vld [vmem:[#allocation9 + $0x198] sm:$0xff] }
 0xe5b   : > { %6325 = vmatprep.subr.bf16.mxu1 %v6324_v1  ;;  %v3142_v1 = vld [vmem:[#allocation9 + $0x1d8] sm:$0xff] }
 0xe5c   : > { %v6356_v4 = vpack.c.bf16 %v3142_v1, %v3134_v24  ;;  %v3294_v24 = vld [vmem:[#allocation9 + $0x698] sm:$0xff] }
 0xe5d   : > { %v3302_v1 = vld [vmem:[#allocation9 + $0x6d8] sm:$0xff] }
 0xe5e   : > { %6327 = vmatpush1.bf16.msra.mxu1 %v6326_v7  ;;  %v3150_v7 = vld [vmem:[#allocation9 + $0x218] sm:$0xff] }
 0xe5f   : > { %6329 = vmatprep.subr.bf16.mxu1 %v6328_v8  ;;  %v3158_v8 = vld [vmem:[#allocation9 + $0x258] sm:$0xff] }
 0xe60   : > { %v6360_v11 = vpack.c.bf16 %v3158_v8, %v3150_v7  ;;  %v3310_v7 = vld [vmem:[#allocation9 + $0x718] sm:$0xff] }
 0xe61   : > { %v3318_v8 = vld [vmem:[#allocation9 + $0x758] sm:$0xff] }
 0xe62   : > { %6331 = vmatpush1.bf16.msra.mxu1 %v6330_v14  ;;  %v3166_v14 = vld [vmem:[#allocation9 + $0x298] sm:$0xff] }
 0xe63   : > { %6333 = vmatprep.subr.bf16.mxu1 %v6332_v15  ;;  %v3174_v15 = vld [vmem:[#allocation9 + $0x2d8] sm:$0xff] }
 0xe64   : > { %v6364_v17 = vpack.c.bf16 %v3174_v15, %v3166_v14  ;;  %v3326_v14 = vld [vmem:[#allocation9 + $0x798] sm:$0xff] }
 0xe65   : > { %v3334_v15 = vld [vmem:[#allocation9 + $0x7d8] sm:$0xff] }
 0xe66   : > { %6335 = vmatpush1.bf16.msra.mxu1 %v6334_v20  ;;  %v3182_v20 = vld [vmem:[#allocation9 + $0x318] sm:$0xff] }
 0xe67   : > { %6337 = vmatprep.subr.bf16.mxu1 %v6336_v21  ;;  %v3190_v21 = vld [vmem:[#allocation9 + $0x358] sm:$0xff] }
 0xe68   : > { %v6368_v26 = vpack.c.bf16 %v3190_v21, %v3182_v20  ;;  %v3090_v20 = vld [vmem:[#allocation9 + $0x38] sm:$0xff] }
 0xe69   : > { %v3098_v21 = vld [vmem:[#allocation9 + $0x78] sm:$0xff] }
 0xe6a   : > { %6339 = vmatpush1.bf16.msra.mxu1 %v6338_v27  ;;  %v3181_v27 = vld [vmem:[#allocation9 + $0x310] sm:$0xff] }
 0xe6b   : > { %6341 = vmatprep.subr.bf16.mxu1 %v6340_v35  ;;  %v6370_v30 = vpack.c.bf16 %v3189_v28, %v3181_v27  ;;  %v3205_v35 = vld [vmem:[#allocation9 + $0x3d0] sm:$0xff] }
 0xe6c   : > { %v6374_v38 = vpack.c.bf16 %v3205_v35, %v3197_v34  ;;  %v3089_v27 = vld [vmem:[#allocation9 + $0x30] sm:$0xff] }
 0xe6d   : > { %v3097_v28 = vld [vmem:[#allocation9 + $0x70] sm:$0xff] }
 0xe6e   : > { %6343 = vmatpush1.bf16.msra.mxu1 %v6342_v39  ;;  %v6376_v39 = vpack.c.bf16 %v3222_v37, %v3214_v36  ;;  %v3105_v34 = vld [vmem:[#allocation9 + $0xb0] sm:$0xff]  ;;  %v3122_v36 = vld [vmem:[#allocation9 + $0x138] sm:$0xff] }
 0xe6f   : > { %6345 = vmatprep.subr.bf16.mxu1 %v6344_v45  ;;  %v3229_v45 = vld [vmem:[#allocation9 + $0x490] sm:$0xff]  ;;  %v3130_v37 = vld [vmem:[#allocation9 + $0x178] sm:$0xff] }
 0xe70   : > { %v3113_v35 = vld [vmem:[#allocation9 + $0xf0] sm:$0xff] }
 0xf04   : > { %v3076_v46 = vpop.f32.mrb[22].mxu1 }
 0xf05   : > { %v3077_v47 = vadd.f32 %v3076_v46, %v3005_v32  ;;  %v3078_v48 = vpop.f32.mrb[23].mxu1  ;;  %v3246_v46 = vld [vmem:[#allocation9 + $0x518] sm:$0xff] }
 0xf06   : > { %v3079_v51 = vadd.f32 %v3078_v48, %v3005_v32  ;;  %v3237_v32 = vld [vmem:[#allocation9 + $0x4d0] sm:$0xff] }
 0xf07   : > { %v8278_v56 = vmax.f32 %v3077_v47, 0.0  ;;  %v3254_v47 = vld [vmem:[#allocation9 + $0x558] sm:$0xff]  ;;  %v6382_v48 = vpack.c.bf16 %v3237_v32, %v3229_v45  ;;  %v3137_v45 = vld [vmem:[#allocation9 + $0x1b0] sm:$0xff] }
 0xf08   : > { %v8276_v54 = vmax.f32 %v3079_v51, 0.0  ;;  %v6384_v49 = vpack.c.bf16 %v3254_v47, %v3246_v46  ;;  %v3253_v51 = vld [vmem:[#allocation9 + $0x550] sm:$0xff]  ;;  %v3154_v46 = vld [vmem:[#allocation9 + $0x238] sm:$0xff] }
 0xf09   : > { %v3145_v32 = vld [vmem:[#allocation9 + $0x1f0] sm:$0xff]  ;;  %v3162_v47 = vld [vmem:[#allocation9 + $0x278] sm:$0xff] }
 0xf0a   : > { %3403 = vmatprep.mubr.f32.mxu1 %v8276_v54  ;;  %3545 = vmatprep.mubr.f32.mxu0 %v8276_v54 }
 0xf0b   : > { %3404 = vmatmul.mubr.f32.vlgmr.msra.gmra.mrb[24].mxu1 %v8278_v56  ;;  %3546 = vmatmul.mubr.f32.vlgmr.msra.gmra.mrb[2].mxu0 %v8278_v56 }
 0xf0c   : > { %6347 = vmatpush1.bf16.msra.mxu1 %v6346_v55  ;;  %3474 = vmatprep.mubr.f32.mxu1 %v8276_v54  ;;  %v6386_v55 = vpack.c.bf16 %v3253_v51, %v3245_v50  ;;  %v3161_v50 = vld [vmem:[#allocation9 + $0x270] sm:$0xff]  ;;  %v3170_v51 = vld [vmem:[#allocation9 + $0x2b8] sm:$0xff] }
 0xf0d   : > { %6349 = vmatprep.subr.bf16.mxu1 %v6348_v57  ;;  %4320 = vmatprep.mubr.f32.mxu0 %v8060_v31  ;;  %v6388_v57 = vpack.c.bf16 %v3270_v53, %v3262_v52  ;;  %v3178_v52 = vld [vmem:[#allocation9 + $0x2f8] sm:$0xff] }
 0xf10   : > { %6351 = vmatpush1.bf16.msra.mxu1 %v6350_v60  ;;  %v6390_v60 = vpack.c.bf16 %v3269_v59, %v3261_v58  ;;  %v3177_v58 = vld [vmem:[#allocation9 + $0x2f0] sm:$0xff]  ;;  %v3186_v59 = vld [vmem:[#allocation9 + $0x338] sm:$0xff] }
 0xf11   : > { %6353 = vmatprep.subr.bf16.mxu1 %v6352_v0  ;;  %v6392_v0 = vpack.c.bf16 %v3286_v23, %v3278_v10  ;;  %v3194_v10 = vld [vmem:[#allocation9 + $0x378] sm:$0xff] }
 0xf14   : > { %6355 = vmatpush1.bf16.msra.mxu1 %v6354_v3  ;;  %v6394_v3 = vpack.c.bf16 %v3285_v62, %v3277_v61  ;;  %v3193_v61 = vld [vmem:[#allocation9 + $0x370] sm:$0xff]  ;;  %v3202_v62 = vld [vmem:[#allocation9 + $0x3b8] sm:$0xff] }
 0xf15   : > { %6357 = vmatprep.subr.bf16.mxu1 %v6356_v4  ;;  %v6396_v4 = vpack.c.bf16 %v3302_v1, %v3294_v24  ;;  %v3210_v24 = vld [vmem:[#allocation9 + $0x3f8] sm:$0xff] }
 0xf18   : > { %6359 = vmatpush1.bf16.msra.mxu1 %v6358_v9  ;;  %v6398_v9 = vpack.c.bf16 %v3301_v6, %v3293_v5  ;;  %v3209_v5 = vld [vmem:[#allocation9 + $0x3f0] sm:$0xff]  ;;  %v3218_v6 = vld [vmem:[#allocation9 + $0x438] sm:$0xff] }
 0xf19   : > { %6361 = vmatprep.subr.bf16.mxu1 %v6360_v11  ;;  %v6400_v11 = vpack.c.bf16 %v3318_v8, %v3310_v7  ;;  %v3226_v7 = vld [vmem:[#allocation9 + $0x478] sm:$0xff] }
 0xf1c   : > { %6363 = vmatpush1.bf16.msra.mxu1 %v6362_v16  ;;  %v6402_v16 = vpack.c.bf16 %v3317_v13, %v3309_v12  ;;  %v3225_v12 = vld [vmem:[#allocation9 + $0x470] sm:$0xff]  ;;  %v3234_v13 = vld [vmem:[#allocation9 + $0x4b8] sm:$0xff] }
 0xf1d   : > { %6365 = vmatprep.subr.bf16.mxu1 %v6364_v17  ;;  %v6404_v17 = vpack.c.bf16 %v3334_v15, %v3326_v14  ;;  %v3242_v14 = vld [vmem:[#allocation9 + $0x4f8] sm:$0xff] }
 0xf20   : > { %6367 = vmatpush1.bf16.msra.mxu1 %v6366_v25  ;;  %v6406_v25 = vpack.c.bf16 %v3333_v19, %v3325_v18  ;;  %v3241_v18 = vld [vmem:[#allocation9 + $0x4f0] sm:$0xff]  ;;  %v3250_v19 = vld [vmem:[#allocation9 + $0x538] sm:$0xff] }
 0xf21   : > { %6369 = vmatprep.subr.bf16.mxu1 %v6368_v26  ;;  %v6472_v26 = vpack.c.bf16 %v3098_v21, %v3090_v20  ;;  %v3258_v20 = vld [vmem:[#allocation9 + $0x578] sm:$0xff] }
 0xf24   : > { %6371 = vmatpush1.bf16.msra.mxu1 %v6370_v30  ;;  %v6474_v30 = vpack.c.bf16 %v3097_v28, %v3089_v27  ;;  %v3257_v27 = vld [vmem:[#allocation9 + $0x570] sm:$0xff]  ;;  %v3266_v28 = vld [vmem:[#allocation9 + $0x5b8] sm:$0xff] }
 0xf25   : > { %6373 = vmatprep.subr.bf16.mxu1 %v6372_v33  ;;  %v6476_v33 = vpack.c.bf16 %v3114_v63, %v3106_v29  ;;  %v3274_v29 = vld [vmem:[#allocation9 + $0x5f8] sm:$0xff] }
 0xf28   : > { %6375 = vmatpush1.bf16.msra.mxu1 %v6374_v38  ;;  %v6478_v38 = vpack.c.bf16 %v3113_v35, %v3105_v34  ;;  %v3273_v34 = vld [vmem:[#allocation9 + $0x5f0] sm:$0xff]  ;;  %v3282_v35 = vld [vmem:[#allocation9 + $0x638] sm:$0xff] }
 0xf29   : > { %6377 = vmatprep.subr.bf16.mxu1 %v6376_v39  ;;  %v6480_v39 = vpack.c.bf16 %v3130_v37, %v3122_v36  ;;  %v3290_v36 = vld [vmem:[#allocation9 + $0x678] sm:$0xff] }
 0xf2c   : > { %6379 = vmatpush1.bf16.msra.mxu1 %v6378_v43  ;;  %v6482_v43 = vpack.c.bf16 %v3129_v41, %v3121_v40  ;;  %v3289_v40 = vld [vmem:[#allocation9 + $0x670] sm:$0xff]  ;;  %v3298_v41 = vld [vmem:[#allocation9 + $0x6b8] sm:$0xff] }
 0xf2d   : > { %6381 = vmatprep.subr.bf16.mxu1 %v6380_v44  ;;  %v6484_v44 = vpack.c.bf16 %v3146_v42, %v3138_v22  ;;  %v3306_v22 = vld [vmem:[#allocation9 + $0x6f8] sm:$0xff] }
 0xf30   : > { %6383 = vmatpush1.bf16.msra.mxu1 %v6382_v48  ;;  %v6486_v48 = vpack.c.bf16 %v3145_v32, %v3137_v45  ;;  %v3305_v45 = vld [vmem:[#allocation9 + $0x6f0] sm:$0xff]  ;;  %v3314_v32 = vld [vmem:[#allocation9 + $0x738] sm:$0xff] }
 0xf31   : > { %6385 = vmatprep.subr.bf16.mxu1 %v6384_v49  ;;  %v6488_v49 = vpack.c.bf16 %v3162_v47, %v3154_v46  ;;  %v3322_v46 = vld [vmem:[#allocation9 + $0x778] sm:$0xff] }
 0xf34   : > { %6387 = vmatpush1.bf16.msra.mxu1 %v6386_v55  ;;  %v6492_v55 = vpack.c.bf16 %v3178_v52, %v3170_v51  ;;  %v3338_v51 = vld [vmem:[#allocation9 + $0x7f8] sm:$0xff] }
 0xf35   : > { %6389 = vmatprep.subr.bf16.mxu1 %v6388_v57  ;;  %v3169_v57 = vld [vmem:[#allocation9 + $0x2b0] sm:$0xff] }
 0xf36   : > { %v6494_v23 = vpack.c.bf16 %v3177_v58, %v3169_v57  ;;  %v3337_v57 = vld [vmem:[#allocation9 + $0x7f0] sm:$0xff] }
 0xf38   : > { %6391 = vmatpush1.bf16.msra.mxu1 %v6390_v60  ;;  %v6496_v60 = vpack.c.bf16 %v3194_v10, %v3186_v59 }
 0xf39   : > { %6393 = vmatprep.subr.bf16.mxu1 %v6392_v0  ;;  %v3185_v0 = vld [vmem:[#allocation9 + $0x330] sm:$0xff] }
 0xf3a   : > { %v6498_v1 = vpack.c.bf16 %v3193_v61, %v3185_v0 }
 0xf3c   : > { %6395 = vmatpush1.bf16.msra.mxu1 %v6394_v3  ;;  %v6500_v3 = vpack.c.bf16 %v3210_v24, %v3202_v62 }
 0xf3d   : > { %6397 = vmatprep.subr.bf16.mxu1 %v6396_v4  ;;  %v3201_v4 = vld [vmem:[#allocation9 + $0x3b0] sm:$0xff] }
 0xf3e   : > { %v6502_v8 = vpack.c.bf16 %v3209_v5, %v3201_v4 }
 0xf40   : > { %6399 = vmatpush1.bf16.msra.mxu1 %v6398_v9  ;;  %v6504_v9 = vpack.c.bf16 %v3226_v7, %v3218_v6 }
 0xf41   : > { %6401 = vmatprep.subr.bf16.mxu1 %v6400_v11  ;;  %v3217_v11 = vld [vmem:[#allocation9 + $0x430] sm:$0xff] }
 0xf42   : > { %v6506_v15 = vpack.c.bf16 %v3225_v12, %v3217_v11 }
 0xf44   : > { %6403 = vmatpush1.bf16.msra.mxu1 %v6402_v16  ;;  %v6508_v16 = vpack.c.bf16 %v3242_v14, %v3234_v13 }
 0xf45   : > { %6405 = vmatprep.subr.bf16.mxu1 %v6404_v17  ;;  %v3233_v17 = vld [vmem:[#allocation9 + $0x4b0] sm:$0xff] }
 0xf46   : > { %v6510_v21 = vpack.c.bf16 %v3241_v18, %v3233_v17 }
 0xf48   : > { %6407 = vmatpush1.bf16.msra.mxu1 %v6406_v25  ;;  %v6512_v25 = vpack.c.bf16 %v3258_v20, %v3250_v19 }
 0xf49   : > { %6473 = vmatprep.subr.bf16.mxu1 %v6472_v26  ;;  %v3249_v26 = vld [vmem:[#allocation9 + $0x530] sm:$0xff] }
 0xf4a   : > { %v6514_v63 = vpack.c.bf16 %v3257_v27, %v3249_v26 }
 0xf4b   : > { %3475 = vmatmul.mubr.f32.vlgmr.msra.gmra.mrb[26].mxu1 %v8278_v56 }
 0xf4c   : > { %6475 = vmatpush1.bf16.msra.mxu1 %v6474_v30  ;;  %3616 = vmatprep.mubr.f32.mxu1 %v8276_v54  ;;  %v3153_v54 = vld [vmem:[#allocation9 + $0x230] sm:$0xff]  ;;  %v6516_v30 = vpack.c.bf16 %v3274_v29, %v3266_v28 }
 0xf4d   : > { %6477 = vmatprep.subr.bf16.mxu1 %v6476_v33  ;;  %v6490_v53 = vpack.c.bf16 %v3161_v50, %v3153_v54  ;;  %v3265_v33 = vld [vmem:[#allocation9 + $0x5b0] sm:$0xff]  ;;  %v3330_v50 = vld [vmem:[#allocation9 + $0x7b8] sm:$0xff] }
 0xf4e   : > { %v6518_v37 = vpack.c.bf16 %v3273_v34, %v3265_v33  ;;  %v3321_v54 = vld [vmem:[#allocation9 + $0x770] sm:$0xff] }
 0xf50   : > { %6479 = vmatpush1.bf16.msra.mxu1 %v6478_v38  ;;  %v6520_v38 = vpack.c.bf16 %v3290_v36, %v3282_v35 }
 0xf51   : > { %6481 = vmatprep.subr.bf16.mxu1 %v6480_v39  ;;  %v3281_v39 = vld [vmem:[#allocation9 + $0x630] sm:$0xff] }
 0xf52   : > { %v6522_v42 = vpack.c.bf16 %v3289_v40, %v3281_v39 }
 0xf54   : > { %6483 = vmatpush1.bf16.msra.mxu1 %v6482_v43  ;;  %v6524_v43 = vpack.c.bf16 %v3306_v22, %v3298_v41 }
 0xf55   : > { %6485 = vmatprep.subr.bf16.mxu1 %v6484_v44  ;;  %v3297_v44 = vld [vmem:[#allocation9 + $0x6b0] sm:$0xff] }
 0xf56   : > { %v6526_v47 = vpack.c.bf16 %v3305_v45, %v3297_v44 }
 0xf58   : > { %6487 = vmatpush1.bf16.msra.mxu1 %v6486_v48  ;;  %v6528_v48 = vpack.c.bf16 %v3322_v46, %v3314_v32 }
 0xf59   : > { %6489 = vmatprep.subr.bf16.mxu1 %v6488_v49  ;;  %v3313_v49 = vld [vmem:[#allocation9 + $0x730] sm:$0xff] }
 0xf5a   : > { %v6530_v52 = vpack.c.bf16 %v3321_v54, %v3313_v49 }
 0xf5c   : > { %6491 = vmatpush1.bf16.msra.mxu1 %v6490_v53  ;;  %v6532_v53 = vpack.c.bf16 %v3338_v51, %v3330_v50 }
 0xf5d   : > { %6493 = vmatprep.subr.bf16.mxu1 %v6492_v55  ;;  %v3329_v55 = vld [vmem:[#allocation9 + $0x7b0] sm:$0xff] }
 0xf5e   : > { %v6534_v58 = vpack.c.bf16 %v3337_v57, %v3329_v55 }
 0xf60   : > { %6495 = vmatpush1.bf16.msra.mxu1 %v6494_v23 }
 0xf61   : > { %6497 = vmatprep.subr.bf16.mxu1 %v6496_v60 }
 0xf64   : > { %6499 = vmatpush1.bf16.msra.mxu1 %v6498_v1 }
 0xf65   : > { %6501 = vmatprep.subr.bf16.mxu1 %v6500_v3 }
 0xf68   : > { %6503 = vmatpush1.bf16.msra.mxu1 %v6502_v8 }
 0xf69   : > { %6505 = vmatprep.subr.bf16.mxu1 %v6504_v9 }
 0xf6c   : > { %6507 = vmatpush1.bf16.msra.mxu1 %v6506_v15 }
 0xf6d   : > { %6509 = vmatprep.subr.bf16.mxu1 %v6508_v16 }
 0xf70   : > { %6511 = vmatpush1.bf16.msra.mxu1 %v6510_v21 }
 0xf71   : > { %6513 = vmatprep.subr.bf16.mxu1 %v6512_v25 }
 0xf74   : > { %6515 = vmatpush1.bf16.msra.mxu1 %v6514_v63 }
 0xf75   : > { %6517 = vmatprep.subr.bf16.mxu1 %v6516_v30 }
 0xf78   : > { %6519 = vmatpush1.bf16.msra.mxu1 %v6518_v37 }
 0xf79   : > { %6521 = vmatprep.subr.bf16.mxu1 %v6520_v38 }
 0xf7c   : > { %6523 = vmatpush1.bf16.msra.mxu1 %v6522_v42 }
 0xf7d   : > { %6525 = vmatprep.subr.bf16.mxu1 %v6524_v43 }
 0xf80   : > { %6527 = vmatpush1.bf16.msra.mxu1 %v6526_v47 }
 0xf81   : > { %6529 = vmatprep.subr.bf16.mxu1 %v6528_v48 }
 0xf84   : > { %6531 = vmatpush1.bf16.msra.mxu1 %v6530_v52 }
 0xf85   : > { %6533 = vmatprep.subr.bf16.mxu1 %v6532_v53 }
 0xf88   : > { %6535 = vmatpush1.bf16.msra.mxu1 %v6534_v58 }
 0xf8b   : > { %3617 = vmatmul.mubr.f32.vlgmr.msra.gmra.mrb[28].mxu1 %v8278_v56 }
 0xf8c   : > { %5294 = vmatprep.mubr.f32.mxu1 %v8060_v31 }
 0xfde   : > { %v3405_v59 = vpop.f32.mrb[24].mxu1  ;;  %v3547_v10 = vpop.f32.mrb[2].mxu0 }
 0xfdf   : > { %v3549_v23 = vpop.f32.mrb[3].mxu0  ;;  %3639 = vrot.lane.b32.xlu0 %v3405_v59, %s6933_s4  ;;  %v3407_v60 = vpop.f32.mrb[25].mxu1 }
 0xfe0   : > { %3641 = vrot.lane.b32.xlu1 %v3407_v60, %s6933_s4 }
 0xfe3   : > { %3647 = vrot.lane.b32.xlu0 %v3547_v10, %s6933_s4 }
 0xfe4   : > { %3649 = vrot.lane.b32.xlu1 %v3549_v23, %s6933_s4 }
0x101e   : > { %v3476_v0 = vpop.f32.mrb[26].mxu1 }
0x101f   : > { %3643 = vrot.lane.b32.xlu0 %v3476_v0, %s6933_s4  ;;  %v3478_v61 = vpop.f32.mrb[27].mxu1 }
0x1020   : > { %3645 = vrot.lane.b32.xlu1 %v3478_v61, %s6933_s4 }
0x1051   : > { %v3640_v56 = vpop.permute.xlu0 %3639 }
0x1052   : > { %3670 = vst.msk [vmem:[#allocation2] sm:$0xff] %vm1803_vm2, %v3640_v56  ;;  %v3642_v3 = vpop.permute.xlu1 %3641 }
0x1053   : > { %v3655_v4 = vsel %vm792_vm3, %v3640_v56, %v3642_v3 }
0x1055   : > { %v3648_v5 = vpop.permute.xlu0 %3647 }
0x1056   : > { %v8305_v6 = vpop.permute.xlu1 %3649 }
0x1057   : > { %v8311_v7 = vsel %vm792_vm3, %v3648_v5, %v8305_v6 }
0x1059   : > { %v3734_v62 = vld [vmem:[#allocation2] sm:$0xff] }
0x105a   : > { %3750 = vrot.lane.b32.xlu1 %v3734_v62, %s9009_s25  ;;  %3695 = vrot.lane.b32.xlu0 %v3734_v62, %s9010_s3  ;;  %4598 = vst [vmem:[#allocation2] sm:$0xff] %v8060_v31 }
0x105e   : > { %v3618_v24 = vpop.f32.mrb[28].mxu1  ;;  %3860 = vrot.lane.b32.xlu1 %v3734_v62, %s6937_s6  ;;  %3805 = vrot.lane.b32.xlu0 %v3734_v62, %s9011_s5 }
0x105f   : > { %v3620_v1 = vpop.f32.mrb[29].mxu1 }
0x1062   : > { %3970 = vrot.lane.b32.xlu1 %v3734_v62, %s6939_s26  ;;  %3915 = vrot.lane.b32.xlu0 %v3734_v62, %s6938_s7 }
0x1066   : > { %4080 = vrot.lane.b32.xlu1 %v3734_v62, %s9012_s22  ;;  %3697 = vrot.lane.b32.xlu0 %v3655_v4, %s9010_s3 }
0x106a   : > { %3705 = vrot.lane.b32.xlu1 %v8311_v7, %s9010_s3  ;;  %3752 = vrot.lane.b32.xlu0 %v3655_v4, %s9009_s25 }
0x106e   : > { %3760 = vrot.lane.b32.xlu1 %v8311_v7, %s9009_s25  ;;  %3807 = vrot.lane.b32.xlu0 %v3655_v4, %s9011_s5 }
0x1072   : > { %3815 = vrot.lane.b32.xlu1 %v8311_v7, %s9011_s5  ;;  %3862 = vrot.lane.b32.xlu0 %v3655_v4, %s6937_s6 }
0x1076   : > { %3870 = vrot.lane.b32.xlu1 %v8311_v7, %s6937_s6  ;;  %3917 = vrot.lane.b32.xlu0 %v3655_v4, %s6938_s7 }
0x107a   : > { %3653 = vrot.lane.b32.xlu1 %v3620_v1, %s6933_s4  ;;  %3972 = vrot.lane.b32.xlu0 %v3655_v4, %s6939_s26 }
0x107e   : > { %4027 = vrot.lane.b32.xlu0 %v3655_v4, %s9013_s2 }
0x1082   : > { %4082 = vrot.lane.b32.xlu0 %v3655_v4, %s9012_s22 }
0x1086   : > { %3651 = vrot.lane.b32.xlu0 %v3618_v24, %s6933_s4 }
0x108a   : > { %4025 = vrot.lane.b32.xlu0 %v3734_v62, %s9013_s2 }
0x108e   : > { %4137 = vrot.lane.b32.xlu0 %v3655_v4, %s9014_s27 }
0x1091   : > { %v3644_v8 = vpop.permute.xlu0 %3643 }
0x1092   : > { %v3656_v9 = vsel %vm792_vm3, %v3642_v3, %v3644_v8  ;;  %v3646_v11 = vpop.permute.xlu1 %3645  ;;  %4135 = vrot.lane.b32.xlu0 %v3734_v62, %s9014_s27 }
0x1093   : > { %3699 = vrot.lane.b32.xlu1 %v3656_v9, %s9010_s3  ;;  %v3657_v12 = vsel %vm792_vm3, %v3644_v8, %v3646_v11  ;;  %v3658_v13 = vsel %vm792_vm3, %v3646_v11, %v3648_v5 }
0x1096   : > { %3701 = vrot.lane.b32.xlu0 %v3657_v12, %s9010_s3 }
0x1097   : > { %3754 = vrot.lane.b32.xlu1 %v3656_v9, %s9009_s25 }
0x109a   : > { %3756 = vrot.lane.b32.xlu0 %v3657_v12, %s9009_s25 }
0x109b   : > { %3809 = vrot.lane.b32.xlu1 %v3656_v9, %s9011_s5 }
0x109e   : > { %3813 = vrot.lane.b32.xlu0 %v3658_v13, %s9011_s5 }
0x109f   : > { %3864 = vrot.lane.b32.xlu1 %v3656_v9, %s6937_s6 }
0x10a2   : > { %3868 = vrot.lane.b32.xlu0 %v3658_v13, %s6937_s6 }
0x10a3   : > { %3919 = vrot.lane.b32.xlu1 %v3656_v9, %s6938_s7 }
0x10a6   : > { %3923 = vrot.lane.b32.xlu0 %v3658_v13, %s6938_s7 }
0x10a7   : > { %3974 = vrot.lane.b32.xlu1 %v3656_v9, %s6939_s26 }
0x10aa   : > { %3978 = vrot.lane.b32.xlu0 %v3658_v13, %s6939_s26 }
0x10ab   : > { %4029 = vrot.lane.b32.xlu1 %v3656_v9, %s9013_s2 }
0x10ae   : > { %4033 = vrot.lane.b32.xlu0 %v3658_v13, %s9013_s2 }
0x10af   : > { %4084 = vrot.lane.b32.xlu1 %v3656_v9, %s9012_s22 }
0x10b2   : > { %4088 = vrot.lane.b32.xlu0 %v3658_v13, %s9012_s22 }
0x10b3   : > { %4139 = vrot.lane.b32.xlu1 %v3656_v9, %s9014_s27 }
0x10b6   : > { %4143 = vrot.lane.b32.xlu0 %v3658_v13, %s9014_s27 }
0x10b7   : > { %3703 = vrot.lane.b32.xlu1 %v3658_v13, %s9010_s3 }
0x10bb   : > { %3758 = vrot.lane.b32.xlu1 %v3658_v13, %s9009_s25 }
0x10bf   : > { %3811 = vrot.lane.b32.xlu1 %v3657_v12, %s9011_s5 }
0x10c3   : > { %3866 = vrot.lane.b32.xlu1 %v3657_v12, %s6937_s6 }
0x10c7   : > { %3921 = vrot.lane.b32.xlu1 %v3657_v12, %s6938_s7 }
0x10cb   : > { %3976 = vrot.lane.b32.xlu1 %v3657_v12, %s6939_s26 }
0x10cc   : > { %v3751_v14 = vpop.permute.xlu1 %3750  ;;  %v3696_v15 = vpop.permute.xlu0 %3695 }
0x10cf   : > { %4031 = vrot.lane.b32.xlu1 %v3657_v12, %s9013_s2 }
0x10d0   : > { %v3861_v16 = vpop.permute.xlu1 %3860  ;;  %v3806_v17 = vpop.permute.xlu0 %3805 }
0x10d3   : > { %4086 = vrot.lane.b32.xlu1 %v3657_v12, %s9012_s22 }
0x10d4   : > { %v8362_v18 = vpop.permute.xlu1 %3970  ;;  %v8364_v19 = vpop.permute.xlu0 %3915 }
0x10d7   : > { %3925 = vrot.lane.b32.xlu1 %v8311_v7, %s6938_s7 }
0x10d8   : > { %v3698_v20 = vpop.permute.xlu0 %3697  ;;  %v8368_v21 = vpop.permute.xlu1 %4080 }
0x10d9   : > { %v3711_v47 = vsel %vm9019_vm4, %v3696_v15, %v3698_v20  ;;  %vm9028_vm4 = vcmask 1031168  }
0x10db   : > { %4141 = vrot.lane.b32.xlu1 %v3657_v12, %s9014_s27 }
0x10dc   : > { %v3753_v25 = vpop.permute.xlu0 %3752  ;;  %v8373_v26 = vpop.permute.xlu1 %3705 }
0x10dd   : > { %v3766_v44 = vsel %vm9016_vm14, %v3751_v14, %v3753_v25 }
0x10de   : > { %v6538_v49 = vpack.c.bf16 %v3766_v44, %v3711_v47 }
0x10df   : > { %3980 = vrot.lane.b32.xlu1 %v8311_v7, %s6939_s26 }
0x10e0   : > { %v3808_v27 = vpop.permute.xlu0 %3807  ;;  %v8377_v29 = vpop.permute.xlu1 %3760 }
0x10e1   : > { %v3821_v55 = vsel %vm9021_vm15, %v3806_v17, %v3808_v27  ;;  %vm9030_vm15 = vmmov %vm9028_vm4 }
0x10e3   : > { %4035 = vrot.lane.b32.xlu1 %v8311_v7, %s9013_s2 }
0x10e4   : > { %v3863_v28 = vpop.permute.xlu0 %3862  ;;  %v8383_v30 = vpop.permute.xlu1 %3815 }
0x10e5   : > { %v3876_v50 = vsel %vm849_vm9, %v3861_v16, %v3863_v28  ;;  %v8477_v16 = vld [vmem:[%s8927_s11] sm:$0xff] }
0x10e6   : > { %v6542_v58 = vpack.c.bf16 %v3876_v50, %v3821_v55 }
0x10e7   : > { %4090 = vrot.lane.b32.xlu1 %v8311_v7, %s9012_s22 }
0x10e8   : > { %v3918_v63 = vpop.permute.xlu0 %3917  ;;  %v8387_v35 = vpop.permute.xlu1 %3870 }
0x10e9   : > { %v3931_v56 = vsel %vm862_vm10, %v8364_v19, %v3918_v63  ;;  %v4247_v19 = vld [vmem:[%s8928_s12] sm:$0xff] }
0x10eb   : > { %4145 = vrot.lane.b32.xlu1 %v8311_v7, %s9014_s27 }
0x10ec   : > { %v3973_v33 = vpop.permute.xlu0 %3972  ;;  %v3654_v37 = vpop.permute.xlu1 %3653 }
0x10ed   : > { %v3986_v23 = vsel %vm875_vm11, %v8362_v18, %v3973_v33 }
0x10ee   : > { %v6546_v1 = vpack.c.bf16 %v3986_v23, %v3931_v56 }
0x10f0   : > { %v8385_v34 = vpop.permute.xlu0 %4027 }
0x10f4   : > { %v8389_v36 = vpop.permute.xlu0 %4082 }
0x10f8   : > { %v3652_v38 = vpop.permute.xlu0 %3651 }
0x10f9   : > { %v3660_v39 = vsel %vm792_vm3, %v8305_v6, %v3652_v38  ;;  %v3661_v40 = vsel %vm792_vm3, %v3652_v38, %v3654_v37 }
0x10fa   : > { %3678 = vst.msk [vmem:[#allocation2 + $0x38] sm:$0xff] %vm3677_vm12, %v3661_v40  ;;  %3707 = vrot.lane.b32.xlu0 %v3660_v39, %s9010_s3 }
0x10fc   : > { %v4026_v42 = vpop.permute.xlu0 %4025 }
0x10fd   : > { %v4041_v4 = vsel %vm9022_vm7, %v4026_v42, %v8385_v34 }
0x10fe   : > { %3762 = vrot.lane.b32.xlu0 %v3660_v39, %s9009_s25 }
0x1100   : > { %v4138_v54 = vpop.permute.xlu0 %4137 }
0x1101   : > { %v8397_v41 = vld [vmem:[#allocation2 + $0x38] sm:$0xff] }
0x1102   : > { %3709 = vrot.lane.b32.xlu1 %v8397_v41, %s9010_s3  ;;  %3817 = vrot.lane.b32.xlu0 %v3660_v39, %s9011_s5  ;;  %4605 = vst.msk [vmem:[#allocation2 + $0x38] sm:$0xff] %vm9015_vm13, %v8060_v31  ;;  %vm9024_vm13 = vcmask 539648  }
0x1103   : > { %vm9025_vm14 = vmmov %vm9024_vm13 }
0x1104   : > { %v4136_v59 = vpop.permute.xlu0 %4135  ;;  %v4096_v9 = vsel %vm9025_vm14, %v8368_v21, %v8389_v36  ;;  %vm9034_vm14 = vcmask 547840  }
0x1105   : > { %v8404_v22 = vpop.permute.xlu1 %3699  ;;  %v6550_v12 = vpack.c.bf16 %v4096_v9, %v4041_v4 }
0x1106   : > { %3819 = vrot.lane.b32.xlu1 %v8397_v41, %s9011_s5  ;;  %3872 = vrot.lane.b32.xlu0 %v3660_v39, %s6937_s6  ;;  %v3712_v45 = vsel %vm9017_vm6, %v3698_v20, %v8404_v22  ;;  %vm9026_vm6 = vcmask 531456  }
0x1108   : > { %v3702_v62 = vpop.permute.xlu0 %3701 }
0x1109   : > { %v8409_v43 = vpop.permute.xlu1 %3754 }
0x110a   : > { %3929 = vrot.lane.b32.xlu1 %v8397_v41, %s6938_s7  ;;  %v3767_v32 = vsel %vm9018_vm1, %v3753_v25, %v8409_v43  ;;  %3927 = vrot.lane.b32.xlu0 %v3660_v39, %s6938_s7  ;;  %vm9027_vm1 = vmmov %vm9026_vm6 }
0x110b   : > { %v6536_v46 = vpack.c.bf16 %v3767_v32, %v3712_v45  ;;  %v4151_v17 = vsel %vm9027_vm1, %v4136_v59, %v4138_v54  ;;  %vm9036_vm1 = vcmask 539648  }
0x110c   : > { %v3757_v5 = vpop.permute.xlu0 %3756 }
0x110d   : > { %v8420_v48 = vpop.permute.xlu1 %3809  ;;  %6537 = vmatprep.subr.bf16.mxu0 %v6536_v46  ;;  %v3768_v20 = vsel %vm9028_vm4, %v8409_v43, %v3757_v5  ;;  %vm9037_vm4 = vmmov %vm9036_vm1 }
0x110e   : > { %4039 = vrot.lane.b32.xlu1 %v8397_v41, %s9013_s2  ;;  %3982 = vrot.lane.b32.xlu0 %v3660_v39, %s6939_s26  ;;  %v3822_v52 = vsel %vm9020_vm0, %v3808_v27, %v8420_v48  ;;  %vm9029_vm0 = vcmask 1039360  }
0x110f   : > { %6539 = vmatpush1.bf16.msra.mxu0 %v6538_v49  ;;  %vm9031_vm7 = vmmov %vm9029_vm0 }
0x1110   : > { %v8472_v15 = vpop.permute.xlu0 %3813 }
0x1111   : > { %v8426_v51 = vpop.permute.xlu1 %3864 }
0x1112   : > { %4149 = vrot.lane.b32.xlu1 %v8397_v41, %s9014_s27  ;;  %v3877_v53 = vsel %vm849_vm9, %v3863_v28, %v8426_v51  ;;  %4037 = vrot.lane.b32.xlu0 %v3660_v39, %s9013_s2 }
0x1113   : > { %v6540_v57 = vpack.c.bf16 %v3877_v53, %v3822_v52 }
0x1114   : > { %v8492_v21 = vpop.permute.xlu0 %3868 }
0x1115   : > { %v8436_v10 = vpop.permute.xlu1 %3919  ;;  %6541 = vmatprep.subr.bf16.mxu0 %v6540_v57 }
0x1116   : > { %4092 = vrot.lane.b32.xlu0 %v3660_v39, %s9012_s22  ;;  %6543 = vmatpush1.bf16.msra.mxu0 %v6542_v58  ;;  %v3932_v0 = vsel %vm862_vm10, %v3918_v63, %v8436_v10  ;;  %v3713_v63 = vsel %vm9031_vm7, %v8404_v22, %v3702_v62  ;;  %vm9040_vm7 = vcmask 1031168  }
0x1118   : > { %v8499_v37 = vpop.permute.xlu0 %3923 }
0x1119   : > { %v8441_v60 = vpop.permute.xlu1 %3974 }
0x111a   : > { %v3987_v61 = vsel %vm875_vm11, %v3973_v33, %v8441_v60  ;;  %4147 = vrot.lane.b32.xlu0 %v3660_v39, %s9014_s27 }
0x111b   : > { %v6544_v24 = vpack.c.bf16 %v3987_v61, %v3932_v0 }
0x111c   : > { %v8509_v44 = vpop.permute.xlu0 %3978 }
0x111d   : > { %v8450_v3 = vpop.permute.xlu1 %4029  ;;  %6545 = vmatprep.subr.bf16.mxu0 %v6544_v24 }
0x111e   : > { %3764 = vrot.lane.b32.xlu0 %v8397_v41, %s9009_s25  ;;  %6547 = vmatpush1.bf16.msra.mxu0 %v6546_v1  ;;  %v4042_v7 = vsel %vm9023_vm8, %v8385_v34, %v8450_v3  ;;  %v6554_v34 = vpack.c.bf16 %v3768_v20, %v3713_v63  ;;  %vm9032_vm8 = vcmask 1022976   ;;  %v3880_v20 = vsel %vm849_vm9, %v8492_v21, %v8387_v35 }
0x1121   : > { %v4085_v6 = vpop.permute.xlu1 %4084 }
0x1122   : > { %v4097_v8 = vsel %vm9024_vm13, %v8389_v36, %v4085_v6  ;;  %3874 = vrot.lane.b32.xlu0 %v8397_v41, %s6937_s6  ;;  %vm9033_vm13 = vmmov %vm9032_vm8 }
0x1123   : > { %v6548_v11 = vpack.c.bf16 %v4097_v8, %v4042_v7 }
0x1125   : > { %v8466_v13 = vpop.permute.xlu1 %4139  ;;  %6549 = vmatprep.subr.bf16.mxu0 %v6548_v11 }
0x1126   : > { %v4152_v14 = vsel %vm9026_vm6, %v4138_v54, %v8466_v13  ;;  %3984 = vrot.lane.b32.xlu0 %v8397_v41, %s6939_s26  ;;  %6551 = vmatpush1.bf16.msra.mxu0 %v6550_v12  ;;  %v8519_v54 = vpop.permute.xlu0 %4033  ;;  %vm9035_vm6 = vmmov %vm9034_vm14 }
0x1127   : > { %4272 = vmatprep.subr.mxu0 %v4152_v14 }
0x1129   : > { %v8480_v18 = vpop.permute.xlu1 %3703 }
0x112a   : > { %4094 = vrot.lane.b32.xlu0 %v8397_v41, %s9012_s22  ;;  %4273 = vmatpush1.msra.mxu0 %v4151_v17  ;;  %v3714_v27 = vsel %vm9029_vm0, %v3702_v62, %v8480_v18  ;;  %v8521_v53 = vpop.permute.xlu0 %4088  ;;  %vm9038_vm0 = vcmask 531456  }
0x112b   : > { %5739 = vmatmul.mubr.msk.f32.vlgmr.msra.gmra.mrb[4].mxu0 %vm2000_vm5, %v8477_v16 }
0x112c   : > { %4391 = vmatprep.mubr.f32.mxu0 %v8060_v31 }
0x112d   : > { %v3759_v25 = vpop.permute.xlu1 %3758 }
0x112e   : > { %v3769_v28 = vsel %vm9030_vm15, %v3757_v5, %v3759_v25  ;;  %4250 = vperm.xlu0 %6754, %v4247_v19   ;;  %v8530_v61 = vpop.permute.xlu0 %4143  ;;  %vm9039_vm15 = vmmov %vm9038_vm0 }
0x112f   : > { %v6552_v33 = vpack.c.bf16 %v3769_v28, %v3714_v27 }
0x1131   : > { %v3812_v36 = vpop.permute.xlu1 %3811  ;;  %6553 = vmatprep.subr.bf16.mxu0 %v6552_v33 }
0x1132   : > { %6555 = vmatpush1.bf16.msra.mxu0 %v6554_v34  ;;  %v3823_v39 = vsel %vm9032_vm8, %v8420_v48, %v3812_v36  ;;  %v3824_v40 = vsel %vm9033_vm13, %v3812_v36, %v8472_v15  ;;  %vm9041_vm8 = vcmask 1039360   ;;  %vm9042_vm13 = vmmov %vm9040_vm7 }
0x1135   : > { %v3867_v38 = vpop.permute.xlu1 %3866 }
0x1136   : > { %v3878_v41 = vsel %vm849_vm9, %v8426_v51, %v3867_v38  ;;  %v3879_v22 = vsel %vm849_vm9, %v3867_v38, %v8492_v21 }
0x1137   : > { %v6556_v42 = vpack.c.bf16 %v3879_v22, %v3824_v40  ;;  %v6558_v43 = vpack.c.bf16 %v3878_v41, %v3823_v39 }
0x1139   : > { %v3922_v45 = vpop.permute.xlu1 %3921  ;;  %6557 = vmatprep.subr.bf16.mxu0 %v6556_v42 }
0x113a   : > { %6559 = vmatpush1.bf16.msra.mxu0 %v6558_v43  ;;  %v3933_v46 = vsel %vm862_vm10, %v8436_v10, %v3922_v45  ;;  %v3934_v47 = vsel %vm862_vm10, %v3922_v45, %v8499_v37 }
0x113d   : > { %v3977_v32 = vpop.permute.xlu1 %3976 }
0x113e   : > { %v3988_v48 = vsel %vm875_vm11, %v8441_v60, %v3977_v32  ;;  %v3989_v49 = vsel %vm875_vm11, %v3977_v32, %v8509_v44 }
0x113f   : > { %v6560_v50 = vpack.c.bf16 %v3989_v49, %v3934_v47  ;;  %v6562_v51 = vpack.c.bf16 %v3988_v48, %v3933_v46 }
0x1141   : > { %v4032_v52 = vpop.permute.xlu1 %4031  ;;  %6561 = vmatprep.subr.bf16.mxu0 %v6560_v50 }
0x1142   : > { %6563 = vmatpush1.bf16.msra.mxu0 %v6562_v51  ;;  %v4043_v57 = vsel %vm9034_vm14, %v8450_v3, %v4032_v52  ;;  %v4044_v58 = vsel %vm9035_vm6, %v4032_v52, %v8519_v54  ;;  %vm9043_vm14 = vmmov %vm9041_vm8  ;;  %vm9044_vm6 = vcmask 31744  }
0x1143   : > { %v3715_v12 = vsel %vm9043_vm14, %v8480_v18, %v8373_v26  ;;  %vm9052_vm14 = vcmask 547840  }
0x1145   : > { %v4087_v55 = vpop.permute.xlu1 %4086 }
0x1146   : > { %v4098_v59 = vsel %vm9036_vm1, %v4085_v6, %v4087_v55  ;;  %v4099_v10 = vsel %vm9037_vm4, %v4087_v55, %v8521_v53  ;;  %v3770_v6 = vsel %vm9040_vm7, %v3759_v25, %v8377_v29  ;;  %vm9045_vm1 = vmmov %vm9044_vm6  ;;  %vm9046_vm4 = vcmask 1022976  }
0x1147   : > { %v6564_v23 = vpack.c.bf16 %v4099_v10, %v4044_v58  ;;  %v6566_v60 = vpack.c.bf16 %v4098_v59, %v4043_v57  ;;  %v6570_v14 = vpack.c.bf16 %v3770_v6, %v3715_v12  ;;  %vm9049_vm7 = vmmov %vm9045_vm1 }
0x1149   : > { %v3926_v0 = vpop.permute.xlu1 %3925  ;;  %6565 = vmatprep.subr.bf16.mxu0 %v6564_v23 }
0x114a   : > { %6567 = vmatpush1.bf16.msra.mxu0 %v6566_v60  ;;  %v3935_v38 = vsel %vm862_vm10, %v8499_v37, %v3926_v0 }
0x114d   : > { %v4142_v56 = vpop.permute.xlu1 %4141 }
0x114e   : > { %v4153_v62 = vsel %vm9038_vm0, %v8466_v13, %v4142_v56  ;;  %v4154_v24 = vsel %vm9039_vm15, %v4142_v56, %v8530_v61  ;;  %vm9047_vm0 = vmmov %vm9046_vm4 }
0x114f   : > { %4343 = vmatprep.subr.mxu0 %v4154_v24  ;;  %v3825_v18 = vsel %vm9047_vm0, %v8472_v15, %v8383_v30  ;;  %vm9048_vm15 = vmmov %vm9045_vm1 }
0x1150   : > { %4344 = vmatpush1.msra.mxu0 %v4153_v62  ;;  %v6574_v63 = vpack.c.bf16 %v3880_v20, %v3825_v18 }
0x1151   : > { %5740 = vmatmul.mubr.msk.f32.vlgmr.msra.gmra.mrb[6].mxu0 %vm2000_vm5, %v8477_v16  ;;  %v3981_v1 = vpop.permute.xlu1 %3980 }
0x1152   : > { %4462 = vmatprep.mubr.f32.mxu0 %v8060_v31  ;;  %v3990_v34 = vsel %vm875_vm11, %v8509_v44, %v3981_v1 }
0x1153   : > { %v6578_v40 = vpack.c.bf16 %v3990_v34, %v3935_v38 }
0x1155   : > { %v4036_v3 = vpop.permute.xlu1 %4035 }
0x1159   : > { %v4091_v4 = vpop.permute.xlu1 %4090 }
0x115d   : > { %v4146_v7 = vpop.permute.xlu1 %4145 }
0x116c   : > { %v8539_v5 = vpop.permute.xlu0 %3707 }
0x116d   : > { %v3716_v9 = vsel %vm9041_vm8, %v8373_v26, %v8539_v5  ;;  %vm9050_vm8 = vmmov %vm9045_vm1 }
0x1170   : > { %v3763_v8 = vpop.permute.xlu0 %3762 }
0x1171   : > { %v3771_v11 = vsel %vm9042_vm13, %v8377_v29, %v3763_v8  ;;  %vm9051_vm13 = vcmask 539648  }
0x1172   : > { %v6568_v13 = vpack.c.bf16 %v3771_v11, %v3716_v9  ;;  %v4100_v42 = vsel %vm9051_vm13, %v8521_v53, %v4091_v4 }
0x1174   : > { %v3710_v17 = vpop.permute.xlu1 %3709  ;;  %v8551_v19 = vpop.permute.xlu0 %3817  ;;  %6569 = vmatprep.subr.bf16.mxu0 %v6568_v13 }
0x1175   : > { %3733 = vst.msk [vmem:[#allocation3 + $0x38] sm:$0xff] %vm9044_vm6, %v3710_v17  ;;  %6571 = vmatpush1.bf16.msra.mxu0 %v6570_v14  ;;  %v3826_v26 = vsel %vm9046_vm4, %v8383_v30, %v8551_v19  ;;  %vm9053_vm6 = vmmov %vm9051_vm13  ;;  %vm9055_vm4 = vcmask 531456   ;;  %vm9059_vm13 = vcmask 1039360  }
0x1176   : > { %vm9056_vm0 = vmmov %vm9055_vm4  ;;  %v3717_v57 = vsel %vm9059_vm13, %v8539_v5, %v3710_v17 }
0x1177   : > { %v4155_v49 = vsel %vm9056_vm0, %v8530_v61, %v4146_v7  ;;  %vm9064_vm0 = vcmask 547840  }
0x1178   : > { %v3820_v25 = vpop.permute.xlu1 %3819  ;;  %v3873_v27 = vpop.permute.xlu0 %3872 }
0x1179   : > { %3843 = vst.msk [vmem:[#allocation3 + $0xb8] sm:$0xff] %vm9045_vm1, %v3820_v25  ;;  %v3881_v29 = vsel %vm849_vm9, %v8387_v35, %v3873_v27  ;;  %vm9054_vm1 = vmmov %vm9052_vm14 }
0x117a   : > { %v6572_v28 = vpack.c.bf16 %v3881_v29, %v3826_v26  ;;  %v4045_v37 = vsel %vm9054_vm1, %v8519_v54, %v4036_v3  ;;  %vm9062_vm1 = vmmov %vm9049_vm7 }
0x117b   : > { %v6582_v46 = vpack.c.bf16 %v4100_v42, %v4045_v37 }
0x117c   : > { %v8566_v33 = vpop.permute.xlu1 %3929  ;;  %v3928_v21 = vpop.permute.xlu0 %3927  ;;  %6573 = vmatprep.subr.bf16.mxu0 %v6572_v28  ;;  %v4182_v53 = vld [vmem:[#allocation3 + $0x38] sm:$0xff] }
0x117d   : > { %3953 = vst.msk [vmem:[#allocation3 + $0x138] sm:$0xff] %vm9048_vm15, %v8566_v33  ;;  %6575 = vmatpush1.bf16.msra.mxu0 %v6574_v63  ;;  %v3936_v30 = vsel %vm862_vm10, %v3926_v0, %v3928_v21  ;;  %vm9057_vm15 = vmmov %vm9049_vm7 }
0x1180   : > { %v8572_v36 = vpop.permute.xlu1 %4039  ;;  %v3983_v35 = vpop.permute.xlu0 %3982  ;;  %v4198_v60 = vld [vmem:[#allocation3 + $0xb8] sm:$0xff] }
0x1181   : > { %4063 = vst.msk [vmem:[#allocation3 + $0x1b8] sm:$0xff] %vm9049_vm7, %v8572_v36  ;;  %v3991_v15 = vsel %vm875_vm11, %v3981_v1, %v3983_v35 }
0x1182   : > { %v6576_v39 = vpack.c.bf16 %v3991_v15, %v3936_v30 }
0x1184   : > { %v8580_v41 = vpop.permute.xlu1 %4149  ;;  %v4038_v22 = vpop.permute.xlu0 %4037  ;;  %6577 = vmatprep.subr.bf16.mxu0 %v6576_v39  ;;  %v4214_v1 = vld [vmem:[#allocation3 + $0x138] sm:$0xff] }
0x1185   : > { %4173 = vst.msk [vmem:[#allocation3 + $0x238] sm:$0xff] %vm9050_vm8, %v8580_v41  ;;  %6579 = vmatpush1.bf16.msra.mxu0 %v6578_v40  ;;  %v4046_v44 = vsel %vm9052_vm14, %v4036_v3, %v4038_v22  ;;  %vm9058_vm8 = vcmask 1031168   ;;  %vm9060_vm14 = vmmov %vm9049_vm7  ;;  %v4047_v11 = vsel %vm9064_vm0, %v4038_v22, %v8572_v36 }
0x1188   : > { %v4093_v43 = vpop.permute.xlu0 %4092 }
0x1189   : > { %v4101_v45 = vsel %vm9053_vm6, %v4091_v4, %v4093_v43  ;;  %vm9061_vm6 = vcmask 1022976   ;;  %v3937_v4 = vsel %vm862_vm10, %v3928_v21, %v8566_v33 }
0x118a   : > { %v6580_v32 = vpack.c.bf16 %v4101_v45, %v4046_v44  ;;  %v3827_v61 = vsel %vm9061_vm6, %v8551_v19, %v3820_v25  ;;  %v4551_v19 = vshrl.u32 %v795_v2, 7  ;;  %v4548_v25 = vld [vmem:[%s8937_s21] sm:$0xff] }
0x118c   : > { %v4148_v47 = vpop.permute.xlu0 %4147  ;;  %6581 = vmatprep.subr.bf16.mxu0 %v6580_v32  ;;  %v4246_v14 = vld [vmem:[#allocation3 + $0x238] sm:$0xff]  ;;  %v4552_v20 = vsub.s32 0, %v4551_v19  ;;  %v4560_v2 = vsub.s32 2, %v4551_v19  ;;  %v4564_v30 = vsub.s32 3, %v4551_v19  ;;  %v4568_v37 = vsub.s32 4, %v4551_v19 }
0x118d   : > { %v4156_v48 = vsel %vm9055_vm4, %v4146_v7, %v4148_v47  ;;  %6583 = vmatpush1.bf16.msra.mxu0 %v6582_v46  ;;  %vm9063_vm4 = vcmask 539648   ;;  %v4572_v32 = vsub.s32 5, %v4551_v19 }
0x118e   : > { %4414 = vmatprep.subr.mxu0 %v4156_v48  ;;  %v4553_v28 = vrot.slane %v4548_v25, %v4552_v20  ;;  %v4561_v39 = vrot.slane %v4548_v25, %v4560_v2  ;;  %v4565_v22 = vrot.slane %v4548_v25, %v4564_v30  ;;  %v4569_v48 = vrot.slane %v4548_v25, %v4568_v37 }
0x1190   : > { %v3765_v50 = vpop.permute.xlu0 %3764 }
0x1191   : > { %3788 = vst.msk [vmem:[#allocation3 + $0x78] sm:$0xff] %vm9057_vm15, %v3765_v50  ;;  %4415 = vmatpush1.msra.mxu0 %v4155_v49  ;;  %v3772_v51 = vsel %vm9058_vm8, %v3763_v8, %v3765_v50  ;;  %v4230_v8 = vld [vmem:[#allocation3 + $0x1b8] sm:$0xff]  ;;  %vm9065_vm15 = vcmask 531456  }
0x1192   : > { %5741 = vmatmul.mubr.msk.f32.vlgmr.msra.gmra.mrb[8].mxu0 %vm2000_vm5, %v8477_v16  ;;  %v6586_v59 = vpack.c.bf16 %v3772_v51, %v3717_v57  ;;  %v4157_v17 = vsel %vm9065_vm15, %v4148_v47, %v8580_v41 }
0x1193   : > { %4533 = vmatprep.mubr.f32.mxu0 %v8060_v31 }
0x1194   : > { %v3875_v54 = vpop.permute.xlu0 %3874 }
0x1195   : > { %3898 = vst.msk [vmem:[#allocation3 + $0xf8] sm:$0xff] %vm9049_vm7, %v3875_v54  ;;  %v3882_v10 = vsel %vm849_vm9, %v3873_v27, %v3875_v54  ;;  %v4556_v27 = vsub.s32 1, %v4551_v19  ;;  %v4573_v54 = vrot.slane %v4548_v25, %v4572_v32  ;;  %vm9069_vm7 = vmmov %vm9058_vm8 }
0x1196   : > { %v6590_v62 = vpack.c.bf16 %v3882_v10, %v3827_v61  ;;  %v4576_v10 = vsub.s32 6, %v4551_v19 }
0x1197   : > { %v4557_v21 = vrot.slane %v4548_v25, %v4556_v27 }
0x1198   : > { %v3985_v52 = vpop.permute.xlu0 %3984  ;;  %v4190_v55 = vld [vmem:[#allocation3 + $0x78] sm:$0xff]  ;;  %v4577_v61 = vrot.slane %v4548_v25, %v4576_v10 }
0x1199   : > { %4008 = vst.msk [vmem:[#allocation3 + $0x178] sm:$0xff] %vm9060_vm14, %v3985_v52  ;;  %v6584_v58 = vpack.c.bf16 %v4190_v55, %v4182_v53  ;;  %v3992_v24 = vsel %vm875_vm11, %v3983_v35, %v3985_v52  ;;  %vm9073_vm14 = vmmov %vm9064_vm0 }
0x119a   : > { %v6594_v6 = vpack.c.bf16 %v3992_v24, %v3937_v4 }
0x119b   : > { %6585 = vmatprep.subr.bf16.mxu0 %v6584_v58 }
0x119c   : > { %6587 = vmatpush1.bf16.msra.mxu0 %v6586_v59  ;;  %v4095_v23 = vpop.permute.xlu0 %4094  ;;  %v4206_v0 = vld [vmem:[#allocation3 + $0xf8] sm:$0xff] }
0x119d   : > { %4118 = vst.msk [vmem:[#allocation3 + $0x1f8] sm:$0xff] %vm9062_vm1, %v4095_v23  ;;  %v6588_v56 = vpack.c.bf16 %v4206_v0, %v4198_v60  ;;  %v4102_v7 = vsel %vm9063_vm4, %v4093_v43, %v4095_v23  ;;  %v4580_v23 = vsub.s32 7, %v4551_v19  ;;  %vm9075_vm1 = vmmov %vm9063_vm4 }
0x119e   : > { %v6598_v13 = vpack.c.bf16 %v4102_v7, %v4047_v11  ;;  %vm9076_vm4 = vmmov %vm9075_vm1 }
0x119f   : > { %6589 = vmatprep.subr.bf16.mxu0 %v6588_v56  ;;  %v4581_v24 = vrot.slane %v4548_v25, %v4580_v23 }
0x11a0   : > { %6591 = vmatpush1.bf16.msra.mxu0 %v6590_v62  ;;  %v4222_v3 = vld [vmem:[#allocation3 + $0x178] sm:$0xff] }
0x11a1   : > { %v6592_v5 = vpack.c.bf16 %v4222_v3, %v4214_v1 }
0x11a3   : > { %6593 = vmatprep.subr.bf16.mxu0 %v6592_v5 }
0x11a4   : > { %6595 = vmatpush1.bf16.msra.mxu0 %v6594_v6  ;;  %v4238_v9 = vld [vmem:[#allocation3 + $0x1f8] sm:$0xff] }
0x11a5   : > { %v6596_v12 = vpack.c.bf16 %v4238_v9, %v4230_v8 }
0x11a7   : > { %6597 = vmatprep.subr.bf16.mxu0 %v6596_v12 }
0x11a8   : > { %6599 = vmatpush1.bf16.msra.mxu0 %v6598_v13 }
0x11a9   : > { %4485 = vmatprep.subr.mxu0 %v4246_v14 }
0x11ac   : > { %4486 = vmatpush1.msra.mxu0 %v4157_v17 }
0x11ad   : > { %5742 = vmatmul.mubr.msk.f32.vlgmr.msra.gmra.mrb[10].mxu0 %vm2000_vm5, %v8477_v16  ;;  %v4251_v26 = vpop.permute.xlu0 %4250 }
0x11ae   : > { %5365 = vmatprep.mubr.f32.mxu0 %v8060_v31 }
0x11fe   : > { %v4322_v29 = vpop.f32.mrb[4].mxu0 }
0x11ff   : > { %v4323_v18 = vadd.f32 %v4322_v29, %v4251_v26  ;;  %v4324_v63 = vpop.f32.mrb[5].mxu0 }
0x1200   : > { %v4325_v33 = vadd.f32 %v4324_v63, %v4251_v26 }
0x1201   : > { %v4540_v34 = vmax.f32 %v4323_v18, 0.0 }
0x1202   : > { %v4541_v36 = vmax.f32 %v4325_v33, 0.0 }
0x1203   : > { %v4590_v16 = vmul.f32 %v4553_v28, %v4540_v34 }
0x1204   : > { %v4591_v35 = vmul.f32 %v4557_v21, %v4541_v36 }
0x1205   : > { %4614 = vrot.lane.b32.xlu1 %v4590_v16, %s6933_s4 }
0x1206   : > { %4616 = vrot.lane.b32.xlu0 %v4591_v35, %s6933_s4 }
0x1224   : > { %v4393_v15 = vpop.f32.mrb[6].mxu0 }
0x1225   : > { %v4394_v38 = vadd.f32 %v4393_v15, %v4251_v26  ;;  %v4395_v40 = vpop.f32.mrb[7].mxu0 }
0x1226   : > { %v4396_v41 = vadd.f32 %v4395_v40, %v4251_v26 }
0x1227   : > { %v4542_v42 = vmax.f32 %v4394_v38, 0.0 }
0x1228   : > { %v4543_v43 = vmax.f32 %v4396_v41, 0.0 }
0x1229   : > { %v4592_v44 = vmul.f32 %v4561_v39, %v4542_v42 }
0x122a   : > { %v4593_v45 = vmul.f32 %v4565_v22, %v4543_v43 }
0x122b   : > { %4618 = vrot.lane.b32.xlu1 %v4592_v44, %s6933_s4 }
0x122c   : > { %4620 = vrot.lane.b32.xlu0 %v4593_v45, %s6933_s4 }
0x1265   : > { %v4464_v46 = vpop.f32.mrb[8].mxu0 }
0x1266   : > { %v4465_v47 = vadd.f32 %v4464_v46, %v4251_v26  ;;  %v4466_v49 = vpop.f32.mrb[9].mxu0 }
0x1267   : > { %v4467_v50 = vadd.f32 %v4466_v49, %v4251_v26 }
0x1268   : > { %v4544_v51 = vmax.f32 %v4465_v47, 0.0 }
0x1269   : > { %v4545_v52 = vmax.f32 %v4467_v50, 0.0 }
0x126a   : > { %v4594_v53 = vmul.f32 %v4569_v48, %v4544_v51 }
0x126b   : > { %v4595_v55 = vmul.f32 %v4573_v54, %v4545_v52 }
0x126c   : > { %4622 = vrot.lane.b32.xlu1 %v4594_v53, %s6933_s4 }
0x126d   : > { %4624 = vrot.lane.b32.xlu0 %v4595_v55, %s6933_s4 }
0x1277   : > { %v4615_v57 = vpop.permute.xlu1 %4614 }
0x1278   : > { %4645 = vst.msk [vmem:[#allocation2] sm:$0xff] %vm1803_vm2, %v4615_v57  ;;  %v4617_v58 = vpop.permute.xlu0 %4616 }
0x1279   : > { %v4630_v59 = vsel %vm792_vm3, %v4615_v57, %v4617_v58 }
0x127a   : > { %4646 = vst [vmem:[#allocation2 + $0x8] sm:$0xff] %v4630_v59 }
0x127f   : > { %v4653_v6 = vld [vmem:[#allocation2] sm:$0xff] }
0x1280   : > { %v4535_v60 = vpop.f32.mrb[10].mxu0 }
0x1281   : > { %v4536_v0 = vadd.f32 %v4535_v60, %v4251_v26  ;;  %v4537_v56 = vpop.f32.mrb[11].mxu0 }
0x1282   : > { %v4538_v62 = vadd.f32 %v4537_v56, %v4251_v26 }
0x1283   : > { %v4546_v1 = vmax.f32 %v4536_v0, 0.0 }
0x1284   : > { %v4547_v3 = vmax.f32 %v4538_v62, 0.0 }
0x1285   : > { %v4596_v4 = vmul.f32 %v4577_v61, %v4546_v1 }
0x1286   : > { %v4597_v5 = vmul.f32 %v4581_v24, %v4547_v3 }
0x1287   : > { %4626 = vrot.lane.b32.xlu1 %v4596_v4, %s6933_s4 }
0x1288   : > { %4628 = vrot.lane.b32.xlu0 %v4597_v5, %s6933_s4 }
0x128b   : > { %4669 = vrot.lane.b32.xlu1 %v4653_v6, %s9010_s3 }
0x128c   : > { %4724 = vrot.lane.b32.xlu0 %v4653_v6, %s9009_s25 }
0x128f   : > { %4779 = vrot.lane.b32.xlu1 %v4653_v6, %s9011_s5 }
0x1290   : > { %4834 = vrot.lane.b32.xlu0 %v4653_v6, %s6937_s6 }
0x1293   : > { %4889 = vrot.lane.b32.xlu1 %v4653_v6, %s6938_s7 }
0x1294   : > { %4944 = vrot.lane.b32.xlu0 %v4653_v6, %s6939_s26 }
0x1297   : > { %4999 = vrot.lane.b32.xlu1 %v4653_v6, %s9013_s2 }
0x1298   : > { %5054 = vrot.lane.b32.xlu0 %v4653_v6, %s9012_s22 }
0x129b   : > { %5109 = vrot.lane.b32.xlu1 %v4653_v6, %s9014_s27 }
0x129d   : > { %v4619_v7 = vpop.permute.xlu1 %4618 }
0x129e   : > { %v4631_v8 = vsel %vm792_vm3, %v4617_v58, %v4619_v7  ;;  %v4621_v9 = vpop.permute.xlu0 %4620 }
0x129f   : > { %4671 = vrot.lane.b32.xlu1 %v4630_v59, %s9010_s3  ;;  %4647 = vst [vmem:[#allocation2 + $0x10] sm:$0xff] %v4631_v8  ;;  %v4632_v11 = vsel %vm792_vm3, %v4619_v7, %v4621_v9  ;;  %4673 = vrot.lane.b32.xlu0 %v4631_v8, %s9010_s3 }
0x12a0   : > { %4648 = vst [vmem:[#allocation2 + $0x18] sm:$0xff] %v4632_v11 }
0x12a3   : > { %4726 = vrot.lane.b32.xlu1 %v4630_v59, %s9009_s25  ;;  %4728 = vrot.lane.b32.xlu0 %v4631_v8, %s9009_s25 }
0x12a7   : > { %4781 = vrot.lane.b32.xlu1 %v4630_v59, %s9011_s5  ;;  %4783 = vrot.lane.b32.xlu0 %v4631_v8, %s9011_s5 }
0x12ab   : > { %4836 = vrot.lane.b32.xlu1 %v4630_v59, %s6937_s6  ;;  %4838 = vrot.lane.b32.xlu0 %v4631_v8, %s6937_s6 }
0x12af   : > { %4891 = vrot.lane.b32.xlu1 %v4630_v59, %s6938_s7  ;;  %4893 = vrot.lane.b32.xlu0 %v4631_v8, %s6938_s7 }
0x12b3   : > { %4946 = vrot.lane.b32.xlu1 %v4630_v59, %s6939_s26  ;;  %4948 = vrot.lane.b32.xlu0 %v4631_v8, %s6939_s26 }
0x12b7   : > { %5001 = vrot.lane.b32.xlu1 %v4630_v59, %s9013_s2  ;;  %5003 = vrot.lane.b32.xlu0 %v4631_v8, %s9013_s2 }
0x12bb   : > { %5056 = vrot.lane.b32.xlu1 %v4630_v59, %s9012_s22  ;;  %5058 = vrot.lane.b32.xlu0 %v4631_v8, %s9012_s22 }
0x12bf   : > { %5111 = vrot.lane.b32.xlu1 %v4630_v59, %s9014_s27  ;;  %5113 = vrot.lane.b32.xlu0 %v4631_v8, %s9014_s27 }
0x12c3   : > { %4675 = vrot.lane.b32.xlu1 %v4632_v11, %s9010_s3 }
0x12c7   : > { %4730 = vrot.lane.b32.xlu1 %v4632_v11, %s9009_s25 }
0x12cb   : > { %4785 = vrot.lane.b32.xlu1 %v4632_v11, %s9011_s5 }
0x12cf   : > { %4840 = vrot.lane.b32.xlu1 %v4632_v11, %s6937_s6 }
0x12d3   : > { %4895 = vrot.lane.b32.xlu1 %v4632_v11, %s6938_s7 }
0x12d7   : > { %4950 = vrot.lane.b32.xlu1 %v4632_v11, %s6939_s26 }
0x12db   : > { %5005 = vrot.lane.b32.xlu1 %v4632_v11, %s9013_s2 }
0x12de   : > { %v4623_v12 = vpop.permute.xlu1 %4622 }
0x12df   : > { %5060 = vrot.lane.b32.xlu1 %v4632_v11, %s9012_s22  ;;  %v4633_v13 = vsel %vm792_vm3, %v4621_v9, %v4623_v12  ;;  %v4625_v14 = vpop.permute.xlu0 %4624 }
0x12e0   : > { %4649 = vst [vmem:[#allocation2 + $0x20] sm:$0xff] %v4633_v13  ;;  %v8670_v17 = vsel %vm792_vm3, %v4623_v12, %v4625_v14  ;;  %4677 = vrot.lane.b32.xlu0 %v4633_v13, %s9010_s3 }
0x12e1   : > { %4650 = vst [vmem:[#allocation2 + $0x28] sm:$0xff] %v8670_v17 }
0x12e3   : > { %5115 = vrot.lane.b32.xlu1 %v4632_v11, %s9014_s27 }
0x12e4   : > { %4732 = vrot.lane.b32.xlu0 %v4633_v13, %s9009_s25 }
0x12e7   : > { %4679 = vrot.lane.b32.xlu1 %v8670_v17, %s9010_s3 }
0x12e8   : > { %4787 = vrot.lane.b32.xlu0 %v4633_v13, %s9011_s5 }
0x12eb   : > { %4734 = vrot.lane.b32.xlu1 %v8670_v17, %s9009_s25 }
0x12ec   : > { %4842 = vrot.lane.b32.xlu0 %v4633_v13, %s6937_s6 }
0x12f0   : > { %4897 = vrot.lane.b32.xlu0 %v4633_v13, %s6938_s7 }
0x12f4   : > { %4952 = vrot.lane.b32.xlu0 %v4633_v13, %s6939_s26 }
0x12f8   : > { %5007 = vrot.lane.b32.xlu0 %v4633_v13, %s9013_s2 }
0x12f9   : > { %v4627_v19 = vpop.permute.xlu1 %4626 }
0x12fa   : > { %v8686_v20 = vsel %vm792_vm3, %v4625_v14, %v4627_v19  ;;  %v4629_v25 = vpop.permute.xlu0 %4628 }
0x12fb   : > { %4651 = vst [vmem:[#allocation2 + $0x30] sm:$0xff] %v8686_v20  ;;  %v4636_v27 = vsel %vm792_vm3, %v4627_v19, %v4629_v25  ;;  %4791 = vrot.lane.b32.xlu1 %v8686_v20, %s9011_s5  ;;  %vm9066_vm3 = vmmov %vm9059_vm13 }
0x12fc   : > { %4652 = vst.msk [vmem:[#allocation2 + $0x38] sm:$0xff] %vm3677_vm12, %v4636_v27  ;;  %5062 = vrot.lane.b32.xlu0 %v4633_v13, %s9012_s22  ;;  %vm9067_vm2 = vmmov %vm9066_vm3 }
0x12fd   : > { %v4670_v26 = vpop.permute.xlu1 %4669  ;;  %vm9068_vm12 = vmmov %vm9058_vm8 }
0x12fe   : > { %v4725_v29 = vpop.permute.xlu0 %4724  ;;  %vm9070_vm8 = vmmov %vm9061_vm6 }
0x12ff   : > { %4846 = vrot.lane.b32.xlu1 %v8686_v20, %s6937_s6  ;;  %vm9071_vm13 = vmmov %vm9061_vm6 }
0x1300   : > { %5117 = vrot.lane.b32.xlu0 %v4633_v13, %s9014_s27  ;;  %vm9074_vm6 = vmmov %vm9064_vm0 }
0x1301   : > { %v4780_v18 = vpop.permute.xlu1 %4779  ;;  %vm9077_vm0 = vmmov %vm9065_vm15 }
0x1302   : > { %v4835_v28 = vpop.permute.xlu0 %4834  ;;  %vm9078_vm15 = vmmov %vm9077_vm0 }
0x1303   : > { %4901 = vrot.lane.b32.xlu1 %v8686_v20, %s6938_s7  ;;  %v8722_v30 = vld [vmem:[#allocation2 + $0x38] sm:$0xff] }
0x1304   : > { %4789 = vrot.lane.b32.xlu0 %v8670_v17, %s9011_s5 }
0x1305   : > { %v4890_v63 = vpop.permute.xlu1 %4889 }
0x1306   : > { %v4945_v33 = vpop.permute.xlu0 %4944 }
0x1307   : > { %4956 = vrot.lane.b32.xlu1 %v8686_v20, %s6939_s26 }
0x1308   : > { %4844 = vrot.lane.b32.xlu0 %v8670_v17, %s6937_s6 }
0x1309   : > { %v8705_v21 = vpop.permute.xlu1 %4999 }
0x130a   : > { %v8711_v34 = vpop.permute.xlu0 %5054 }
0x130b   : > { %5011 = vrot.lane.b32.xlu1 %v8686_v20, %s9013_s2 }
0x130c   : > { %4899 = vrot.lane.b32.xlu0 %v8670_v17, %s6938_s7 }
0x130d   : > { %v8713_v36 = vpop.permute.xlu1 %5109 }
0x130f   : > { %5066 = vrot.lane.b32.xlu1 %v8686_v20, %s9012_s22 }
0x1310   : > { %4954 = vrot.lane.b32.xlu0 %v8670_v17, %s6939_s26 }
0x1311   : > { %v4672_v16 = vpop.permute.xlu1 %4671  ;;  %v8719_v35 = vpop.permute.xlu0 %4673 }
0x1312   : > { %v4685_v2 = vsel %vm9066_vm3, %v4670_v26, %v4672_v16  ;;  %v4686_v15 = vsel %vm9067_vm2, %v4672_v16, %v8719_v35  ;;  %vm9080_vm3 = vmmov %vm9067_vm2 }
0x1313   : > { %4700 = vst [vmem:[#allocation3] sm:$0xff] %v4685_v2  ;;  %4683 = vrot.lane.b32.xlu1 %v8722_v30, %s9010_s3  ;;  %4701 = vst [vmem:[#allocation3 + $0x8] sm:$0xff] %v4686_v15 }
0x1314   : > { %5009 = vrot.lane.b32.xlu0 %v8670_v17, %s9013_s2  ;;  %vm9081_vm2 = vmmov %vm9069_vm7 }
0x1315   : > { %v4727_v38 = vpop.permute.xlu1 %4726  ;;  %v8730_v39 = vpop.permute.xlu0 %4728 }
0x1316   : > { %v4740_v40 = vsel %vm9068_vm12, %v4725_v29, %v4727_v38  ;;  %v4741_v41 = vsel %vm9069_vm7, %v4727_v38, %v8730_v39  ;;  %vm9082_vm12 = vmmov %vm9070_vm8 }
0x1317   : > { %4755 = vst [vmem:[#allocation3 + $0x40] sm:$0xff] %v4740_v40  ;;  %4848 = vrot.lane.b32.xlu1 %v8722_v30, %s6937_s6  ;;  %4756 = vst [vmem:[#allocation3 + $0x48] sm:$0xff] %v4741_v41  ;;  %v6600_v22 = vpack.c.bf16 %v4741_v41, %v4686_v15  ;;  %v6602_v42 = vpack.c.bf16 %v4740_v40, %v4685_v2 }
0x1318   : > { %5064 = vrot.lane.b32.xlu0 %v8670_v17, %s9012_s22  ;;  %vm9083_vm7 = vmmov %vm9074_vm6 }
0x1319   : > { %v4782_v43 = vpop.permute.xlu1 %4781  ;;  %v8739_v44 = vpop.permute.xlu0 %4783  ;;  %6601 = vmatprep.subr.bf16.mxu1 %v6600_v22 }
0x131a   : > { %v4795_v45 = vsel %vm9070_vm8, %v4780_v18, %v4782_v43  ;;  %v4796_v37 = vsel %vm9071_vm13, %v4782_v43, %v8739_v44  ;;  %6603 = vmatpush1.bf16.msra.mxu1 %v6602_v42  ;;  %vm9084_vm8 = vmmov %vm9075_vm1 }
0x131b   : > { %4810 = vst [vmem:[#allocation3 + $0x80] sm:$0xff] %v4795_v45  ;;  %4958 = vrot.lane.b32.xlu1 %v8722_v30, %s6939_s26  ;;  %s9072_s26 = sld [smem:[#allocation24_spill]]  ;;  %vm9085_vm13 = vmmov %vm9080_vm3 }
0x131c   : > { %4681 = vrot.lane.b32.xlu0 %v8686_v20, %s9010_s3  ;;  %s5757_s3 = sshll.u32 %s9123_s30, 6 }
0x131d   : > { %v4837_v32 = vpop.permute.xlu1 %4836  ;;  %v8748_v46 = vpop.permute.xlu0 %4838 }
0x131e   : > { %v4850_v47 = vsel %vm849_vm9, %v4835_v28, %v4837_v32  ;;  %v4851_v48 = vsel %vm849_vm9, %v4837_v32, %v8748_v46 }
0x131f   : > { %4865 = vst [vmem:[#allocation3 + $0xc0] sm:$0xff] %v4850_v47  ;;  %5068 = vrot.lane.b32.xlu1 %v8722_v30, %s9012_s22  ;;  %v6604_v49 = vpack.c.bf16 %v4851_v48, %v4796_v37  ;;  %v6606_v50 = vpack.c.bf16 %v4850_v47, %v4795_v45 }
0x1320   : > { %4736 = vrot.lane.b32.xlu0 %v8686_v20, %s9009_s25 }
0x1321   : > { %v4892_v54 = vpop.permute.xlu1 %4891  ;;  %v4894_v51 = vpop.permute.xlu0 %4893  ;;  %6605 = vmatprep.subr.bf16.mxu1 %v6604_v49  ;;  %v5221_v55 = vld [vmem:[%s9072_s26] sm:$0xff] }
0x1322   : > { %v4905_v52 = vsel %vm862_vm10, %v4890_v63, %v4892_v54  ;;  %v4906_v53 = vsel %vm862_vm10, %v4892_v54, %v4894_v51  ;;  %6607 = vmatpush1.bf16.msra.mxu1 %v6606_v50 }
0x1323   : > { %4920 = vst [vmem:[#allocation3 + $0x100] sm:$0xff] %v4905_v52  ;;  %5121 = vrot.lane.b32.xlu1 %v8686_v20, %s9014_s27 }
0x1324   : > { %4738 = vrot.lane.b32.xlu0 %v8722_v30, %s9009_s25  ;;  %s9079_s25 = sld [smem:[#allocation23_spill]] }
0x1325   : > { %v4947_v57 = vpop.permute.xlu1 %4946  ;;  %v4949_v58 = vpop.permute.xlu0 %4948 }
0x1326   : > { %v4960_v59 = vsel %vm875_vm11, %v4945_v33, %v4947_v57  ;;  %v4961_v10 = vsel %vm875_vm11, %v4947_v57, %v4949_v58 }
0x1327   : > { %4975 = vst [vmem:[#allocation3 + $0x140] sm:$0xff] %v4960_v59  ;;  %5224 = vperm.xlu1 %6755, %v5221_v55   ;;  %v6608_v23 = vpack.c.bf16 %v4961_v10, %v4906_v53  ;;  %v6610_v60 = vpack.c.bf16 %v4960_v59, %v4905_v52 }
0x1328   : > { %4793 = vrot.lane.b32.xlu0 %v8722_v30, %s9011_s5 }
0x1329   : > { %v5002_v0 = vpop.permute.xlu1 %5001  ;;  %v5004_v61 = vpop.permute.xlu0 %5003  ;;  %6609 = vmatprep.subr.bf16.mxu1 %v6608_v23 }
0x132a   : > { %v5015_v56 = vsel %vm9073_vm14, %v8705_v21, %v5002_v0  ;;  %v5016_v62 = vsel %vm9074_vm6, %v5002_v0, %v5004_v61  ;;  %6611 = vmatpush1.bf16.msra.mxu1 %v6610_v60  ;;  %v8788_v12 = vld [vmem:[%s9079_s25] sm:$0xff]  ;;  %vm9086_vm14 = vmmov %vm9077_vm0 }
0x132b   : > { %5030 = vst [vmem:[#allocation3 + $0x180] sm:$0xff] %v5015_v56  ;;  %vm9087_vm6 = vmmov %vm9081_vm2 }
0x132c   : > { %4903 = vrot.lane.b32.xlu0 %v8722_v30, %s6938_s7 }
0x132d   : > { %v5057_v24 = vpop.permute.xlu1 %5056  ;;  %v5059_v1 = vpop.permute.xlu0 %5058 }
0x132e   : > { %v5070_v3 = vsel %vm9075_vm1, %v8711_v34, %v5057_v24  ;;  %v5071_v4 = vsel %vm9076_vm4, %v5057_v24, %v5059_v1  ;;  %vm9088_vm1 = vmmov %vm9080_vm3 }
0x132f   : > { %5085 = vst [vmem:[#allocation3 + $0x1c0] sm:$0xff] %v5070_v3  ;;  %v6612_v5 = vpack.c.bf16 %v5071_v4, %v5016_v62  ;;  %v6614_v6 = vpack.c.bf16 %v5070_v3, %v5015_v56  ;;  %vm9089_vm4 = vmmov %vm9082_vm12 }
0x1330   : > { %5013 = vrot.lane.b32.xlu0 %v8722_v30, %s9013_s2  ;;  %s9119_s2 = sld [smem:[#allocation25_spill]] }
0x1331   : > { %v5112_v7 = vpop.permute.xlu1 %5111  ;;  %v5114_v8 = vpop.permute.xlu0 %5113  ;;  %6613 = vmatprep.subr.bf16.mxu1 %v6612_v5 }
0x1332   : > { %v5125_v9 = vsel %vm9077_vm0, %v8713_v36, %v5112_v7  ;;  %v5126_v11 = vsel %vm9078_vm15, %v5112_v7, %v5114_v8  ;;  %6615 = vmatpush1.bf16.msra.mxu1 %v6614_v6  ;;  %vm9090_vm0 = vmmov %vm9081_vm2 }
0x1333   : > { %5140 = vst [vmem:[#allocation3 + $0x200] sm:$0xff] %v5125_v9  ;;  %5246 = vmatprep.subr.mxu1 %v5126_v11  ;;  %vm9091_vm15 = vmmov %vm9083_vm7 }
0x1334   : > { %5119 = vrot.lane.b32.xlu0 %v8670_v17, %s9014_s27 }
0x1335   : > { %v4676_v13 = vpop.permute.xlu1 %4675 }
0x1336   : > { %v4687_v14 = vsel %vm9080_vm3, %v8719_v35, %v4676_v13  ;;  %5247 = vmatpush1.msra.mxu1 %v5125_v9  ;;  %vm9092_vm3 = vmmov %vm9084_vm8 }
0x1337   : > { %4702 = vst [vmem:[#allocation3 + $0x10] sm:$0xff] %v4687_v14  ;;  %5743 = vmatmul.mubr.msk.f32.vlgmr.msra.gmra.mrb[30].mxu1 %vm2000_vm5, %v8788_v12 }
0x1338   : > { %5123 = vrot.lane.b32.xlu0 %v8722_v30, %s9014_s27  ;;  %5436 = vmatprep.mubr.f32.mxu1 %v8060_v31  ;;  %s8902_s27 = scalar_lea.vmem %s9119_s2, %s5757_s3 }
0x1339   : > { %v4731_v17 = vpop.permute.xlu1 %4730 }
0x133a   : > { %v4742_v19 = vsel %vm9081_vm2, %v8730_v39, %v4731_v17  ;;  %vm9093_vm2 = vmmov %vm9086_vm14 }
0x133b   : > { %4757 = vst [vmem:[#allocation3 + $0x50] sm:$0xff] %v4742_v19  ;;  %v6618_v41 = vpack.c.bf16 %v4742_v19, %v4687_v14 }
0x133d   : > { %v4786_v20 = vpop.permute.xlu1 %4785 }
0x133e   : > { %v4797_v25 = vsel %vm9082_vm12, %v8739_v44, %v4786_v20  ;;  %vm9094_vm12 = vmmov %vm9089_vm4 }
0x1341   : > { %v4841_v27 = vpop.permute.xlu1 %4840 }
0x1342   : > { %v4852_v26 = vsel %vm849_vm9, %v8748_v46, %v4841_v27 }
0x1343   : > { %v6622_v47 = vpack.c.bf16 %v4852_v26, %v4797_v25 }
0x1345   : > { %v4896_v29 = vpop.permute.xlu1 %4895 }
0x1346   : > { %v4907_v18 = vsel %vm862_vm10, %v4894_v51, %v4896_v29 }
0x1349   : > { %v4951_v28 = vpop.permute.xlu1 %4950 }
0x134a   : > { %v4962_v63 = vsel %vm875_vm11, %v4949_v58, %v4951_v28 }
0x134b   : > { %v6626_v52 = vpack.c.bf16 %v4962_v63, %v4907_v18 }
0x134d   : > { %v5006_v33 = vpop.permute.xlu1 %5005 }
0x134e   : > { %v5017_v21 = vsel %vm9083_vm7, %v5004_v61, %v5006_v33  ;;  %vm9095_vm7 = vmmov %vm9089_vm4 }
0x1351   : > { %v5061_v34 = vpop.permute.xlu1 %5060 }
0x1352   : > { %v5072_v36 = vsel %vm9084_vm8, %v5059_v1, %v5061_v34  ;;  %v4678_v16 = vpop.permute.xlu0 %4677  ;;  %vm9096_vm8 = vcmask 31744  }
0x1353   : > { %v4688_v35 = vsel %vm9085_vm13, %v4676_v13, %v4678_v16  ;;  %v6630_v60 = vpack.c.bf16 %v5072_v36, %v5017_v21  ;;  %vm9097_vm13 = vmmov %vm9091_vm15 }
0x1354   : > { %4703 = vst [vmem:[#allocation3 + $0x18] sm:$0xff] %v4688_v35 }
0x1355   : > { %v5116_v2 = vpop.permute.xlu1 %5115 }
0x1356   : > { %v5127_v30 = vsel %vm9086_vm14, %v5114_v8, %v5116_v2  ;;  %v4733_v15 = vpop.permute.xlu0 %4732  ;;  %vm9098_vm14 = vmmov %vm9097_vm13 }
0x1357   : > { %v4743_v38 = vsel %vm9087_vm6, %v4731_v17, %v4733_v15  ;;  %vm9099_vm6 = vmmov %vm9096_vm8 }
0x1358   : > { %4758 = vst [vmem:[#allocation3 + $0x58] sm:$0xff] %v4743_v38  ;;  %v6616_v39 = vpack.c.bf16 %v4743_v38, %v4688_v35 }
0x1359   : > { %v8810_v40 = vpop.permute.xlu1 %4679 }
0x135a   : > { %v8814_v22 = vsel %vm9088_vm1, %v4678_v16, %v8810_v40  ;;  %v4788_v42 = vpop.permute.xlu0 %4787  ;;  %6617 = vmatprep.subr.bf16.mxu0 %v6616_v39  ;;  %vm9100_vm1 = vmmov %vm9092_vm3 }
0x135b   : > { %4704 = vst [vmem:[#allocation3 + $0x20] sm:$0xff] %v8814_v22  ;;  %v4798_v43 = vsel %vm9089_vm4, %v4786_v20, %v4788_v42  ;;  %6619 = vmatpush1.bf16.msra.mxu0 %v6618_v41  ;;  %vm9101_vm4 = vmmov %vm9100_vm1 }
0x135d   : > { %v8818_v44 = vpop.permute.xlu1 %4734 }
0x135e   : > { %v8822_v45 = vsel %vm9090_vm0, %v4733_v15, %v8818_v44  ;;  %v4843_v37 = vpop.permute.xlu0 %4842  ;;  %vm9102_vm0 = vmmov %vm9099_vm6 }
0x135f   : > { %4759 = vst [vmem:[#allocation3 + $0x60] sm:$0xff] %v8822_v45  ;;  %v4853_v32 = vsel %vm849_vm9, %v4841_v27, %v4843_v37  ;;  %v6634_v39 = vpack.c.bf16 %v8822_v45, %v8814_v22 }
0x1360   : > { %v6620_v46 = vpack.c.bf16 %v4853_v32, %v4798_v43 }
0x1362   : > { %v4898_v48 = vpop.permute.xlu0 %4897  ;;  %6621 = vmatprep.subr.bf16.mxu0 %v6620_v46 }
0x1363   : > { %v4908_v49 = vsel %vm862_vm10, %v4896_v29, %v4898_v48  ;;  %6623 = vmatpush1.bf16.msra.mxu0 %v6622_v47 }
0x1366   : > { %v4953_v50 = vpop.permute.xlu0 %4952 }
0x1367   : > { %v4963_v54 = vsel %vm875_vm11, %v4951_v28, %v4953_v50 }
0x1368   : > { %v6624_v51 = vpack.c.bf16 %v4963_v54, %v4908_v49 }
0x136a   : > { %v5008_v53 = vpop.permute.xlu0 %5007  ;;  %6625 = vmatprep.subr.bf16.mxu0 %v6624_v51 }
0x136b   : > { %v5018_v55 = vsel %vm9091_vm15, %v5006_v33, %v5008_v53  ;;  %6627 = vmatpush1.bf16.msra.mxu0 %v6626_v52  ;;  %vm9103_vm15 = vcmask 1039360  }
0x136d   : > { %v8829_v57 = vpop.permute.xlu1 %4791 }
0x136e   : > { %v5063_v58 = vpop.permute.xlu0 %5062 }
0x136f   : > { %v5073_v59 = vsel %vm9092_vm3, %v5061_v34, %v5063_v58  ;;  %vm9104_vm3 = vmmov %vm9103_vm15 }
0x1370   : > { %v6628_v10 = vpack.c.bf16 %v5073_v59, %v5018_v55 }
0x1371   : > { %v4847_v23 = vpop.permute.xlu1 %4846 }
0x1372   : > { %v8832_v0 = vpop.permute.xlu0 %5117  ;;  %6629 = vmatprep.subr.bf16.mxu0 %v6628_v10 }
0x1373   : > { %v5128_v61 = vsel %vm9093_vm2, %v5116_v2, %v8832_v0  ;;  %6631 = vmatpush1.bf16.msra.mxu0 %v6630_v60  ;;  %vm9106_vm2 = vmmov %vm9102_vm0 }
0x1374   : > { %5317 = vmatprep.subr.mxu0 %v5128_v61 }
0x1375   : > { %v8836_v56 = vpop.permute.xlu1 %4901 }
0x1376   : > { %v4790_v62 = vpop.permute.xlu0 %4789 }
0x1377   : > { %v4799_v24 = vsel %vm9094_vm12, %v4788_v42, %v4790_v62  ;;  %v4800_v1 = vsel %vm9095_vm7, %v4790_v62, %v8829_v57  ;;  %5318 = vmatpush1.msra.mxu0 %v5127_v30  ;;  %vm9109_vm7 = vmmov %vm9102_vm0 }
0x1378   : > { %5744 = vmatmul.mubr.msk.f32.vlgmr.msra.gmra.mrb[12].mxu0 %vm2000_vm5, %v8788_v12 }
0x1379   : > { %v4957_v3 = vpop.permute.xlu1 %4956  ;;  %5507 = vmatprep.mubr.f32.mxu0 %v8060_v31 }
0x137a   : > { %v4845_v4 = vpop.permute.xlu0 %4844 }
0x137b   : > { %v4854_v5 = vsel %vm849_vm9, %v4843_v37, %v4845_v4  ;;  %v4855_v6 = vsel %vm849_vm9, %v4845_v4, %v4847_v23 }
0x137c   : > { %v6636_v41 = vpack.c.bf16 %v4855_v6, %v4800_v1  ;;  %v6638_v43 = vpack.c.bf16 %v4854_v5, %v4799_v24 }
0x137d   : > { %v8846_v7 = vpop.permute.xlu1 %5011 }
0x137e   : > { %v4900_v8 = vpop.permute.xlu0 %4899 }
0x137f   : > { %v4909_v9 = vsel %vm862_vm10, %v4898_v48, %v4900_v8  ;;  %v4910_v11 = vsel %vm862_vm10, %v4900_v8, %v8836_v56 }
0x1381   : > { %v5067_v13 = vpop.permute.xlu1 %5066 }
0x1382   : > { %v4955_v14 = vpop.permute.xlu0 %4954 }
0x1383   : > { %v4964_v17 = vsel %vm875_vm11, %v4953_v50, %v4955_v14  ;;  %v4965_v19 = vsel %vm875_vm11, %v4955_v14, %v4957_v3 }
0x1384   : > { %v6640_v32 = vpack.c.bf16 %v4965_v19, %v4910_v11  ;;  %v6642_v22 = vpack.c.bf16 %v4964_v17, %v4909_v9 }
0x1385   : > { %v4684_v31 = vpop.permute.xlu1 %4683 }
0x1386   : > { %4707 = vst.msk [vmem:[#allocation3 + $0x38] sm:$0xff] %vm9096_vm8, %v4684_v31  ;;  %v5010_v20 = vpop.permute.xlu0 %5009  ;;  %vm9110_vm8 = vcmask 1022976  }
0x1387   : > { %v5019_v25 = vsel %vm9097_vm13, %v5008_v53, %v5010_v20  ;;  %v5020_v27 = vsel %vm9098_vm14, %v5010_v20, %v8846_v7  ;;  %vm9111_vm13 = vmmov %vm9102_vm0 }
0x1388   : > { %vm9112_vm14 = vmmov %vm9102_vm0 }
0x1389   : > { %v4849_v26 = vpop.permute.xlu1 %4848 }
0x138a   : > { %v4856_v29 = vsel %vm849_vm9, %v4847_v23, %v4849_v26  ;;  %4872 = vst.msk [vmem:[#allocation3 + $0xf8] sm:$0xff] %vm9099_vm6, %v4849_v26  ;;  %v5065_v18 = vpop.permute.xlu0 %5064  ;;  %vm9105_vm9 = vmmov %vm9100_vm1  ;;  %vm9113_vm6 = vcmask 547840  }
0x138b   : > { %v5074_v28 = vsel %vm9100_vm1, %v5063_v58, %v5065_v18  ;;  %v5075_v63 = vsel %vm9101_vm4, %v5065_v18, %v5067_v13  ;;  %vm9114_vm1 = vmmov %vm9102_vm0 }
0x138c   : > { %v6644_v48 = vpack.c.bf16 %v5075_v63, %v5020_v27  ;;  %v6646_v51 = vpack.c.bf16 %v5074_v28, %v5019_v25 }
0x138d   : > { %v4959_v33 = vpop.permute.xlu1 %4958  ;;  %v5156_v46 = vld [vmem:[#allocation3 + $0x38] sm:$0xff] }
0x138e   : > { %v8862_v21 = vsel %vm875_vm11, %v4957_v3, %v4959_v33  ;;  %4982 = vst.msk [vmem:[#allocation3 + $0x178] sm:$0xff] %vm9102_vm0, %v4959_v33  ;;  %v4682_v34 = vpop.permute.xlu0 %4681  ;;  %vm9107_vm11 = vcmask 1031168  }
0x138f   : > { %v4690_v36 = vsel %vm9103_vm15, %v8810_v40, %v4682_v34  ;;  %v4691_v16 = vsel %vm9104_vm3, %v4682_v34, %v4684_v31  ;;  %vm9108_vm12 = vmmov %vm9107_vm11 }
0x1390   : > { %4705 = vst [vmem:[#allocation3 + $0x28] sm:$0xff] %v4690_v36  ;;  %4706 = vst [vmem:[#allocation3 + $0x30] sm:$0xff] %v4691_v16 }
0x1391   : > { %v5069_v35 = vpop.permute.xlu1 %5068  ;;  %v5180_v55 = vld [vmem:[#allocation3 + $0xf8] sm:$0xff]  ;;  %vm9118_vm15 = vmmov %vm9114_vm1 }
0x1392   : > { %v8869_v2 = vsel %vm9105_vm9, %v5067_v13, %v5069_v35  ;;  %5092 = vst.msk [vmem:[#allocation3 + $0x1f8] sm:$0xff] %vm9106_vm2, %v5069_v35  ;;  %v4737_v30 = vpop.permute.xlu0 %4736 }
0x1393   : > { %v4745_v15 = vsel %vm9107_vm11, %v8818_v44, %v4737_v30 }
0x1394   : > { %4760 = vst [vmem:[#allocation3 + $0x68] sm:$0xff] %v4745_v15  ;;  %v6632_v38 = vpack.c.bf16 %v4745_v15, %v4690_v36 }
0x1395   : > { %v5122_v10 = vpop.permute.xlu1 %5121  ;;  %v5196_v61 = vld [vmem:[#allocation3 + $0x178] sm:$0xff] }
0x1396   : > { %v4739_v40 = vpop.permute.xlu0 %4738  ;;  %6633 = vmatprep.subr.bf16.mxu1 %v6632_v38 }
0x1397   : > { %v4746_v42 = vsel %vm9108_vm12, %v4737_v30, %v4739_v40  ;;  %4762 = vst.msk [vmem:[#allocation3 + $0x78] sm:$0xff] %vm9109_vm7, %v4739_v40  ;;  %6635 = vmatpush1.bf16.msra.mxu1 %v6634_v39 }
0x1398   : > { %4761 = vst [vmem:[#allocation3 + $0x70] sm:$0xff] %v4746_v42  ;;  %6637 = vmatprep.subr.bf16.mxu1 %v6636_v41  ;;  %v6650_v54 = vpack.c.bf16 %v4746_v42, %v4691_v16 }
0x1399   : > { %v5212_v5 = vld [vmem:[#allocation3 + $0x1f8] sm:$0xff] }
0x139a   : > { %v4794_v37 = vpop.permute.xlu0 %4793 }
0x139b   : > { %v4801_v44 = vsel %vm9110_vm8, %v8829_v57, %v4794_v37  ;;  %4817 = vst.msk [vmem:[#allocation3 + $0xb8] sm:$0xff] %vm9111_vm13, %v4794_v37  ;;  %6639 = vmatpush1.bf16.msra.mxu1 %v6638_v43 }
0x139c   : > { %6641 = vmatprep.subr.bf16.mxu1 %v6640_v32  ;;  %v6654_v59 = vpack.c.bf16 %v4856_v29, %v4801_v44 }
0x139e   : > { %v4904_v45 = vpop.permute.xlu0 %4903  ;;  %v5164_v47 = vld [vmem:[#allocation3 + $0x78] sm:$0xff] }
0x139f   : > { %v4911_v49 = vsel %vm862_vm10, %v8836_v56, %v4904_v45  ;;  %4927 = vst.msk [vmem:[#allocation3 + $0x138] sm:$0xff] %vm9112_vm14, %v4904_v45  ;;  %v6648_v50 = vpack.c.bf16 %v5164_v47, %v5156_v46  ;;  %6643 = vmatpush1.bf16.msra.mxu1 %v6642_v22  ;;  %vm9115_vm10 = vcmask 531456  }
0x13a0   : > { %6645 = vmatprep.subr.bf16.mxu1 %v6644_v48  ;;  %vm9116_vm4 = vmmov %vm9115_vm10  ;;  %v6658_v1 = vpack.c.bf16 %v8862_v21, %v4911_v49 }
0x13a1   : > { %6649 = vmatprep.subr.bf16.mxu0 %v6648_v50  ;;  %vm9117_vm0 = vmmov %vm9116_vm4 }
0x13a2   : > { %v5014_v52 = vpop.permute.xlu0 %5013  ;;  %6651 = vmatpush1.bf16.msra.mxu0 %v6650_v54  ;;  %v5172_v53 = vld [vmem:[#allocation3 + $0xb8] sm:$0xff] }
0x13a3   : > { %v5021_v57 = vsel %vm9113_vm6, %v8846_v7, %v5014_v52  ;;  %5037 = vst.msk [vmem:[#allocation3 + $0x1b8] sm:$0xff] %vm9114_vm1, %v5014_v52  ;;  %v6652_v58 = vpack.c.bf16 %v5180_v55, %v5172_v53  ;;  %6647 = vmatpush1.bf16.msra.mxu1 %v6646_v51 }
0x13a4   : > { %v6662_v7 = vpack.c.bf16 %v8869_v2, %v5021_v57 }
0x13a5   : > { %6653 = vmatprep.subr.bf16.mxu0 %v6652_v58 }
0x13a6   : > { %v5120_v23 = vpop.permute.xlu0 %5119  ;;  %6655 = vmatpush1.bf16.msra.mxu0 %v6654_v59  ;;  %v5188_v60 = vld [vmem:[#allocation3 + $0x138] sm:$0xff]  ;;  %v5225_v9 = vpop.permute.xlu1 %5224 }
0x13a7   : > { %v5129_v56 = vsel %vm9115_vm10, %v8832_v0, %v5120_v23  ;;  %v5130_v62 = vsel %vm9116_vm4, %v5120_v23, %v5122_v10  ;;  %v6656_v24 = vpack.c.bf16 %v5196_v61, %v5188_v60 }
0x13a8   : > { %5388 = vmatprep.subr.mxu1 %v5130_v62 }
0x13a9   : > { %6657 = vmatprep.subr.bf16.mxu0 %v6656_v24  ;;  %5389 = vmatpush1.msra.mxu1 %v5129_v56 }
0x13aa   : > { %v5124_v3 = vpop.permute.xlu0 %5123  ;;  %6659 = vmatpush1.bf16.msra.mxu0 %v6658_v1  ;;  %v5204_v4 = vld [vmem:[#allocation3 + $0x1b8] sm:$0xff]  ;;  %5745 = vmatmul.mubr.msk.f32.vlgmr.msra.gmra.mrb[32].mxu1 %vm2000_vm5, %v8788_v12 }
0x13ab   : > { %v5131_v6 = vsel %vm9117_vm0, %v5122_v10, %v5124_v3  ;;  %5147 = vst.msk [vmem:[#allocation3 + $0x238] sm:$0xff] %vm9118_vm15, %v5124_v3  ;;  %v6660_v0 = vpack.c.bf16 %v5212_v5, %v5204_v4 }
0x13ad   : > { %6661 = vmatprep.subr.bf16.mxu0 %v6660_v0 }
0x13ae   : > { %6663 = vmatpush1.bf16.msra.mxu0 %v6662_v7 }
0x13b2   : > { %v5220_v8 = vld [vmem:[#allocation3 + $0x238] sm:$0xff] }
0x13b3   : > { %5459 = vmatprep.subr.mxu0 %v5220_v8 }
0x13b4   : > { %5460 = vmatpush1.msra.mxu0 %v5131_v6 }
0x13b5   : > { %5746 = vmatmul.mubr.msk.f32.vlgmr.msra.gmra.mrb[14].mxu0 %vm2000_vm5, %v8788_v12  ;;  %vm9120_vm5 = vmmov %vm9114_vm1 }
0x140a   : > { %v5296_v11 = vpop.f32.mrb[30].mxu1 }
0x140b   : > { %v5297_v13 = vadd.f32 %v5296_v11, %v5225_v9  ;;  %v5298_v14 = vpop.f32.mrb[31].mxu1 }
0x140c   : > { %v5299_v17 = vadd.f32 %v5298_v14, %v5225_v9 }
0x140d   : > { %v5747_v19 = vmul.f32 -1.442695, %v5297_v13 }
0x140e   : > { %v5748_v31 = vmul.f32 -1.442695, %v5299_v17 }
0x140f   : > { %6756 = vpow2.f32 %v5747_v19 }
0x1410   : > { %6758 = vpow2.f32 %v5748_v31 }
0x1419   : > { %v6757_v20 = vpop.eup %6756 }
0x141a   : > { %v6759_v25 = vpop.eup %6758  ;;  %v5538_v27 = vadd.f32 1.0, %v6757_v20 }
0x141b   : > { %v5539_v26 = vadd.f32 1.0, %v6759_v25 }
0x141c   : > { %6760 = vrcp.f32 %v5538_v27 }
0x141d   : > { %6762 = vrcp.f32 %v5539_v26 }
0x1426   : > { %v6761_v12 = vpop.eup %6760 }
0x1427   : > { %v6763_v29 = vpop.eup %6762  ;;  %5562 = vst [vmem:[%s8902_s27] sm:$0xff] %v6761_v12 }
0x1428   : > { %5563 = vst [vmem:[%s8902_s27 + $0x8] sm:$0xff] %v6763_v29 }
0x144b   : > { %v5367_v18 = vpop.f32.mrb[12].mxu0 }
0x144c   : > { %v5368_v28 = vadd.f32 %v5367_v18, %v5225_v9  ;;  %v5369_v63 = vpop.f32.mrb[13].mxu0 }
0x144d   : > { %v5370_v33 = vadd.f32 %v5369_v63, %v5225_v9 }
0x144e   : > { %v5749_v21 = vmul.f32 -1.442695, %v5368_v28 }
0x144f   : > { %v5750_v34 = vmul.f32 -1.442695, %v5370_v33 }
0x1450   : > { %6764 = vpow2.f32 %v5749_v21 }
0x1451   : > { %6766 = vpow2.f32 %v5750_v34 }
0x145a   : > { %v6765_v36 = vpop.eup %6764 }
0x145b   : > { %v6767_v16 = vpop.eup %6766  ;;  %v5540_v35 = vadd.f32 1.0, %v6765_v36 }
0x145c   : > { %v5541_v2 = vadd.f32 1.0, %v6767_v16 }
0x145d   : > { %6768 = vrcp.f32 %v5540_v35 }
0x145e   : > { %6770 = vrcp.f32 %v5541_v2 }
0x1467   : > { %v6769_v30 = vpop.eup %6768 }
0x1468   : > { %v6771_v15 = vpop.eup %6770  ;;  %5564 = vst [vmem:[%s8902_s27 + $0x10] sm:$0xff] %v6769_v30 }
0x1469   : > { %5565 = vst [vmem:[%s8902_s27 + $0x18] sm:$0xff] %v6771_v15 }
0x147d   : > { %v5438_v38 = vpop.f32.mrb[32].mxu1 }
0x147e   : > { %v5439_v39 = vadd.f32 %v5438_v38, %v5225_v9  ;;  %v5440_v40 = vpop.f32.mrb[33].mxu1 }
0x147f   : > { %v5441_v41 = vadd.f32 %v5440_v40, %v5225_v9 }
0x1480   : > { %v5751_v42 = vmul.f32 -1.442695, %v5439_v39 }
0x1481   : > { %v5752_v43 = vmul.f32 -1.442695, %v5441_v41 }
0x1482   : > { %6772 = vpow2.f32 %v5751_v42 }
0x1483   : > { %6774 = vpow2.f32 %v5752_v43 }
0x1488   : > { %v5509_v37 = vpop.f32.mrb[14].mxu0 }
0x1489   : > { %v5510_v32 = vadd.f32 %v5509_v37, %v5225_v9  ;;  %v5511_v44 = vpop.f32.mrb[15].mxu0 }
0x148a   : > { %v5512_v22 = vadd.f32 %v5511_v44, %v5225_v9 }
0x148b   : > { %v5753_v45 = vmul.f32 -1.442695, %v5510_v32 }
0x148c   : > { %v6773_v46 = vpop.eup %6772  ;;  %v5754_v47 = vmul.f32 -1.442695, %v5512_v22 }
0x148d   : > { %v6775_v48 = vpop.eup %6774  ;;  %v5542_v49 = vadd.f32 1.0, %v6773_v46  ;;  %6776 = vpow2.f32 %v5753_v45 }
0x148e   : > { %v5543_v50 = vadd.f32 1.0, %v6775_v48  ;;  %6778 = vpow2.f32 %v5754_v47 }
0x148f   : > { %6780 = vrcp.f32 %v5542_v49 }
0x1490   : > { %6782 = vrcp.f32 %v5543_v50 }
0x1497   : > { %v6777_v54 = vpop.eup %6776 }
0x1498   : > { %v6779_v51 = vpop.eup %6778  ;;  %v5544_v52 = vadd.f32 1.0, %v6777_v54 }
0x1499   : > { %v6781_v53 = vpop.eup %6780  ;;  %v5545_v55 = vadd.f32 1.0, %v6779_v51 }
0x149a   : > { %v6783_v57 = vpop.eup %6782  ;;  %5566 = vst [vmem:[%s8902_s27 + $0x20] sm:$0xff] %v6781_v53  ;;  %6784 = vrcp.f32 %v5544_v52 }
0x149b   : > { %5567 = vst [vmem:[%s8902_s27 + $0x28] sm:$0xff] %v6783_v57  ;;  %6786 = vrcp.f32 %v5545_v55 }
0x14a4   : > { %v6785_v58 = vpop.eup %6784 }
0x14a5   : > { %v6787_v59 = vpop.eup %6786  ;;  %5568 = vst [vmem:[%s8902_s27 + $0x30] sm:$0xff] %v6785_v58 }
0x14a6   : > { %5569 = vst.msk [vmem:[%s8902_s27 + $0x38] sm:$0xff] %vm9120_vm5, %v6787_v59 }
0x14a7 PF: > { %s9121_s30 = sld [smem:[#allocation14_spill]] }
0x14ad   : > { %s37_s4 = sadd.s32 1, %s9121_s30  }
0x14ae   : > { %p34_p6 = scmp.ge.s32.totalorder %s37_s4, 4  }
0x14b0   :  { %36 = sbr.rel (!%p34_p6) target bundleno = 15 (0xf), region = 175 }
0x14b7   :  { %5605 = vsyncpa [#allocation5], 1 }
0x14b8   :  { %5607 = vsyncpa [#allocation5 + $0x1], 1 }
0x14b9   :  { %5608 = vsyncpa [#allocation7], 1 }
0x14ba   :  { %5609 = vsyncpa [#allocation10], 1 }

</bundles_post_ra>
